<compile_context>
chip_gen: v5e
topology: v5e:2x2
jax: 0.10.0
libtpu: 0.0.40
codegen_flags: <defaults>
</compile_context>

<pallas_src>
import functools

import jax
import jax.numpy as jnp
from jax.experimental import pallas as pl
from jax.experimental.pallas import tpu as pltpu


def _round_up(x, m):
    return (x + m - 1) // m * m


# ------------------------------ Pallas kernel -------------------------------

def _residual_block_kernel(x_ref, w1_ref, b1_ref, w2_ref, b2_ref, o_ref,
                           xpad_ref, hpad_ref, *, H, W, C, KH, KW, pad, dil):
    """Per batch item: out = relu(bn2(conv2(relu(bn1(conv1(x))))) + x).

    x_ref  : [1, H, W, C]  f32  input activation block (NHWC)
    w*_ref : [KH*KW, C, C] bf16 conv weights, tap-major, BN scale folded in
    b*_ref : [1, C]        f32  folded BN bias
    o_ref  : [1, H, W, C]  f32  output block
    xpad_ref, hpad_ref    : f32 VMEM scratch holding the zero-padded activation
    """
    x = x_ref[0]                                    # [H, W, C] f32 (identity path)

    def conv(src_pad_ref, w_ref):
        # Accumulate KH*KW shifted-window tap matmuls (bf16 MXU, f32 accumulate).
        acc = jnp.zeros((H * W, C), jnp.float32)
        for ki in range(KH):
            for kj in range(KW):
                t = ki * KW + kj
                lhs = src_pad_ref[pl.ds(ki * dil, H), pl.ds(kj * dil, W), :]
                lhs = lhs.reshape(H * W, C).astype(jnp.bfloat16)
                acc = acc + jnp.dot(lhs, w_ref[t],
                                    preferred_element_type=jnp.float32)
        return acc

    # ---- conv1 + bn1 + relu (result kept in VMEM) ----
    xpad_ref[...] = jnp.zeros_like(xpad_ref)
    xpad_ref[pl.ds(pad, H), pl.ds(pad, W), :] = x
    h = jnp.maximum(conv(xpad_ref, w1_ref) + b1_ref[...], 0.0)      # [H*W, C] f32

    # ---- conv2 + bn2 + identity + relu ----
    hpad_ref[...] = jnp.zeros_like(hpad_ref)
    hpad_ref[pl.ds(pad, H), pl.ds(pad, W), :] = h.reshape(H, W, C)
    out = conv(hpad_ref, w2_ref) + b2_ref[...] + x.reshape(H * W, C)
    out = jnp.maximum(out, 0.0)
    o_ref[0] = out.reshape(H, W, C).astype(o_ref.dtype)


# ---------------------------- pallas_call wrapper ----------------------------

def _fused_residual_block(x_nhwc, w1, b1, w2, b2, *, KH, KW, pad, dil):
    B, H, W, C = x_nhwc.shape
    Hp = H + 2 * pad
    Wp = _round_up(W + 2 * pad, 8)          # sublane-friendly scratch width

    kernel = functools.partial(_residual_block_kernel, H=H, W=W, C=C,
                               KH=KH, KW=KW, pad=pad, dil=dil)
    return pl.pallas_call(
        kernel,
        out_shape=jax.ShapeDtypeStruct((B, H, W, C), jnp.float32),
        grid=(B,),
        in_specs=[
            pl.BlockSpec((1, H, W, C), lambda b: (b, 0, 0, 0)),       # activation
            pl.BlockSpec((KH * KW, C, C), lambda b: (0, 0, 0)),       # w1 (resident)
            pl.BlockSpec((1, C), lambda b: (0, 0)),                   # b1
            pl.BlockSpec((KH * KW, C, C), lambda b: (0, 0, 0)),       # w2 (resident)
            pl.BlockSpec((1, C), lambda b: (0, 0)),                   # b2
        ],
        out_specs=pl.BlockSpec((1, H, W, C), lambda b: (b, 0, 0, 0)),
        scratch_shapes=[
            pltpu.VMEM((Hp, Wp, C), jnp.float32),   # zero-padded x
            pltpu.VMEM((Hp, Wp, C), jnp.float32),   # zero-padded conv1 output
        ],
        compiler_params=pltpu.CompilerParams(
            dimension_semantics=("parallel",),      # batch blocks -> both v7x cores
        ),
    )(x_nhwc, w1, b1, w2, b2)


# ------------------------------ parameter packing ----------------------------

def pack_params(params, eps=1e-5):
    """Fold BN (inference stats) into the conv weights/bias and pre-pack for the
    kernel. Call ONCE outside the jitted forward (weights never change per call)."""
    w1, bn1, w2, bn2 = params

    def fold(w_oihw, bn):
        gamma, beta, mean, var = bn
        scale = gamma / jnp.sqrt(var + eps)                    # [Cout]
        bias = beta - mean * scale                             # [Cout]
        cout, cin, kh, kw = w_oihw.shape
        w = jnp.transpose(w_oihw, (2, 3, 1, 0)) * scale        # [KH,KW,Cin,Cout]
        w = w.reshape(kh * kw, cin, cout).astype(jnp.bfloat16)
        return w, bias.reshape(1, cout).astype(jnp.float32)

    w1p, b1p = fold(w1, bn1)
    w2p, b2p = fold(w2, bn2)
    return (w1p, b1p, w2p, b2p)


# --------------------------------- forward -----------------------------------

def residual_block_forward(x_nchw, packed, *, kernel_size=3, dilation=1, padding=1):
    """Pallas forward of ResidualBlock(c, c) with default constructor args
    (reduce=False, so both convs run at stride = stride-1 = 1).

    # TODO(synk): the reduce=True branch (stride-2 conv1 + MaxPool2d((2,2)) shortcut)
    # is not implemented; default args give reduce=False.
    # TODO(synk): BatchNorm uses inference-mode folded running stats; PyTorch
    # training-mode batch statistics are not reproduced.
    """
    assert 2 * padding == dilation * (kernel_size - 1), (
        "residual add requires conv output spatial size == input spatial size")
    w1, b1, w2, b2 = packed
    x = jnp.transpose(x_nchw, (0, 2, 3, 1)).astype(jnp.float32)   # NCHW -> NHWC
    y = _fused_residual_block(x, w1, b1, w2, b2,
                              KH=kernel_size, KW=kernel_size,
                              pad=padding, dil=dilation)
    return jnp.transpose(y, (0, 3, 1, 2))                         # NHWC -> NCHW


# ------------------------------ pure-JAX reference ---------------------------

def residual_block_ref(x_nchw, params, eps=1e-5):
    w1, bn1, w2, bn2 = params

    def conv_bn(h, w, bn):
        y = jax.lax.conv_general_dilated(
            h, w, window_strides=(1, 1), padding=((1, 1), (1, 1)),
            dimension_numbers=("NCHW", "OIHW", "NCHW"))
        gamma, beta, mean, var = bn
        scale = gamma / jnp.sqrt(var + eps)
        bias = beta - mean * scale
        return y * scale[None, :, None, None] + bias[None, :, None, None]

    out = jax.nn.relu(conv_bn(x_nchw, w1, bn1))
    out = conv_bn(out, w2, bn2)
    return jax.nn.relu(out + x_nchw)


# ---------------------------------- params -----------------------------------

def init_residual_block_params(key, channels, kernel_size=3):
    k1, k2, k3, k4 = jax.random.split(key, 4)

    def conv_w(k, cout, cin, kh, kw):
        fan_in = cin * kh * kw
        return jax.random.normal(k, (cout, cin, kh, kw),
                                 jnp.float32) / jnp.sqrt(float(fan_in))

    def bn(k, c):
        ka, kb, kc, kd = jax.random.split(k, 4)
        gamma = 1.0 + 0.1 * jax.random.normal(ka, (c,), jnp.float32)
        beta = 0.1 * jax.random.normal(kb, (c,), jnp.float32)
        mean = 0.1 * jax.random.normal(kc, (c,), jnp.float32)
        var = 1.0 + 0.1 * jnp.abs(jax.random.normal(kd, (c,), jnp.float32))
        return (gamma, beta, mean, var)

    return (conv_w(k1, channels, channels, kernel_size, kernel_size), bn(k2, channels),
            conv_w(k3, channels, channels, kernel_size, kernel_size), bn(k4, channels))


if __name__ == "__main__":
    key = jax.random.PRNGKey(0)
    kx, kp = jax.random.split(key)

    # PyTorch-style NCHW input for ResidualBlock(C, C) with default args.
    B, C, H, W = 2, 32, 16, 16
    x = jax.random.normal(kx, (B, C, H, W), jnp.float32)

    params = init_residual_block_params(kp, C)
    packed = pack_params(params)           # fold BN + pre-pack weights once, outside jit

    fwd = jax.jit(residual_block_forward)
    out = jax.block_until_ready(fwd(x, packed))

    assert out.shape == (B, C, H, W), out.shape
    assert bool(jnp.all(jnp.isfinite(out)))

    # Correctness vs pure-JAX reference (bf16 MXU operands -> loose tolerance).
    ref = residual_block_ref(x, params)
    max_err = float(jnp.max(jnp.abs(out - ref)))
    assert max_err < 1e-1, f"max abs error vs reference: {max_err}"

    print("KERNEL_OK")
</pallas_src>

<mosaic_0001>
module attributes {stable_mosaic.version = 11 : i64} {
  func.func @_residual_block_kernel(%arg0: i32, %arg1: memref<1x16x16x32xf32, #tpu.memory_space<vmem>>, %arg2: memref<9x32x32xbf16, #tpu.memory_space<vmem>>, %arg3: memref<1x32xf32, #tpu.memory_space<vmem>>, %arg4: memref<9x32x32xbf16, #tpu.memory_space<vmem>>, %arg5: memref<1x32xf32, #tpu.memory_space<vmem>>, %arg6: memref<1x16x16x32xf32, #tpu.memory_space<vmem>>, %arg7: memref<18x24x32xf32, #tpu.memory_space<vmem>>, %arg8: memref<18x24x32xf32, #tpu.memory_space<vmem>>) attributes {dimension_semantics = [#tpu.dimension_semantics<parallel>], iteration_bounds = array<i64: 2>, scalar_prefetch = 0 : i64, scratch_operands = 2 : i64, tpu.core_type = #tpu.core_type<tc>, window_params = [{transform_indices = @transform_0, window_bounds = array<i64: 1, 16, 16, 32>}, {pipeline_mode = #tpu.pipeline_mode<synchronous>, transform_indices = @transform_1, window_bounds = array<i64: 9, 32, 32>}, {pipeline_mode = #tpu.pipeline_mode<synchronous>, transform_indices = @transform_2, window_bounds = array<i64: 1, 32>}, {pipeline_mode = #tpu.pipeline_mode<synchronous>, transform_indices = @transform_3, window_bounds = array<i64: 9, 32, 32>}, {pipeline_mode = #tpu.pipeline_mode<synchronous>, transform_indices = @transform_4, window_bounds = array<i64: 1, 32>}, {transform_indices = @transform_5, window_bounds = array<i64: 1, 16, 16, 32>}]} {
    %c0 = arith.constant 0 : index
    %c0_0 = arith.constant 0 : index
    %c0_1 = arith.constant 0 : index
    %c0_2 = arith.constant 0 : index
    %0 = vector.load %arg1[%c0, %c0_0, %c0_1, %c0_2] : memref<1x16x16x32xf32, #tpu.memory_space<vmem>>, vector<1x16x16x32xf32>
    %1 = vector.shape_cast %0 : vector<1x16x16x32xf32> to vector<16x16x32xf32>
    %cst = arith.constant 0.000000e+00 : f32
    %2 = vector.broadcast %cst : f32 to vector<18x24x32xf32>
    %c0_3 = arith.constant 0 : index
    %c0_4 = arith.constant 0 : index
    %c0_5 = arith.constant 0 : index
    %3 = vector.load %arg7[%c0_3, %c0_4, %c0_5] : memref<18x24x32xf32, #tpu.memory_space<vmem>>, vector<18x24x32xf32>
    tpu.vector_store %arg7[%c0_3, %c0_4, %c0_5], %2 {strides = array<i32>} : memref<18x24x32xf32, #tpu.memory_space<vmem>>, vector<18x24x32xf32>,
    %c1 = arith.constant 1 : index
    %c1_6 = arith.constant 1 : index
    %c0_7 = arith.constant 0 : index
    %4 = vector.load %arg7[%c1, %c1_6, %c0_7] : memref<18x24x32xf32, #tpu.memory_space<vmem>>, vector<16x16x32xf32>
    tpu.vector_store %arg7[%c1, %c1_6, %c0_7], %1 {strides = array<i32>} : memref<18x24x32xf32, #tpu.memory_space<vmem>>, vector<16x16x32xf32>,
    %cst_8 = arith.constant 0.000000e+00 : f32
    %5 = vector.broadcast %cst_8 : f32 to vector<256x32xf32>
    %c0_9 = arith.constant 0 : index
    %c0_10 = arith.constant 0 : index
    %c0_11 = arith.constant 0 : index
    %6 = vector.load %arg7[%c0_9, %c0_10, %c0_11] : memref<18x24x32xf32, #tpu.memory_space<vmem>>, vector<16x16x32xf32>
    %7 = vector.shape_cast %6 : vector<16x16x32xf32> to vector<256x32xf32>
    %8 = arith.truncf %7 : vector<256x32xf32> to vector<256x32xbf16>
    %c0_12 = arith.constant 0 : index
    %c0_13 = arith.constant 0 : index
    %c0_14 = arith.constant 0 : index
    %9 = vector.load %arg2[%c0_12, %c0_13, %c0_14] : memref<9x32x32xbf16, #tpu.memory_space<vmem>>, vector<1x32x32xbf16>
    %10 = vector.shape_cast %9 : vector<1x32x32xbf16> to vector<32x32xbf16>
    %cst_15 = arith.constant dense<0.000000e+00> : vector<256x32xf32>
    %11 = tpu.matmul %8, %10, %cst_15 {dimension_numbers = #tpu.dot_dimension_numbers<[1], [0], [0], [1], [0, 0, 1, 1], [], []>} : vector<256x32xbf16>, vector<32x32xbf16>, vector<256x32xf32> -> vector<256x32xf32>
    %12 = arith.addf %5, %11 : vector<256x32xf32>
    %c0_16 = arith.constant 0 : index
    %c1_17 = arith.constant 1 : index
    %c0_18 = arith.constant 0 : index
    %13 = vector.load %arg7[%c0_16, %c1_17, %c0_18] : memref<18x24x32xf32, #tpu.memory_space<vmem>>, vector<16x16x32xf32>
    %14 = vector.shape_cast %13 : vector<16x16x32xf32> to vector<256x32xf32>
    %15 = arith.truncf %14 : vector<256x32xf32> to vector<256x32xbf16>
    %c1_19 = arith.constant 1 : index
    %c0_20 = arith.constant 0 : index
    %c0_21 = arith.constant 0 : index
    %16 = vector.load %arg2[%c1_19, %c0_20, %c0_21] : memref<9x32x32xbf16, #tpu.memory_space<vmem>>, vector<1x32x32xbf16>
    %17 = vector.shape_cast %16 : vector<1x32x32xbf16> to vector<32x32xbf16>
    %cst_22 = arith.constant dense<0.000000e+00> : vector<256x32xf32>
    %18 = tpu.matmul %15, %17, %cst_22 {dimension_numbers = #tpu.dot_dimension_numbers<[1], [0], [0], [1], [0, 0, 1, 1], [], []>} : vector<256x32xbf16>, vector<32x32xbf16>, vector<256x32xf32> -> vector<256x32xf32>
    %19 = arith.addf %12, %18 : vector<256x32xf32>
    %c0_23 = arith.constant 0 : index
    %c2 = arith.constant 2 : index
    %c0_24 = arith.constant 0 : index
    %20 = vector.load %arg7[%c0_23, %c2, %c0_24] : memref<18x24x32xf32, #tpu.memory_space<vmem>>, vector<16x16x32xf32>
    %21 = vector.shape_cast %20 : vector<16x16x32xf32> to vector<256x32xf32>
    %22 = arith.truncf %21 : vector<256x32xf32> to vector<256x32xbf16>
    %c2_25 = arith.constant 2 : index
    %c0_26 = arith.constant 0 : index
    %c0_27 = arith.constant 0 : index
    %23 = vector.load %arg2[%c2_25, %c0_26, %c0_27] : memref<9x32x32xbf16, #tpu.memory_space<vmem>>, vector<1x32x32xbf16>
    %24 = vector.shape_cast %23 : vector<1x32x32xbf16> to vector<32x32xbf16>
    %cst_28 = arith.constant dense<0.000000e+00> : vector<256x32xf32>
    %25 = tpu.matmul %22, %24, %cst_28 {dimension_numbers = #tpu.dot_dimension_numbers<[1], [0], [0], [1], [0, 0, 1, 1], [], []>} : vector<256x32xbf16>, vector<32x32xbf16>, vector<256x32xf32> -> vector<256x32xf32>
    %26 = arith.addf %19, %25 : vector<256x32xf32>
    %c1_29 = arith.constant 1 : index
    %c0_30 = arith.constant 0 : index
    %c0_31 = arith.constant 0 : index
    %27 = vector.load %arg7[%c1_29, %c0_30, %c0_31] : memref<18x24x32xf32, #tpu.memory_space<vmem>>, vector<16x16x32xf32>
    %28 = vector.shape_cast %27 : vector<16x16x32xf32> to vector<256x32xf32>
    %29 = arith.truncf %28 : vector<256x32xf32> to vector<256x32xbf16>
    %c3 = arith.constant 3 : index
    %c0_32 = arith.constant 0 : index
    %c0_33 = arith.constant 0 : index
    %30 = vector.load %arg2[%c3, %c0_32, %c0_33] : memref<9x32x32xbf16, #tpu.memory_space<vmem>>, vector<1x32x32xbf16>
    %31 = vector.shape_cast %30 : vector<1x32x32xbf16> to vector<32x32xbf16>
    %cst_34 = arith.constant dense<0.000000e+00> : vector<256x32xf32>
    %32 = tpu.matmul %29, %31, %cst_34 {dimension_numbers = #tpu.dot_dimension_numbers<[1], [0], [0], [1], [0, 0, 1, 1], [], []>} : vector<256x32xbf16>, vector<32x32xbf16>, vector<256x32xf32> -> vector<256x32xf32>
    %33 = arith.addf %26, %32 : vector<256x32xf32>
    %c1_35 = arith.constant 1 : index
    %c1_36 = arith.constant 1 : index
    %c0_37 = arith.constant 0 : index
    %34 = vector.load %arg7[%c1_35, %c1_36, %c0_37] : memref<18x24x32xf32, #tpu.memory_space<vmem>>, vector<16x16x32xf32>
    %35 = vector.shape_cast %34 : vector<16x16x32xf32> to vector<256x32xf32>
    %36 = arith.truncf %35 : vector<256x32xf32> to vector<256x32xbf16>
    %c4 = arith.constant 4 : index
    %c0_38 = arith.constant 0 : index
    %c0_39 = arith.constant 0 : index
    %37 = vector.load %arg2[%c4, %c0_38, %c0_39] : memref<9x32x32xbf16, #tpu.memory_space<vmem>>, vector<1x32x32xbf16>
    %38 = vector.shape_cast %37 : vector<1x32x32xbf16> to vector<32x32xbf16>
    %cst_40 = arith.constant dense<0.000000e+00> : vector<256x32xf32>
    %39 = tpu.matmul %36, %38, %cst_40 {dimension_numbers = #tpu.dot_dimension_numbers<[1], [0], [0], [1], [0, 0, 1, 1], [], []>} : vector<256x32xbf16>, vector<32x32xbf16>, vector<256x32xf32> -> vector<256x32xf32>
    %40 = arith.addf %33, %39 : vector<256x32xf32>
    %c1_41 = arith.constant 1 : index
    %c2_42 = arith.constant 2 : index
    %c0_43 = arith.constant 0 : index
    %41 = vector.load %arg7[%c1_41, %c2_42, %c0_43] : memref<18x24x32xf32, #tpu.memory_space<vmem>>, vector<16x16x32xf32>
    %42 = vector.shape_cast %41 : vector<16x16x32xf32> to vector<256x32xf32>
    %43 = arith.truncf %42 : vector<256x32xf32> to vector<256x32xbf16>
    %c5 = arith.constant 5 : index
    %c0_44 = arith.constant 0 : index
    %c0_45 = arith.constant 0 : index
    %44 = vector.load %arg2[%c5, %c0_44, %c0_45] : memref<9x32x32xbf16, #tpu.memory_space<vmem>>, vector<1x32x32xbf16>
    %45 = vector.shape_cast %44 : vector<1x32x32xbf16> to vector<32x32xbf16>
    %cst_46 = arith.constant dense<0.000000e+00> : vector<256x32xf32>
    %46 = tpu.matmul %43, %45, %cst_46 {dimension_numbers = #tpu.dot_dimension_numbers<[1], [0], [0], [1], [0, 0, 1, 1], [], []>} : vector<256x32xbf16>, vector<32x32xbf16>, vector<256x32xf32> -> vector<256x32xf32>
    %47 = arith.addf %40, %46 : vector<256x32xf32>
    %c2_47 = arith.constant 2 : index
    %c0_48 = arith.constant 0 : index
    %c0_49 = arith.constant 0 : index
    %48 = vector.load %arg7[%c2_47, %c0_48, %c0_49] : memref<18x24x32xf32, #tpu.memory_space<vmem>>, vector<16x16x32xf32>
    %49 = vector.shape_cast %48 : vector<16x16x32xf32> to vector<256x32xf32>
    %50 = arith.truncf %49 : vector<256x32xf32> to vector<256x32xbf16>
    %c6 = arith.constant 6 : index
    %c0_50 = arith.constant 0 : index
    %c0_51 = arith.constant 0 : index
    %51 = vector.load %arg2[%c6, %c0_50, %c0_51] : memref<9x32x32xbf16, #tpu.memory_space<vmem>>, vector<1x32x32xbf16>
    %52 = vector.shape_cast %51 : vector<1x32x32xbf16> to vector<32x32xbf16>
    %cst_52 = arith.constant dense<0.000000e+00> : vector<256x32xf32>
    %53 = tpu.matmul %50, %52, %cst_52 {dimension_numbers = #tpu.dot_dimension_numbers<[1], [0], [0], [1], [0, 0, 1, 1], [], []>} : vector<256x32xbf16>, vector<32x32xbf16>, vector<256x32xf32> -> vector<256x32xf32>
    %54 = arith.addf %47, %53 : vector<256x32xf32>
    %c2_53 = arith.constant 2 : index
    %c1_54 = arith.constant 1 : index
    %c0_55 = arith.constant 0 : index
    %55 = vector.load %arg7[%c2_53, %c1_54, %c0_55] : memref<18x24x32xf32, #tpu.memory_space<vmem>>, vector<16x16x32xf32>
    %56 = vector.shape_cast %55 : vector<16x16x32xf32> to vector<256x32xf32>
    %57 = arith.truncf %56 : vector<256x32xf32> to vector<256x32xbf16>
    %c7 = arith.constant 7 : index
    %c0_56 = arith.constant 0 : index
    %c0_57 = arith.constant 0 : index
    %58 = vector.load %arg2[%c7, %c0_56, %c0_57] : memref<9x32x32xbf16, #tpu.memory_space<vmem>>, vector<1x32x32xbf16>
    %59 = vector.shape_cast %58 : vector<1x32x32xbf16> to vector<32x32xbf16>
    %cst_58 = arith.constant dense<0.000000e+00> : vector<256x32xf32>
    %60 = tpu.matmul %57, %59, %cst_58 {dimension_numbers = #tpu.dot_dimension_numbers<[1], [0], [0], [1], [0, 0, 1, 1], [], []>} : vector<256x32xbf16>, vector<32x32xbf16>, vector<256x32xf32> -> vector<256x32xf32>
    %61 = arith.addf %54, %60 : vector<256x32xf32>
    %c2_59 = arith.constant 2 : index
    %c2_60 = arith.constant 2 : index
    %c0_61 = arith.constant 0 : index
    %62 = vector.load %arg7[%c2_59, %c2_60, %c0_61] : memref<18x24x32xf32, #tpu.memory_space<vmem>>, vector<16x16x32xf32>
    %63 = vector.shape_cast %62 : vector<16x16x32xf32> to vector<256x32xf32>
    %64 = arith.truncf %63 : vector<256x32xf32> to vector<256x32xbf16>
    %c8 = arith.constant 8 : index
    %c0_62 = arith.constant 0 : index
    %c0_63 = arith.constant 0 : index
    %65 = vector.load %arg2[%c8, %c0_62, %c0_63] : memref<9x32x32xbf16, #tpu.memory_space<vmem>>, vector<1x32x32xbf16>
    %66 = vector.shape_cast %65 : vector<1x32x32xbf16> to vector<32x32xbf16>
    %cst_64 = arith.constant dense<0.000000e+00> : vector<256x32xf32>
    %67 = tpu.matmul %64, %66, %cst_64 {dimension_numbers = #tpu.dot_dimension_numbers<[1], [0], [0], [1], [0, 0, 1, 1], [], []>} : vector<256x32xbf16>, vector<32x32xbf16>, vector<256x32xf32> -> vector<256x32xf32>
    %68 = arith.addf %61, %67 : vector<256x32xf32>
    %c0_65 = arith.constant 0 : index
    %c0_66 = arith.constant 0 : index
    %69 = vector.load %arg3[%c0_65, %c0_66] : memref<1x32xf32, #tpu.memory_space<vmem>>, vector<1x32xf32>
    %70 = vector.broadcast %69 : vector<1x32xf32> to vector<256x32xf32>
    %71 = arith.addf %68, %70 : vector<256x32xf32>
    %cst_67 = arith.constant 0.000000e+00 : f32
    %72 = vector.broadcast %cst_67 : f32 to vector<256x32xf32>
    %73 = arith.maximumf %71, %72 : vector<256x32xf32>
    %cst_68 = arith.constant 0.000000e+00 : f32
    %74 = vector.broadcast %cst_68 : f32 to vector<18x24x32xf32>
    %c0_69 = arith.constant 0 : index
    %c0_70 = arith.constant 0 : index
    %c0_71 = arith.constant 0 : index
    %75 = vector.load %arg8[%c0_69, %c0_70, %c0_71] : memref<18x24x32xf32, #tpu.memory_space<vmem>>, vector<18x24x32xf32>
    tpu.vector_store %arg8[%c0_69, %c0_70, %c0_71], %74 {strides = array<i32>} : memref<18x24x32xf32, #tpu.memory_space<vmem>>, vector<18x24x32xf32>,
    %76 = vector.shape_cast %73 : vector<256x32xf32> to vector<16x16x32xf32>
    %c1_72 = arith.constant 1 : index
    %c1_73 = arith.constant 1 : index
    %c0_74 = arith.constant 0 : index
    %77 = vector.load %arg8[%c1_72, %c1_73, %c0_74] : memref<18x24x32xf32, #tpu.memory_space<vmem>>, vector<16x16x32xf32>
    tpu.vector_store %arg8[%c1_72, %c1_73, %c0_74], %76 {strides = array<i32>} : memref<18x24x32xf32, #tpu.memory_space<vmem>>, vector<16x16x32xf32>,
    %cst_75 = arith.constant 0.000000e+00 : f32
    %78 = vector.broadcast %cst_75 : f32 to vector<256x32xf32>
    %c0_76 = arith.constant 0 : index
    %c0_77 = arith.constant 0 : index
    %c0_78 = arith.constant 0 : index
    %79 = vector.load %arg8[%c0_76, %c0_77, %c0_78] : memref<18x24x32xf32, #tpu.memory_space<vmem>>, vector<16x16x32xf32>
    %80 = vector.shape_cast %79 : vector<16x16x32xf32> to vector<256x32xf32>
    %81 = arith.truncf %80 : vector<256x32xf32> to vector<256x32xbf16>
    %c0_79 = arith.constant 0 : index
    %c0_80 = arith.constant 0 : index
    %c0_81 = arith.constant 0 : index
    %82 = vector.load %arg4[%c0_79, %c0_80, %c0_81] : memref<9x32x32xbf16, #tpu.memory_space<vmem>>, vector<1x32x32xbf16>
    %83 = vector.shape_cast %82 : vector<1x32x32xbf16> to vector<32x32xbf16>
    %cst_82 = arith.constant dense<0.000000e+00> : vector<256x32xf32>
    %84 = tpu.matmul %81, %83, %cst_82 {dimension_numbers = #tpu.dot_dimension_numbers<[1], [0], [0], [1], [0, 0, 1, 1], [], []>} : vector<256x32xbf16>, vector<32x32xbf16>, vector<256x32xf32> -> vector<256x32xf32>
    %85 = arith.addf %78, %84 : vector<256x32xf32>
    %c0_83 = arith.constant 0 : index
    %c1_84 = arith.constant 1 : index
    %c0_85 = arith.constant 0 : index
    %86 = vector.load %arg8[%c0_83, %c1_84, %c0_85] : memref<18x24x32xf32, #tpu.memory_space<vmem>>, vector<16x16x32xf32>
    %87 = vector.shape_cast %86 : vector<16x16x32xf32> to vector<256x32xf32>
    %88 = arith.truncf %87 : vector<256x32xf32> to vector<256x32xbf16>
    %c1_86 = arith.constant 1 : index
    %c0_87 = arith.constant 0 : index
    %c0_88 = arith.constant 0 : index
    %89 = vector.load %arg4[%c1_86, %c0_87, %c0_88] : memref<9x32x32xbf16, #tpu.memory_space<vmem>>, vector<1x32x32xbf16>
    %90 = vector.shape_cast %89 : vector<1x32x32xbf16> to vector<32x32xbf16>
    %cst_89 = arith.constant dense<0.000000e+00> : vector<256x32xf32>
    %91 = tpu.matmul %88, %90, %cst_89 {dimension_numbers = #tpu.dot_dimension_numbers<[1], [0], [0], [1], [0, 0, 1, 1], [], []>} : vector<256x32xbf16>, vector<32x32xbf16>, vector<256x32xf32> -> vector<256x32xf32>
    %92 = arith.addf %85, %91 : vector<256x32xf32>
    %c0_90 = arith.constant 0 : index
    %c2_91 = arith.constant 2 : index
    %c0_92 = arith.constant 0 : index
    %93 = vector.load %arg8[%c0_90, %c2_91, %c0_92] : memref<18x24x32xf32, #tpu.memory_space<vmem>>, vector<16x16x32xf32>
    %94 = vector.shape_cast %93 : vector<16x16x32xf32> to vector<256x32xf32>
    %95 = arith.truncf %94 : vector<256x32xf32> to vector<256x32xbf16>
    %c2_93 = arith.constant 2 : index
    %c0_94 = arith.constant 0 : index
    %c0_95 = arith.constant 0 : index
    %96 = vector.load %arg4[%c2_93, %c0_94, %c0_95] : memref<9x32x32xbf16, #tpu.memory_space<vmem>>, vector<1x32x32xbf16>
    %97 = vector.shape_cast %96 : vector<1x32x32xbf16> to vector<32x32xbf16>
    %cst_96 = arith.constant dense<0.000000e+00> : vector<256x32xf32>
    %98 = tpu.matmul %95, %97, %cst_96 {dimension_numbers = #tpu.dot_dimension_numbers<[1], [0], [0], [1], [0, 0, 1, 1], [], []>} : vector<256x32xbf16>, vector<32x32xbf16>, vector<256x32xf32> -> vector<256x32xf32>
    %99 = arith.addf %92, %98 : vector<256x32xf32>
    %c1_97 = arith.constant 1 : index
    %c0_98 = arith.constant 0 : index
    %c0_99 = arith.constant 0 : index
    %100 = vector.load %arg8[%c1_97, %c0_98, %c0_99] : memref<18x24x32xf32, #tpu.memory_space<vmem>>, vector<16x16x32xf32>
    %101 = vector.shape_cast %100 : vector<16x16x32xf32> to vector<256x32xf32>
    %102 = arith.truncf %101 : vector<256x32xf32> to vector<256x32xbf16>
    %c3_100 = arith.constant 3 : index
    %c0_101 = arith.constant 0 : index
    %c0_102 = arith.constant 0 : index
    %103 = vector.load %arg4[%c3_100, %c0_101, %c0_102] : memref<9x32x32xbf16, #tpu.memory_space<vmem>>, vector<1x32x32xbf16>
    %104 = vector.shape_cast %103 : vector<1x32x32xbf16> to vector<32x32xbf16>
    %cst_103 = arith.constant dense<0.000000e+00> : vector<256x32xf32>
    %105 = tpu.matmul %102, %104, %cst_103 {dimension_numbers = #tpu.dot_dimension_numbers<[1], [0], [0], [1], [0, 0, 1, 1], [], []>} : vector<256x32xbf16>, vector<32x32xbf16>, vector<256x32xf32> -> vector<256x32xf32>
    %106 = arith.addf %99, %105 : vector<256x32xf32>
    %c1_104 = arith.constant 1 : index
    %c1_105 = arith.constant 1 : index
    %c0_106 = arith.constant 0 : index
    %107 = vector.load %arg8[%c1_104, %c1_105, %c0_106] : memref<18x24x32xf32, #tpu.memory_space<vmem>>, vector<16x16x32xf32>
    %108 = vector.shape_cast %107 : vector<16x16x32xf32> to vector<256x32xf32>
    %109 = arith.truncf %108 : vector<256x32xf32> to vector<256x32xbf16>
    %c4_107 = arith.constant 4 : index
    %c0_108 = arith.constant 0 : index
    %c0_109 = arith.constant 0 : index
    %110 = vector.load %arg4[%c4_107, %c0_108, %c0_109] : memref<9x32x32xbf16, #tpu.memory_space<vmem>>, vector<1x32x32xbf16>
    %111 = vector.shape_cast %110 : vector<1x32x32xbf16> to vector<32x32xbf16>
    %cst_110 = arith.constant dense<0.000000e+00> : vector<256x32xf32>
    %112 = tpu.matmul %109, %111, %cst_110 {dimension_numbers = #tpu.dot_dimension_numbers<[1], [0], [0], [1], [0, 0, 1, 1], [], []>} : vector<256x32xbf16>, vector<32x32xbf16>, vector<256x32xf32> -> vector<256x32xf32>
    %113 = arith.addf %106, %112 : vector<256x32xf32>
    %c1_111 = arith.constant 1 : index
    %c2_112 = arith.constant 2 : index
    %c0_113 = arith.constant 0 : index
    %114 = vector.load %arg8[%c1_111, %c2_112, %c0_113] : memref<18x24x32xf32, #tpu.memory_space<vmem>>, vector<16x16x32xf32>
    %115 = vector.shape_cast %114 : vector<16x16x32xf32> to vector<256x32xf32>
    %116 = arith.truncf %115 : vector<256x32xf32> to vector<256x32xbf16>
    %c5_114 = arith.constant 5 : index
    %c0_115 = arith.constant 0 : index
    %c0_116 = arith.constant 0 : index
    %117 = vector.load %arg4[%c5_114, %c0_115, %c0_116] : memref<9x32x32xbf16, #tpu.memory_space<vmem>>, vector<1x32x32xbf16>
    %118 = vector.shape_cast %117 : vector<1x32x32xbf16> to vector<32x32xbf16>
    %cst_117 = arith.constant dense<0.000000e+00> : vector<256x32xf32>
    %119 = tpu.matmul %116, %118, %cst_117 {dimension_numbers = #tpu.dot_dimension_numbers<[1], [0], [0], [1], [0, 0, 1, 1], [], []>} : vector<256x32xbf16>, vector<32x32xbf16>, vector<256x32xf32> -> vector<256x32xf32>
    %120 = arith.addf %113, %119 : vector<256x32xf32>
    %c2_118 = arith.constant 2 : index
    %c0_119 = arith.constant 0 : index
    %c0_120 = arith.constant 0 : index
    %121 = vector.load %arg8[%c2_118, %c0_119, %c0_120] : memref<18x24x32xf32, #tpu.memory_space<vmem>>, vector<16x16x32xf32>
    %122 = vector.shape_cast %121 : vector<16x16x32xf32> to vector<256x32xf32>
    %123 = arith.truncf %122 : vector<256x32xf32> to vector<256x32xbf16>
    %c6_121 = arith.constant 6 : index
    %c0_122 = arith.constant 0 : index
    %c0_123 = arith.constant 0 : index
    %124 = vector.load %arg4[%c6_121, %c0_122, %c0_123] : memref<9x32x32xbf16, #tpu.memory_space<vmem>>, vector<1x32x32xbf16>
    %125 = vector.shape_cast %124 : vector<1x32x32xbf16> to vector<32x32xbf16>
    %cst_124 = arith.constant dense<0.000000e+00> : vector<256x32xf32>
    %126 = tpu.matmul %123, %125, %cst_124 {dimension_numbers = #tpu.dot_dimension_numbers<[1], [0], [0], [1], [0, 0, 1, 1], [], []>} : vector<256x32xbf16>, vector<32x32xbf16>, vector<256x32xf32> -> vector<256x32xf32>
    %127 = arith.addf %120, %126 : vector<256x32xf32>
    %c2_125 = arith.constant 2 : index
    %c1_126 = arith.constant 1 : index
    %c0_127 = arith.constant 0 : index
    %128 = vector.load %arg8[%c2_125, %c1_126, %c0_127] : memref<18x24x32xf32, #tpu.memory_space<vmem>>, vector<16x16x32xf32>
    %129 = vector.shape_cast %128 : vector<16x16x32xf32> to vector<256x32xf32>
    %130 = arith.truncf %129 : vector<256x32xf32> to vector<256x32xbf16>
    %c7_128 = arith.constant 7 : index
    %c0_129 = arith.constant 0 : index
    %c0_130 = arith.constant 0 : index
    %131 = vector.load %arg4[%c7_128, %c0_129, %c0_130] : memref<9x32x32xbf16, #tpu.memory_space<vmem>>, vector<1x32x32xbf16>
    %132 = vector.shape_cast %131 : vector<1x32x32xbf16> to vector<32x32xbf16>
    %cst_131 = arith.constant dense<0.000000e+00> : vector<256x32xf32>
    %133 = tpu.matmul %130, %132, %cst_131 {dimension_numbers = #tpu.dot_dimension_numbers<[1], [0], [0], [1], [0, 0, 1, 1], [], []>} : vector<256x32xbf16>, vector<32x32xbf16>, vector<256x32xf32> -> vector<256x32xf32>
    %134 = arith.addf %127, %133 : vector<256x32xf32>
    %c2_132 = arith.constant 2 : index
    %c2_133 = arith.constant 2 : index
    %c0_134 = arith.constant 0 : index
    %135 = vector.load %arg8[%c2_132, %c2_133, %c0_134] : memref<18x24x32xf32, #tpu.memory_space<vmem>>, vector<16x16x32xf32>
    %136 = vector.shape_cast %135 : vector<16x16x32xf32> to vector<256x32xf32>
    %137 = arith.truncf %136 : vector<256x32xf32> to vector<256x32xbf16>
    %c8_135 = arith.constant 8 : index
    %c0_136 = arith.constant 0 : index
    %c0_137 = arith.constant 0 : index
    %138 = vector.load %arg4[%c8_135, %c0_136, %c0_137] : memref<9x32x32xbf16, #tpu.memory_space<vmem>>, vector<1x32x32xbf16>
    %139 = vector.shape_cast %138 : vector<1x32x32xbf16> to vector<32x32xbf16>
    %cst_138 = arith.constant dense<0.000000e+00> : vector<256x32xf32>
    %140 = tpu.matmul %137, %139, %cst_138 {dimension_numbers = #tpu.dot_dimension_numbers<[1], [0], [0], [1], [0, 0, 1, 1], [], []>} : vector<256x32xbf16>, vector<32x32xbf16>, vector<256x32xf32> -> vector<256x32xf32>
    %141 = arith.addf %134, %140 : vector<256x32xf32>
    %c0_139 = arith.constant 0 : index
    %c0_140 = arith.constant 0 : index
    %142 = vector.load %arg5[%c0_139, %c0_140] : memref<1x32xf32, #tpu.memory_space<vmem>>, vector<1x32xf32>
    %143 = vector.broadcast %142 : vector<1x32xf32> to vector<256x32xf32>
    %144 = arith.addf %141, %143 : vector<256x32xf32>
    %145 = vector.shape_cast %1 : vector<16x16x32xf32> to vector<256x32xf32>
    %146 = arith.addf %144, %145 : vector<256x32xf32>
    %cst_141 = arith.constant 0.000000e+00 : f32
    %147 = vector.broadcast %cst_141 : f32 to vector<256x32xf32>
    %148 = arith.maximumf %146, %147 : vector<256x32xf32>
    %149 = vector.shape_cast %148 : vector<256x32xf32> to vector<16x16x32xf32>
    %c0_142 = arith.constant 0 : index
    %c0_143 = arith.constant 0 : index
    %c0_144 = arith.constant 0 : index
    %c0_145 = arith.constant 0 : index
    %150 = vector.load %arg6[%c0_142, %c0_143, %c0_144, %c0_145] : memref<1x16x16x32xf32, #tpu.memory_space<vmem>>, vector<1x16x16x32xf32>
    %151 = vector.shape_cast %150 : vector<1x16x16x32xf32> to vector<16x16x32xf32>
    %152 = vector.shape_cast %149 : vector<16x16x32xf32> to vector<1x16x16x32xf32>
    tpu.vector_store %arg6[%c0_142, %c0_143, %c0_144, %c0_145], %152 {strides = array<i32>} : memref<1x16x16x32xf32, #tpu.memory_space<vmem>>, vector<1x16x16x32xf32>,
    return
  }
  func.func @transform_0(%arg0: i32) -> (i32, i32, i32, i32) {
    %c0_i32 = arith.constant 0 : i32
    %c0_i32_0 = arith.constant 0 : i32
    %c0_i32_1 = arith.constant 0 : i32
    %c0_i32_2 = arith.constant 0 : i32
    return %arg0, %c0_i32, %c0_i32_0, %c0_i32_1 : i32, i32, i32, i32
  }
  func.func @transform_1(%arg0: i32) -> (i32, i32, i32) {
    %c0_i32 = arith.constant 0 : i32
    %c0_i32_0 = arith.constant 0 : i32
    %c0_i32_1 = arith.constant 0 : i32
    %c0_i32_2 = arith.constant 0 : i32
    return %c0_i32, %c0_i32_0, %c0_i32_1 : i32, i32, i32
  }
  func.func @transform_2(%arg0: i32) -> (i32, i32) {
    %c0_i32 = arith.constant 0 : i32
    %c0_i32_0 = arith.constant 0 : i32
    %c0_i32_1 = arith.constant 0 : i32
    return %c0_i32, %c0_i32_0 : i32, i32
  }
  func.func @transform_3(%arg0: i32) -> (i32, i32, i32) {
    %c0_i32 = arith.constant 0 : i32
    %c0_i32_0 = arith.constant 0 : i32
    %c0_i32_1 = arith.constant 0 : i32
    %c0_i32_2 = arith.constant 0 : i32
    return %c0_i32, %c0_i32_0, %c0_i32_1 : i32, i32, i32
  }
  func.func @transform_4(%arg0: i32) -> (i32, i32) {
    %c0_i32 = arith.constant 0 : i32
    %c0_i32_0 = arith.constant 0 : i32
    %c0_i32_1 = arith.constant 0 : i32
    return %c0_i32, %c0_i32_0 : i32, i32
  }
  func.func @transform_5(%arg0: i32) -> (i32, i32, i32, i32) {
    %c0_i32 = arith.constant 0 : i32
    %c0_i32_0 = arith.constant 0 : i32
    %c0_i32_1 = arith.constant 0 : i32
    %c0_i32_2 = arith.constant 0 : i32
    return %arg0, %c0_i32, %c0_i32_0, %c0_i32_1 : i32, i32, i32, i32
  }
}

</mosaic_0001>

<bundles_post_ra>
// kernel: residual_block_forward.1
= control target key start
LH: loop header
LB: loop body
LE: loop exit
PB: predicated region body
PF: predicated region fallthrough
CT: control target
= control target key end

     0   :  { %10 = vsyncpa [#allocation5], 0  ;;  %s7648_s0 = inlined_call_operand.hbm [shape: f32[2,16,16,32], index: 0, kind: input, shape index: {}]   ;;  %s7649_s1 = inlined_call_operand.hbm [shape: bf16[9,32,32], index: 1, kind: input, shape index: {}]   ;;  %s7650_s2 = inlined_call_operand.vmem [shape: f32[1,32], index: 2, kind: input, shape index: {}]   ;;  %s7651_s3 = inlined_call_operand.hbm [shape: bf16[9,32,32], index: 3, kind: input, shape index: {}]   ;;  %s7652_s4 = inlined_call_operand.vmem [shape: f32[1,32], index: 4, kind: input, shape index: {}]   ;;  %s7653_s5 = inlined_call_operand.hbm [shape: f32[2,16,16,32], index: 5, kind: output, shape index: {}]  }
   0x1   :  { %12 = vsyncpa [#allocation5 + $0x1], 0 }
   0x2   :  { %13 = vsyncpa [#allocation8], 0 }
   0x3   :  { %14 = vsyncpa [#allocation6], 0 }
   0x4   :  { %16 = vsyncpa [#allocation6 + $0x1], 0  ;;  %s5648_s18 = smov 0   ;;  %s5650_s19 = smov 0  }
   0x5   :  { %s5652_s20 = smov 0   ;;  %s5654_s21 = smov 0  }
   0x6 LB: > { %s5669_s22 = sadd.s32 4294967295, %s5607_s21   ;;  %s4878_s23 = sadd.s32 4294967294, %s5607_s21   ;;  %s5607_s21 = sphi %s5654_s21, %s7879_s21   ;;  %s5603_s20 = sphi %s5652_s20, %s7878_s20   ;;  %s5599_s19 = sphi %s5650_s19, %s7877_s19   ;;  %s5595_s18 = sphi %s5648_s18, %s7876_s18  }
   0x7   : > { %p42_p0 = scmp.ne.s32.totalorder %s5599_s19, %s5595_s18  ;;  %p43_p1 = scmp.eq.s32.totalorder %s5669_s22, 0 }
   0x8   : > { %p150_p2 = scmp.eq.s32.totalorder %s5669_s22, 1  ;;  %p156_p3 = scmp.eq.s32.totalorder %s4878_s23, 1 }
   0x9   : > { %p5678_p4 = por %p43_p1, %p42_p0  ;;  %p4879_p5 = scmp.ge.s32.totalorder %s5607_s21, 1 }
   0xa   : > { %p5683_p6 = por %p156_p3, %p42_p0  ;;  %p163_p7 = scmp.lt.s32.totalorder %s5607_s21, 3 }
   0xb   : > { %s174_s28 = sshll.u32 %s7649_s1, 4  ;;  %s5609_s30 = smov [#allocation7]   ;;  %s175_s28 = int_to_ptr.hbm [resolvable:$true] %s174_s28 }
   0xc   : > { %p5691_p8 = pnand %p4879_p5, %p163_p7  ;;  %s176_s6 = sshll.u32 %s5609_s30, 4  ;;  %s177_s6 = int_to_ptr.vmem [resolvable:$true] %s176_s6 }
   0xd   : > { %s191_s9 = sshll.u32 %s7651_s3, 4  ;;  %s5610_s10 = smov 64   ;;  %s192_s9 = int_to_ptr.hbm [resolvable:$true] %s191_s9 }
   0xe   : > { %p5382_p9 = pneg %p5691_p8  ;;  %s5611_s11 = smov 4  }
   0xf   : > { %s5612_s12 = smov [#allocation9]   ;;  %s5704_s14 = sadd.s32 1, %s5607_s21  }
  0x10   : > { %p5383_p10 = pnand %p5382_p9, %p43_p1  ;;  %s193_s13 = sshll.u32 %s5612_s12, 4  ;;  %s194_s13 = int_to_ptr.vmem [resolvable:$true] %s193_s13 }
  0x11   : > { %s29_s15 = sadd.s32 1, %s5603_s20  ;;  %s26_s16 = ssub.s32 %s5607_s21, %s5704_s14 }
  0x12   : > { %5385 = dma.hbm_to_vmem [thread:$0]  (!%p5383_p10), %s175_s28, 2304, %s177_s6, [#allocation8], %s5610_s10, %s5610_s10, %s5611_s11  }
  0x13   : > { %5388 = dma.hbm_to_vmem [thread:$0]  (!%p5383_p10), %s192_s9, 2304, %s194_s13, [#allocation8], %s5610_s10, %s5610_s10, %s5611_s11  }
  0x14   : > { %p36_p12 = scmp.ne.s32.totalorder %s5603_s20, %s5599_s19  ;;  %p27_p13 = scmp.eq.s32.totalorder %s26_s16, 0 }
  0x15   : > { %p37_p0 = scmp.eq.s32.totalorder %s5607_s21, 0  ;;  %p5399_p5 = scmp.lt.s32.totalorder %s5607_s21, 2 }
  0x16   : > { %p5714_p3 = por %p150_p2, %p36_p12  ;;  %s210_s26 = sand.u32 1, %s5603_s20  }
  0x17   : > { %s5720_s23 = scalar_select %p27_p13, %s5603_s20, %s29_s15  }
  0x18   : > { %p38_p7 = por %p37_p0, %p36_p12  ;;  %s4883_s27 = sshll.u32 %s210_s26, 8 }
  0x19   : > { %s5328_s28 = sshll.u32 %s5607_s21, 8  ;;  %s214_s8 = scalar_lea.vmem [#allocation4], %s4883_s27 }
  0x1a   : > { %s219_s7 = scalar_lea.hbm %s7648_s0, %s5328_s28  ;;  %s222_s9 = sshll.u32 %s214_s8, 4  ;;  %s223_s9 = int_to_ptr.vmem [resolvable:$true] %s222_s9 }
  0x1b   : > { %s220_s10 = sshll.u32 %s219_s7, 4  ;;  %p5727_p2 = pnand %p5399_p5, %p38_p7  ;;  %s221_s10 = int_to_ptr.hbm [resolvable:$true] %s220_s10 }
  0x1c   : > { %s211_s12 = scalar_lea.sflag [#allocation5], %s210_s26  ;;  %s5507_s13 = sshra.s32 %s221_s10, 4  ;;  %s5508_s13 = int_to_ptr.hbm [resolvable:$true] %s5507_s13 }
  0x1d   : > { %s5509_s15 = scalar_lea.hbm %s5508_s13, 256  ;;  %p5511_p10 = pneg %p5727_p2 }
  0x1e   : > { %p5510_p9 = scmp.ne.s32.totalorder %s5508_s13, %s5509_s15  ;;  %s5514_s28 = scalar_lea.hbm %s7648_s0, 512 }
  0x1f   : > { %p5515_p0 = scmp.lt.s32.totalorder %s5508_s13, %s7648_s0  ;;  %p5516_p5 = scmp.lt.s32.totalorder %s5514_s28, %s5509_s15 }
  0x20   : > { %p5512_p12 = pnand %p5511_p10, %p5510_p9 }
  0x21   : > { %p5517_p7 = por %p5516_p5, %p5515_p0 }
  0x22   : > { %p5513_p13 = pneg %p5512_p12 }
  0x24   : > { %p5518_p11 = pnand %p5517_p7, %p5513_p13 }
  0x26   : > { %5521 = shalt.err (!%p5518_p11)
}
  0x27   : > { %s5613_s26 = smov 128   ;;  %s5614_s7 = smov 8  }
  0x28   : > { %5392 = dma.hbm_to_vmem [thread:$0]  (!%p5727_p2), %s221_s10, 4096, %s223_s9, %s211_s12, %s5613_s26, %s5613_s26, %s5614_s7  }
  0x29   : > { %234 = sbr.rel (%p5691_p8) target bundleno = 1602 (0x642), region = 40 }
  0x2e   : > { %s5744_s8 = sand.u32 1, %s5599_s19  }
  0x2f   : > { %s4887_s13 = sshll.u32 %s5744_s8, 8  ;;  %s237_s15 = scalar_lea.sflag [#allocation5], %s5744_s8 }
  0x30   : > { %s5750_s16 = scalar_lea.vmem [#allocation4], %s4887_s13 }
  0x31   : > { %5582 = dma.done.wait (%p5678_p4), %s237_s15, 4096  }
  0x32   : > { %5584 = vsyncadd (%p5678_p4), %s237_s15, 4294963200 }
  0x33   : > { %5586 = dma.done.wait (%p43_p1), [#allocation8], 4608  }
  0x34   : > { %5588 = vsyncadd (%p43_p1), [#allocation8], 4294962688  ;;  %vm311_vm0 = vcmask 261120   ;;  %v5615_v0 = vmov 0.0   ;;  %v5332_v1 = vld [vmem:[#allocation7 + $0x18] sm:$0xff]  ;;  %v5330_v2 = vld [vmem:[#allocation7 + $0x8] sm:$0xff] }
  0x35   : > { %312 = vst.msk [vmem:[#allocation2] sm:$0xff] %vm311_vm0, %v5615_v0  ;;  %v5331_v3 = vld [vmem:[#allocation7 + $0x10] sm:$0xff]  ;;  %570 = vmatpush.bf16.msra.mxu0 %v5332_v1  ;;  %5366 = vmatpush.bf16.msra.mxu2 %v5332_v1  ;;  %v5329_v5 = vld [vmem:[#allocation7] sm:$0xff]  ;;  %v5334_v10 = vld [vmem:[#allocation7 + $0x28] sm:$0xff]  ;;  %s7413_s27 = scalar_lea.vmem [#allocation10], %s4887_s13  ;;  %s5365_s28 = sshll.u32 %s5669_s22, 8 }
  0x36   : > { %313 = vst.msk [vmem:[#allocation2 + $0x8] sm:$0xff] %vm311_vm0, %v5615_v0  ;;  %5368 = vmatpush.bf16.msra.mxu3 %v5330_v2  ;;  %719 = vmatpush.bf16.msra.mxu1 %v5330_v2  ;;  %v5336_v12 = vld [vmem:[#allocation7 + $0x38] sm:$0xff]  ;;  %v5338_v13 = vld [vmem:[#allocation7 + $0x48] sm:$0xff]  ;;  %v5975_v14 = vld [vmem:[%s5750_s16 + $0x70] sm:$0xff]  ;;  %s4782_s26 = scalar_lea.hbm %s7653_s5, %s5365_s28  ;;  %s4783_s7 = sshll.u32 %s7413_s27, 4  ;;  %s4784_s7 = int_to_ptr.vmem [resolvable:$true] %s4783_s7 }
  0x37   : > { %314 = vst.msk [vmem:[#allocation2 + $0x10] sm:$0xff] %vm311_vm0, %v5615_v0  ;;  %v5980_v15 = vld [vmem:[%s5750_s16 + $0x78] sm:$0xff]  ;;  %v5985_v16 = vld [vmem:[%s5750_s16] sm:$0xff]  ;;  %v5990_v17 = vld [vmem:[%s5750_s16 + $0x8] sm:$0xff]  ;;  %s4785_s13 = sshll.u32 %s4782_s26, 4  ;;  %s4771_s22 = scalar_lea.sflag [#allocation6], %s5744_s8  ;;  %s4786_s13 = int_to_ptr.hbm [resolvable:$true] %s4785_s13 }
  0x38   : > { %315 = vst.msk [vmem:[#allocation2 + $0x18] sm:$0xff] %vm311_vm0, %v5615_v0  ;;  %v5995_v18 = vld [vmem:[%s5750_s16 + $0x80] sm:$0xff]  ;;  %v6000_v19 = vld [vmem:[%s5750_s16 + $0x88] sm:$0xff]  ;;  %v6005_v20 = vld [vmem:[%s5750_s16 + $0x10] sm:$0xff]  ;;  %s5551_s15 = sshra.s32 %s4786_s13, 4  ;;  %s5557_s9 = scalar_lea.hbm %s7653_s5, 512  ;;  %s5552_s15 = int_to_ptr.hbm [resolvable:$true] %s5551_s15 }
  0x39   : > { %316 = vst.msk [vmem:[#allocation2 + $0x20] sm:$0xff] %vm311_vm0, %v5615_v0  ;;  %571 = vmatpush.bf16.msra.mxu0 %v5331_v3  ;;  %5367 = vmatpush.bf16.msra.mxu2 %v5331_v3  ;;  %v6010_v21 = vld [vmem:[%s5750_s16 + $0x18] sm:$0xff]  ;;  %v6015_v22 = vld [vmem:[%s5750_s16 + $0x90] sm:$0xff]  ;;  %v6041_v36 = vld [vmem:[%s5750_s16 + $0x20] sm:$0xff]  ;;  %p5558_p11 = scmp.lt.s32.totalorder %s5552_s15, %s7653_s5 }
  0x3a   : > { %317 = vst.msk [vmem:[#allocation2 + $0x28] sm:$0xff] %vm311_vm0, %v5615_v0  ;;  %5369 = vmatpush.bf16.msra.mxu3 %v5329_v5  ;;  %720 = vmatpush.bf16.msra.mxu1 %v5329_v5  ;;  %v6020_v23 = vld [vmem:[%s5750_s16 + $0x98] sm:$0xff]  ;;  %v6044_v37 = vld [vmem:[%s5750_s16 + $0x28] sm:$0xff]  ;;  %v6055_v38 = vld [vmem:[%s5750_s16 + $0xa0] sm:$0xff] }
  0x3b   : > { %318 = vst.msk [vmem:[#allocation2 + $0x30] sm:$0xff] %vm311_vm0, %v5615_v0  ;;  %v6058_v39 = vld [vmem:[%s5750_s16 + $0xa8] sm:$0xff]  ;;  %v6077_v52 = vld [vmem:[%s5750_s16 + $0x30] sm:$0xff]  ;;  %v6080_v53 = vld [vmem:[%s5750_s16 + $0x38] sm:$0xff] }
  0x3c   : > { %319 = vst.msk [vmem:[#allocation2 + $0x38] sm:$0xff] %vm311_vm0, %v5615_v0  ;;  %v399_v8 = vld [vmem:[#allocation2] sm:$0xff]  ;;  %v6091_v54 = vld [vmem:[%s5750_s16 + $0xb0] sm:$0xff]  ;;  %v6094_v55 = vld [vmem:[%s5750_s16 + $0xb8] sm:$0xff] }
  0x3d   : > { %v451_v4 = vld [vmem:[#allocation2 + $0x1] sm:$0xff]  ;;  %320 = vst.msk [vmem:[#allocation2 + $0x40] sm:$0xff] %vm311_vm0, %v5615_v0  ;;  %921 = vmatpush.bf16.msrb.mxu2 %v5334_v10  ;;  %1389 = vmatpush.bf16.msrb.mxu0 %v5338_v13  ;;  %v5335_v5 = vld [vmem:[#allocation7 + $0x30] sm:$0xff] }
  0x3e   : > { %v452_v6 = vld [vmem:[#allocation2 + $0x9] sm:$0xff]  ;;  %321 = vst.msk [vmem:[#allocation2 + $0x48] sm:$0xff] %vm311_vm0, %v5615_v0  ;;  %1155 = vmatpush.bf16.msrb.mxu3 %v5336_v12 }
  0x3f   : > { %322 = vst.msk [vmem:[#allocation2 + $0x50] sm:$0xff] %vm311_vm0, %v5615_v0  ;;  %v483_v7 = vpack.c.bf16 %v452_v6, %v451_v4  ;;  %v400_v9 = vld [vmem:[#allocation2 + $0x8] sm:$0xff]  ;;  %v5333_v4 = vld [vmem:[#allocation7 + $0x20] sm:$0xff] }
  0x40   : > { %323 = vst.msk [vmem:[#allocation2 + $0x58] sm:$0xff] %vm311_vm0, %v5615_v0  ;;  %v431_v11 = vpack.c.bf16 %v400_v9, %v399_v8  ;;  %v5337_v6 = vld [vmem:[#allocation7 + $0x40] sm:$0xff]  ;;  %v6116_v8 = vld [vmem:[%s5750_s16 + $0x48] sm:$0xff] }
  0x41   : > { %324 = vst.msk [vmem:[#allocation2 + $0x60] sm:$0xff] %vm311_vm0, %v5615_v0  ;;  %4899 = vmatmul.msk.bf16.vlgmr.msra.gmra.mxu0 %vm311_vm0, %v483_v7  ;;  %v6113_v7 = vld [vmem:[%s5750_s16 + $0x40] sm:$0xff]  ;;  %v6128_v10 = vld [vmem:[%s5750_s16 + $0xc8] sm:$0xff]  ;;  %922 = vmatpush.bf16.msrb.mxu2 %v5333_v4 }
  0x42   : > { %325 = vst.msk [vmem:[#allocation2 + $0x68] sm:$0xff] %vm311_vm0, %v5615_v0  ;;  %4923 = vmatmul.msk.bf16.vlgmr.msra.gmra.mxu1 %vm311_vm0, %v431_v11  ;;  %v6125_v9 = vld [vmem:[%s5750_s16 + $0xc0] sm:$0xff]  ;;  %1156 = vmatpush.bf16.msrb.mxu3 %v5335_v5 }
  0x43   : > { %326 = vst.msk [vmem:[#allocation2 + $0x70] sm:$0xff] %vm311_vm0, %v5615_v0  ;;  %1390 = vmatpush.bf16.msrb.mxu0 %v5337_v6  ;;  %v6185_v5 = vld [vmem:[%s5750_s16 + $0x60] sm:$0xff]  ;;  %v6188_v6 = vld [vmem:[%s5750_s16 + $0x68] sm:$0xff] }
  0x44   : > { %327 = vst.msk [vmem:[#allocation2 + $0x78] sm:$0xff] %vm311_vm0, %v5615_v0 }
  0x45   : > { %328 = vst.msk [vmem:[#allocation2 + $0x80] sm:$0xff] %vm311_vm0, %v5615_v0 }
  0x46   : > { %329 = vst.msk [vmem:[#allocation2 + $0x88] sm:$0xff] %vm311_vm0, %v5615_v0 }
  0x47   : > { %330 = vst.msk [vmem:[#allocation2 + $0x90] sm:$0xff] %vm311_vm0, %v5615_v0 }
  0x48   : > { %331 = vst.msk [vmem:[#allocation2 + $0x98] sm:$0xff] %vm311_vm0, %v5615_v0 }
  0x49   : > { %332 = vst.msk [vmem:[#allocation2 + $0xa0] sm:$0xff] %vm311_vm0, %v5615_v0 }
  0x4a   : > { %333 = vst.msk [vmem:[#allocation2 + $0xa8] sm:$0xff] %vm311_vm0, %v5615_v0 }
  0x4b   : > { %334 = vst.msk [vmem:[#allocation2 + $0xb0] sm:$0xff] %vm311_vm0, %v5615_v0 }
  0x4c   : > { %335 = vst.msk [vmem:[#allocation2 + $0xb8] sm:$0xff] %vm311_vm0, %v5615_v0 }
  0x4d   : > { %336 = vst.msk [vmem:[#allocation2 + $0xc0] sm:$0xff] %vm311_vm0, %v5615_v0 }
  0x4e   : > { %337 = vst.msk [vmem:[#allocation2 + $0xc8] sm:$0xff] %vm311_vm0, %v5615_v0 }
  0x4f   : > { %338 = vst.msk [vmem:[#allocation2 + $0xd0] sm:$0xff] %vm311_vm0, %v5615_v0 }
  0x50   : > { %339 = vst.msk [vmem:[#allocation2 + $0xd8] sm:$0xff] %vm311_vm0, %v5615_v0 }
  0x51   : > { %340 = vst.msk [vmem:[#allocation2 + $0xe0] sm:$0xff] %vm311_vm0, %v5615_v0 }
  0x52   : > { %341 = vst.msk [vmem:[#allocation2 + $0xe8] sm:$0xff] %vm311_vm0, %v5615_v0 }
  0x53   : > { %342 = vst.msk [vmem:[#allocation2 + $0xf0] sm:$0xff] %vm311_vm0, %v5615_v0 }
  0x54   : > { %343 = vst.msk [vmem:[#allocation2 + $0xf8] sm:$0xff] %vm311_vm0, %v5615_v0 }
  0x55   : > { %344 = vst.msk [vmem:[#allocation2 + $0x100] sm:$0xff] %vm311_vm0, %v5615_v0 }
  0x56   : > { %345 = vst.msk [vmem:[#allocation2 + $0x108] sm:$0xff] %vm311_vm0, %v5615_v0 }
  0x57   : > { %346 = vst.msk [vmem:[#allocation2 + $0x110] sm:$0xff] %vm311_vm0, %v5615_v0 }
  0x58   : > { %347 = vst.msk [vmem:[#allocation2 + $0x118] sm:$0xff] %vm311_vm0, %v5615_v0 }
  0x59   : > { %348 = vst.msk [vmem:[#allocation2 + $0x120] sm:$0xff] %vm311_vm0, %v5615_v0 }
  0x5a   : > { %349 = vst.msk [vmem:[#allocation2 + $0x128] sm:$0xff] %vm311_vm0, %v5615_v0 }
  0x5b   : > { %350 = vst.msk [vmem:[#allocation2 + $0x130] sm:$0xff] %vm311_vm0, %v5615_v0 }
  0x5c   : > { %351 = vst.msk [vmem:[#allocation2 + $0x138] sm:$0xff] %vm311_vm0, %v5615_v0 }
  0x5d   : > { %352 = vst.msk [vmem:[#allocation2 + $0x140] sm:$0xff] %vm311_vm0, %v5615_v0 }
  0x5e   : > { %353 = vst.msk [vmem:[#allocation2 + $0x148] sm:$0xff] %vm311_vm0, %v5615_v0 }
  0x5f   : > { %354 = vst.msk [vmem:[#allocation2 + $0x150] sm:$0xff] %vm311_vm0, %v5615_v0 }
  0x60   : > { %355 = vst.msk [vmem:[#allocation2 + $0x158] sm:$0xff] %vm311_vm0, %v5615_v0 }
  0x61   : > { %356 = vst.msk [vmem:[#allocation2 + $0x160] sm:$0xff] %vm311_vm0, %v5615_v0 }
  0x62   : > { %357 = vst.msk [vmem:[#allocation2 + $0x168] sm:$0xff] %vm311_vm0, %v5615_v0 }
  0x63   : > { %358 = vst.msk [vmem:[#allocation2 + $0x170] sm:$0xff] %vm311_vm0, %v5615_v0 }
  0x64   : > { %359 = vst.msk [vmem:[#allocation2 + $0x178] sm:$0xff] %vm311_vm0, %v5615_v0 }
  0x65   : > { %360 = vst.msk [vmem:[#allocation2 + $0x180] sm:$0xff] %vm311_vm0, %v5615_v0 }
  0x66   : > { %361 = vst.msk [vmem:[#allocation2 + $0x188] sm:$0xff] %vm311_vm0, %v5615_v0 }
  0x67   : > { %362 = vst.msk [vmem:[#allocation2 + $0x190] sm:$0xff] %vm311_vm0, %v5615_v0 }
  0x68   : > { %363 = vst.msk [vmem:[#allocation2 + $0x198] sm:$0xff] %vm311_vm0, %v5615_v0 }
  0x69   : > { %364 = vst.msk [vmem:[#allocation2 + $0x1a0] sm:$0xff] %vm311_vm0, %v5615_v0 }
  0x6a   : > { %365 = vst.msk [vmem:[#allocation2 + $0x1a8] sm:$0xff] %vm311_vm0, %v5615_v0 }
  0x6b   : > { %2509 = vst.msk [vmem:[#allocation3] sm:$0xff] %vm311_vm0, %v5615_v0 }
  0x6c   : > { %2510 = vst.msk [vmem:[#allocation3 + $0x8] sm:$0xff] %vm311_vm0, %v5615_v0 }
  0x6d   : > { %2511 = vst.msk [vmem:[#allocation3 + $0x10] sm:$0xff] %vm311_vm0, %v5615_v0 }
  0x6e   : > { %2512 = vst.msk [vmem:[#allocation3 + $0x18] sm:$0xff] %vm311_vm0, %v5615_v0 }
  0x6f   : > { %2513 = vst.msk [vmem:[#allocation3 + $0x20] sm:$0xff] %vm311_vm0, %v5615_v0 }
  0x70   : > { %2514 = vst.msk [vmem:[#allocation3 + $0x28] sm:$0xff] %vm311_vm0, %v5615_v0 }
  0x71   : > { %2515 = vst.msk [vmem:[#allocation3 + $0x30] sm:$0xff] %vm311_vm0, %v5615_v0 }
  0x72   : > { %2516 = vst.msk [vmem:[#allocation3 + $0x38] sm:$0xff] %vm311_vm0, %v5615_v0 }
  0x73   : > { %2517 = vst.msk [vmem:[#allocation3 + $0x40] sm:$0xff] %vm311_vm0, %v5615_v0 }
  0x74   : > { %2518 = vst.msk [vmem:[#allocation3 + $0x48] sm:$0xff] %vm311_vm0, %v5615_v0 }
  0x75   : > { %2519 = vst.msk [vmem:[#allocation3 + $0x50] sm:$0xff] %vm311_vm0, %v5615_v0 }
  0x76   : > { %2520 = vst.msk [vmem:[#allocation3 + $0x58] sm:$0xff] %vm311_vm0, %v5615_v0 }
  0x77   : > { %2521 = vst.msk [vmem:[#allocation3 + $0x60] sm:$0xff] %vm311_vm0, %v5615_v0 }
  0x78   : > { %2522 = vst.msk [vmem:[#allocation3 + $0x68] sm:$0xff] %vm311_vm0, %v5615_v0 }
  0x79   : > { %2523 = vst.msk [vmem:[#allocation3 + $0x70] sm:$0xff] %vm311_vm0, %v5615_v0 }
  0x7a   : > { %2524 = vst.msk [vmem:[#allocation3 + $0x78] sm:$0xff] %vm311_vm0, %v5615_v0 }
  0x7b   : > { %2525 = vst.msk [vmem:[#allocation3 + $0x80] sm:$0xff] %vm311_vm0, %v5615_v0 }
  0x7c   : > { %2526 = vst.msk [vmem:[#allocation3 + $0x88] sm:$0xff] %vm311_vm0, %v5615_v0 }
  0x7d   : > { %2527 = vst.msk [vmem:[#allocation3 + $0x90] sm:$0xff] %vm311_vm0, %v5615_v0 }
  0x7e   : > { %2528 = vst.msk [vmem:[#allocation3 + $0x98] sm:$0xff] %vm311_vm0, %v5615_v0 }
  0x7f   : > { %2529 = vst.msk [vmem:[#allocation3 + $0xa0] sm:$0xff] %vm311_vm0, %v5615_v0 }
  0x80   : > { %2530 = vst.msk [vmem:[#allocation3 + $0xa8] sm:$0xff] %vm311_vm0, %v5615_v0 }
  0x81   : > { %2531 = vst.msk [vmem:[#allocation3 + $0xb0] sm:$0xff] %vm311_vm0, %v5615_v0 }
  0x82   : > { %2532 = vst.msk [vmem:[#allocation3 + $0xb8] sm:$0xff] %vm311_vm0, %v5615_v0 }
  0x83   : > { %2533 = vst.msk [vmem:[#allocation3 + $0xc0] sm:$0xff] %vm311_vm0, %v5615_v0 }
  0x84   : > { %2534 = vst.msk [vmem:[#allocation3 + $0xc8] sm:$0xff] %vm311_vm0, %v5615_v0 }
  0x85   : > { %2535 = vst.msk [vmem:[#allocation3 + $0xd0] sm:$0xff] %vm311_vm0, %v5615_v0 }
  0x86   : > { %2536 = vst.msk [vmem:[#allocation3 + $0xd8] sm:$0xff] %vm311_vm0, %v5615_v0 }
  0x87   : > { %2537 = vst.msk [vmem:[#allocation3 + $0xe0] sm:$0xff] %vm311_vm0, %v5615_v0 }
  0x88   : > { %2538 = vst.msk [vmem:[#allocation3 + $0xe8] sm:$0xff] %vm311_vm0, %v5615_v0 }
  0x89   : > { %2539 = vst.msk [vmem:[#allocation3 + $0xf0] sm:$0xff] %vm311_vm0, %v5615_v0 }
  0x8a   : > { %2540 = vst.msk [vmem:[#allocation3 + $0xf8] sm:$0xff] %vm311_vm0, %v5615_v0 }
  0x8b   : > { %2541 = vst.msk [vmem:[#allocation3 + $0x100] sm:$0xff] %vm311_vm0, %v5615_v0 }
  0x8c   : > { %2542 = vst.msk [vmem:[#allocation3 + $0x108] sm:$0xff] %vm311_vm0, %v5615_v0 }
  0x8d   : > { %2543 = vst.msk [vmem:[#allocation3 + $0x110] sm:$0xff] %vm311_vm0, %v5615_v0 }
  0x8e   : > { %2544 = vst.msk [vmem:[#allocation3 + $0x118] sm:$0xff] %vm311_vm0, %v5615_v0 }
  0x8f   : > { %2545 = vst.msk [vmem:[#allocation3 + $0x120] sm:$0xff] %vm311_vm0, %v5615_v0 }
  0x90   : > { %2546 = vst.msk [vmem:[#allocation3 + $0x128] sm:$0xff] %vm311_vm0, %v5615_v0 }
  0x91   : > { %2547 = vst.msk [vmem:[#allocation3 + $0x130] sm:$0xff] %vm311_vm0, %v5615_v0 }
  0x92   : > { %2548 = vst.msk [vmem:[#allocation3 + $0x138] sm:$0xff] %vm311_vm0, %v5615_v0 }
  0x93   : > { %2549 = vst.msk [vmem:[#allocation3 + $0x140] sm:$0xff] %vm311_vm0, %v5615_v0 }
  0x94   : > { %2550 = vst.msk [vmem:[#allocation3 + $0x148] sm:$0xff] %vm311_vm0, %v5615_v0 }
  0x95   : > { %2551 = vst.msk [vmem:[#allocation3 + $0x150] sm:$0xff] %vm311_vm0, %v5615_v0 }
  0x96   : > { %2552 = vst.msk [vmem:[#allocation3 + $0x158] sm:$0xff] %vm311_vm0, %v5615_v0 }
  0x97   : > { %2553 = vst.msk [vmem:[#allocation3 + $0x160] sm:$0xff] %vm311_vm0, %v5615_v0 }
  0x98   : > { %2554 = vst.msk [vmem:[#allocation3 + $0x168] sm:$0xff] %vm311_vm0, %v5615_v0 }
  0x99   : > { %2555 = vst.msk [vmem:[#allocation3 + $0x170] sm:$0xff] %vm311_vm0, %v5615_v0 }
  0x9a   : > { %2556 = vst.msk [vmem:[#allocation3 + $0x178] sm:$0xff] %vm311_vm0, %v5615_v0 }
  0x9b   : > { %2557 = vst.msk [vmem:[#allocation3 + $0x180] sm:$0xff] %vm311_vm0, %v5615_v0 }
  0x9c   : > { %2558 = vst.msk [vmem:[#allocation3 + $0x188] sm:$0xff] %vm311_vm0, %v5615_v0 }
  0x9d   : > { %2559 = vst.msk [vmem:[#allocation3 + $0x190] sm:$0xff] %vm311_vm0, %v5615_v0 }
  0x9e   : > { %2560 = vst.msk [vmem:[#allocation3 + $0x198] sm:$0xff] %vm311_vm0, %v5615_v0 }
  0x9f   : > { %7717 = vst [vmem:[#allocation14_spill] sm:$0xff] %v5975_v14 }
  0xa0   : > { %2561 = vst.msk [vmem:[#allocation3 + $0x1a0] sm:$0xff] %vm311_vm0, %v5615_v0 }
  0xa1   : > { %7718 = vst [vmem:[#allocation15_spill] sm:$0xff] %v5980_v15 }
  0xa2   : > { %2562 = vst.msk [vmem:[#allocation3 + $0x1a8] sm:$0xff] %vm311_vm0, %v5615_v0 }
  0xa3   : > { %7719 = vst [vmem:[#allocation16_spill] sm:$0xff] %v5985_v16 }
  0xa4   : > { %381 = vst.msk [vmem:[#allocation2 + $0xc1] sm:$0xff] %vm311_vm0, %v5975_v14 }
  0xa5   : > { %7720 = vst [vmem:[#allocation17_spill] sm:$0xff] %v5990_v17 }
  0xa6   : > { %382 = vst.msk [vmem:[#allocation2 + $0xc9] sm:$0xff] %vm311_vm0, %v5980_v15 }
  0xa7   : > { %7721 = vst [vmem:[#allocation18_spill] sm:$0xff] %v5995_v18 }
  0xa8   : > { %367 = vst.msk [vmem:[#allocation2 + $0x19] sm:$0xff] %vm311_vm0, %v5985_v16 }
  0xa9   : > { %7722 = vst [vmem:[#allocation19_spill] sm:$0xff] %v6000_v19 }
  0xaa   : > { %368 = vst.msk [vmem:[#allocation2 + $0x21] sm:$0xff] %vm311_vm0, %v5990_v17 }
  0xab   : > { %7723 = vst [vmem:[#allocation20_spill] sm:$0xff] %v6005_v20  ;;  %v467_v24 = vld [vmem:[#allocation2 + $0xc1] sm:$0xff] }
  0xac   : > { %383 = vst.msk [vmem:[#allocation2 + $0xd9] sm:$0xff] %vm311_vm0, %v5995_v18  ;;  %v415_v25 = vld [vmem:[#allocation2 + $0xc0] sm:$0xff] }
  0xad   : > { %7724 = vst [vmem:[#allocation21_spill] sm:$0xff] %v6010_v21  ;;  %v468_v26 = vld [vmem:[#allocation2 + $0xc9] sm:$0xff] }
  0xae   : > { %384 = vst.msk [vmem:[#allocation2 + $0xe1] sm:$0xff] %vm311_vm0, %v6000_v19  ;;  %v416_v27 = vld [vmem:[#allocation2 + $0xc8] sm:$0xff]  ;;  %v6026_v28 = vpack.c.bf16 %v468_v26, %v467_v24 }
  0xaf   : > { %7725 = vst [vmem:[#allocation22_spill] sm:$0xff] %v6015_v22  ;;  %v6028_v29 = vpack.c.bf16 %v416_v27, %v415_v25  ;;  %v453_v30 = vld [vmem:[#allocation2 + $0x19] sm:$0xff] }
  0xb0   : > { %369 = vst.msk [vmem:[#allocation2 + $0x31] sm:$0xff] %vm311_vm0, %v6005_v20  ;;  %v401_v31 = vld [vmem:[#allocation2 + $0x18] sm:$0xff]  ;;  %4907 = vmatmul.msk.bf16.vlgmr.msra.gmra.mxu2 %vm311_vm0, %v6026_v28 }
  0xb1   : > { %7726 = vst [vmem:[#allocation23_spill] sm:$0xff] %v6020_v23  ;;  %v454_v32 = vld [vmem:[#allocation2 + $0x21] sm:$0xff]  ;;  %4931 = vmatmul.msk.bf16.vlgmr.msra.gmra.mxu3 %vm311_vm0, %v6028_v29 }
  0xb2   : > { %370 = vst.msk [vmem:[#allocation2 + $0x39] sm:$0xff] %vm311_vm0, %v6010_v21  ;;  %v402_v33 = vld [vmem:[#allocation2 + $0x20] sm:$0xff]  ;;  %v6036_v34 = vpack.c.bf16 %v454_v32, %v453_v30 }
  0xb3   : > { %385 = vst.msk [vmem:[#allocation2 + $0xf1] sm:$0xff] %vm311_vm0, %v6015_v22  ;;  %v6038_v35 = vpack.c.bf16 %v402_v33, %v401_v31  ;;  %v469_v40 = vld [vmem:[#allocation2 + $0xd9] sm:$0xff] }
  0xb4   : > { %386 = vst.msk [vmem:[#allocation2 + $0xf9] sm:$0xff] %vm311_vm0, %v6020_v23  ;;  %4900 = vmatmul.msk.bf16.gmra.mxu0 %vm311_vm0, %v6036_v34  ;;  %v417_v42 = vld [vmem:[#allocation2 + $0xd8] sm:$0xff] }
  0xb5   : > { %7727 = vst [vmem:[#allocation24_spill] sm:$0xff] %v6041_v36  ;;  %4924 = vmatmul.msk.bf16.gmra.mxu1 %vm311_vm0, %v6038_v35  ;;  %v470_v41 = vld [vmem:[#allocation2 + $0xe1] sm:$0xff] }
  0xb6   : > { %7728 = vst [vmem:[#allocation25_spill] sm:$0xff] %v6044_v37  ;;  %v418_v43 = vld [vmem:[#allocation2 + $0xe0] sm:$0xff]  ;;  %v6064_v48 = vpack.c.bf16 %v470_v41, %v469_v40  ;;  %v6149_v41 = vld [vmem:[%s5750_s16 + $0x50] sm:$0xff] }
  0xb7   : > { %371 = vst.msk [vmem:[#allocation2 + $0x49] sm:$0xff] %vm311_vm0, %v6041_v36  ;;  %v455_v44 = vld [vmem:[#allocation2 + $0x31] sm:$0xff]  ;;  %v6066_v49 = vpack.c.bf16 %v418_v43, %v417_v42  ;;  %v1518_v36 = vld [vmem:[#allocation2 + $0xc2] sm:$0xff]  ;;  %v1520_v17 = vld [vmem:[#allocation2 + $0xda] sm:$0xff] }
  0xb8   : > { %372 = vst.msk [vmem:[#allocation2 + $0x51] sm:$0xff] %vm311_vm0, %v6044_v37  ;;  %v403_v46 = vld [vmem:[#allocation2 + $0x30] sm:$0xff]  ;;  %v6152_v42 = vld [vmem:[%s5750_s16 + $0x58] sm:$0xff]  ;;  %v1521_v16 = vld [vmem:[#allocation2 + $0xe2] sm:$0xff] }
  0xb9   : > { %7729 = vst [vmem:[#allocation26_spill] sm:$0xff] %v6055_v38  ;;  %v456_v45 = vld [vmem:[#allocation2 + $0x39] sm:$0xff]  ;;  %v6163_v43 = vld [vmem:[%s5750_s16 + $0xd0] sm:$0xff] }
  0xba   : > { %7730 = vst [vmem:[#allocation27_spill] sm:$0xff] %v6058_v39  ;;  %v404_v47 = vld [vmem:[#allocation2 + $0x38] sm:$0xff]  ;;  %v6068_v50 = vpack.c.bf16 %v456_v45, %v455_v44  ;;  %v419_v58 = vld [vmem:[#allocation2 + $0xf0] sm:$0xff] }
  0xbb   : > { %387 = vst.msk [vmem:[#allocation2 + $0x109] sm:$0xff] %vm311_vm0, %v6055_v38  ;;  %v6070_v51 = vpack.c.bf16 %v404_v47, %v403_v46  ;;  %v471_v56 = vld [vmem:[#allocation2 + $0xf1] sm:$0xff]  ;;  %v472_v57 = vld [vmem:[#allocation2 + $0xf9] sm:$0xff] }
  0xbc   : > { %388 = vst.msk [vmem:[#allocation2 + $0x111] sm:$0xff] %vm311_vm0, %v6058_v39  ;;  %v420_v59 = vld [vmem:[#allocation2 + $0xf8] sm:$0xff]  ;;  %v6100_v0 = vpack.c.bf16 %v472_v57, %v471_v56 }
  0xbd   : > { %7731 = vst [vmem:[#allocation28_spill] sm:$0xff] %v6077_v52  ;;  %v6102_v1 = vpack.c.bf16 %v420_v59, %v419_v58  ;;  %v6166_v44 = vld [vmem:[%s5750_s16 + $0xd8] sm:$0xff] }
  0xbe   : > { %7732 = vst [vmem:[#allocation29_spill] sm:$0xff] %v6080_v53  ;;  %v457_v60 = vld [vmem:[#allocation2 + $0x49] sm:$0xff] }
  0xbf   : > { %373 = vst.msk [vmem:[#allocation2 + $0x61] sm:$0xff] %vm311_vm0, %v6077_v52  ;;  %v458_v61 = vld [vmem:[#allocation2 + $0x51] sm:$0xff]  ;;  %v405_v62 = vld [vmem:[#allocation2 + $0x48] sm:$0xff] }
  0xc0   : > { %4908 = vmatmul.msk.bf16.gmra.mxu2 %vm311_vm0, %v6064_v48  ;;  %374 = vst.msk [vmem:[#allocation2 + $0x69] sm:$0xff] %vm311_vm0, %v6080_v53  ;;  %v406_v63 = vld [vmem:[#allocation2 + $0x50] sm:$0xff]  ;;  %v6104_v2 = vpack.c.bf16 %v458_v61, %v457_v60 }
  0xc1   : > { %4932 = vmatmul.msk.bf16.gmra.mxu3 %vm311_vm0, %v6066_v49  ;;  %7733 = vst [vmem:[#allocation30_spill] sm:$0xff] %v6091_v54  ;;  %v6106_v3 = vpack.c.bf16 %v406_v63, %v405_v62  ;;  %v1508_v22 = vld [vmem:[#allocation2 + $0x4a] sm:$0xff] }
  0xc2   : > { %7734 = vst [vmem:[#allocation31_spill] sm:$0xff] %v6094_v55  ;;  %v473_v11 = vld [vmem:[#allocation2 + $0x109] sm:$0xff] }
  0xc3   : > { %389 = vst.msk [vmem:[#allocation2 + $0x121] sm:$0xff] %vm311_vm0, %v6091_v54  ;;  %v474_v12 = vld [vmem:[#allocation2 + $0x111] sm:$0xff]  ;;  %v421_v13 = vld [vmem:[#allocation2 + $0x108] sm:$0xff] }
  0xc4   : > { %4901 = vmatmul.msk.bf16.gmra.mxu0 %vm311_vm0, %v6068_v50  ;;  %390 = vst.msk [vmem:[#allocation2 + $0x129] sm:$0xff] %vm311_vm0, %v6094_v55  ;;  %v422_v24 = vld [vmem:[#allocation2 + $0x110] sm:$0xff]  ;;  %v6136_v31 = vpack.c.bf16 %v474_v12, %v473_v11  ;;  %v6199_v11 = vld [vmem:[%s5750_s16 + $0xe0] sm:$0xff]  ;;  %v6202_v12 = vld [vmem:[%s5750_s16 + $0xe8] sm:$0xff] }
  0xc5   : > { %4925 = vmatmul.msk.bf16.gmra.mxu1 %vm311_vm0, %v6070_v51  ;;  %7735 = vst [vmem:[#allocation32_spill] sm:$0xff] %v6113_v7  ;;  %v6138_v32 = vpack.c.bf16 %v422_v24, %v421_v13  ;;  %v5344_v55 = vld [vmem:[#allocation7 + $0x78] sm:$0xff] }
  0xc6   : > { %7736 = vst [vmem:[#allocation33_spill] sm:$0xff] %v6116_v8  ;;  %v459_v25 = vld [vmem:[#allocation2 + $0x61] sm:$0xff]  ;;  %2092 = vmatpush.bf16.msra.mxu3 %v5344_v55 }
  0xc7   : > { %375 = vst.msk [vmem:[#allocation2 + $0x79] sm:$0xff] %vm311_vm0, %v6113_v7  ;;  %v460_v26 = vld [vmem:[#allocation2 + $0x69] sm:$0xff]  ;;  %v407_v27 = vld [vmem:[#allocation2 + $0x60] sm:$0xff] }
  0xc8   : > { %7737 = vst [vmem:[#allocation34_spill] sm:$0xff] %v6125_v9  ;;  %v408_v30 = vld [vmem:[#allocation2 + $0x68] sm:$0xff]  ;;  %v6140_v33 = vpack.c.bf16 %v460_v26, %v459_v25 }
  0xc9   : > { %7738 = vst [vmem:[#allocation35_spill] sm:$0xff] %v6128_v10  ;;  %v6142_v40 = vpack.c.bf16 %v408_v30, %v407_v27  ;;  %v1510_v18 = vld [vmem:[#allocation2 + $0x62] sm:$0xff] }
  0xca   : > { %376 = vst.msk [vmem:[#allocation2 + $0x81] sm:$0xff] %vm311_vm0, %v6116_v8  ;;  %v475_v45 = vld [vmem:[#allocation2 + $0x121] sm:$0xff] }
  0xcb   : > { %391 = vst.msk [vmem:[#allocation2 + $0x139] sm:$0xff] %vm311_vm0, %v6125_v9  ;;  %v476_v46 = vld [vmem:[#allocation2 + $0x129] sm:$0xff]  ;;  %v423_v47 = vld [vmem:[#allocation2 + $0x120] sm:$0xff] }
  0xcc   : > { %392 = vst.msk [vmem:[#allocation2 + $0x141] sm:$0xff] %vm311_vm0, %v6128_v10  ;;  %v424_v56 = vld [vmem:[#allocation2 + $0x128] sm:$0xff]  ;;  %v6172_v61 = vpack.c.bf16 %v476_v46, %v475_v45 }
  0xcd   : > { %7739 = vst [vmem:[#allocation36_spill] sm:$0xff] %v6149_v41  ;;  %v6174_v62 = vpack.c.bf16 %v424_v56, %v423_v47  ;;  %v5342_v9 = vld [vmem:[#allocation7 + $0x68] sm:$0xff] }
  0xce   : > { %7740 = vst [vmem:[#allocation37_spill] sm:$0xff] %v6152_v42  ;;  %v461_v57 = vld [vmem:[#allocation2 + $0x79] sm:$0xff]  ;;  %1858 = vmatpush.bf16.msra.mxu2 %v5342_v9 }
  0xcf   : > { %377 = vst.msk [vmem:[#allocation2 + $0x91] sm:$0xff] %vm311_vm0, %v6149_v41  ;;  %v409_v59 = vld [vmem:[#allocation2 + $0x78] sm:$0xff] }
  0xd0   : > { %4909 = vmatmul.msk.bf16.gmra.mxu2 %vm311_vm0, %v6100_v0  ;;  %378 = vst.msk [vmem:[#allocation2 + $0x99] sm:$0xff] %vm311_vm0, %v6152_v42 }
  0xd1   : > { %4933 = vmatmul.msk.bf16.gmra.mxu3 %vm311_vm0, %v6102_v1  ;;  %7741 = vst [vmem:[#allocation38_spill] sm:$0xff] %v6163_v43  ;;  %v462_v58 = vld [vmem:[#allocation2 + $0x81] sm:$0xff] }
  0xd2   : > { %7742 = vst [vmem:[#allocation39_spill] sm:$0xff] %v6166_v44  ;;  %v410_v60 = vld [vmem:[#allocation2 + $0x80] sm:$0xff]  ;;  %v6176_v63 = vpack.c.bf16 %v462_v58, %v461_v57  ;;  %v425_v25 = vld [vmem:[#allocation2 + $0x138] sm:$0xff] }
  0xd3   : > { %393 = vst.msk [vmem:[#allocation2 + $0x151] sm:$0xff] %vm311_vm0, %v6163_v43  ;;  %v6178_v4 = vpack.c.bf16 %v410_v60, %v409_v59  ;;  %v477_v13 = vld [vmem:[#allocation2 + $0x139] sm:$0xff]  ;;  %v478_v24 = vld [vmem:[#allocation2 + $0x141] sm:$0xff]  ;;  %v722_v43 = vpop.f32.mrf.mxu1 }
  0xd4   : > { %4902 = vmatmul.msk.bf16.gmra.mxu0 %vm311_vm0, %v6104_v2  ;;  %394 = vst.msk [vmem:[#allocation2 + $0x159] sm:$0xff] %vm311_vm0, %v6166_v44  ;;  %v426_v26 = vld [vmem:[#allocation2 + $0x140] sm:$0xff]  ;;  %v6208_v47 = vpack.c.bf16 %v478_v24, %v477_v13  ;;  %v573_v44 = vpop.f32.mrf.mxu0 }
  0xd5   : > { %4926 = vmatmul.msk.bf16.gmra.mxu1 %vm311_vm0, %v6106_v3  ;;  %7743 = vst [vmem:[#allocation40_spill] sm:$0xff] %v6185_v5  ;;  %v6210_v56 = vpack.c.bf16 %v426_v26, %v425_v25  ;;  %v6236_v10 = vadd.f32 %v722_v43, %v573_v44  ;;  %v1504_v44 = vld [vmem:[#allocation2 + $0x1a] sm:$0xff] }
  0xd6   : > { %7744 = vst [vmem:[#allocation41_spill] sm:$0xff] %v6188_v6  ;;  %v463_v27 = vld [vmem:[#allocation2 + $0x91] sm:$0xff] }
  0xd7   : > { %379 = vst.msk [vmem:[#allocation2 + $0xa9] sm:$0xff] %vm311_vm0, %v6185_v5  ;;  %v464_v30 = vld [vmem:[#allocation2 + $0x99] sm:$0xff]  ;;  %v411_v45 = vld [vmem:[#allocation2 + $0x90] sm:$0xff] }
  0xd8   : > { %380 = vst.msk [vmem:[#allocation2 + $0xb1] sm:$0xff] %vm311_vm0, %v6188_v6  ;;  %v412_v46 = vld [vmem:[#allocation2 + $0x98] sm:$0xff]  ;;  %v6212_v57 = vpack.c.bf16 %v464_v30, %v463_v27 }
  0xd9   : > { %7745 = vst [vmem:[#allocation42_spill] sm:$0xff] %v6199_v11  ;;  %v6214_v58 = vpack.c.bf16 %v412_v46, %v411_v45  ;;  %v1512_v6 = vld [vmem:[#allocation2 + $0x7a] sm:$0xff]  ;;  %v1514_v41 = vld [vmem:[#allocation2 + $0x92] sm:$0xff] }
  0xda   : > { %7746 = vst [vmem:[#allocation43_spill] sm:$0xff] %v6202_v12  ;;  %v479_v59 = vld [vmem:[#allocation2 + $0x151] sm:$0xff] }
  0xdb   : > { %395 = vst.msk [vmem:[#allocation2 + $0x169] sm:$0xff] %vm311_vm0, %v6199_v11  ;;  %v480_v60 = vld [vmem:[#allocation2 + $0x159] sm:$0xff]  ;;  %v427_v13 = vld [vmem:[#allocation2 + $0x150] sm:$0xff]  ;;  %v6255_v9 = vpop.f32.mrf.mxu1 }
  0xdc   : > { %396 = vst.msk [vmem:[#allocation2 + $0x171] sm:$0xff] %vm311_vm0, %v6202_v12  ;;  %v428_v24 = vld [vmem:[#allocation2 + $0x158] sm:$0xff]  ;;  %v6224_v45 = vpack.c.bf16 %v480_v60, %v479_v59  ;;  %v5346_v60 = vld [vmem:[#allocation7 + $0x88] sm:$0xff]  ;;  %v6253_v55 = vpop.f32.mrf.mxu0 }
  0xdd   : > { %v6226_v46 = vpack.c.bf16 %v428_v24, %v427_v13  ;;  %v5340_v59 = vld [vmem:[#allocation7 + $0x58] sm:$0xff]  ;;  %v5339_v13 = vld [vmem:[#allocation7 + $0x50] sm:$0xff]  ;;  %2326 = vmatpush.bf16.msra.mxu0 %v5346_v60 }
  0xde   : > { %v465_v25 = vld [vmem:[#allocation2 + $0xa9] sm:$0xff]  ;;  %1623 = vmatpush.bf16.msrb.mxu1 %v5340_v59 }
  0xdf   : > { %v466_v26 = vld [vmem:[#allocation2 + $0xb1] sm:$0xff]  ;;  %v413_v27 = vld [vmem:[#allocation2 + $0xa8] sm:$0xff] }
  0xe0   : > { %4910 = vmatmul.msk.bf16.gmra.mxu2 %vm311_vm0, %v6136_v31  ;;  %v414_v30 = vld [vmem:[#allocation2 + $0xb0] sm:$0xff]  ;;  %v6228_v12 = vpack.c.bf16 %v466_v26, %v465_v25  ;;  %v802_v59 = vld [vmem:[#allocation2 + $0x2] sm:$0xff] }
  0xe1   : > { %4934 = vmatmul.msk.bf16.gmra.mxu3 %vm311_vm0, %v6138_v32  ;;  %v6230_v11 = vpack.c.bf16 %v414_v30, %v413_v27  ;;  %v1505_v27 = vld [vmem:[#allocation2 + $0x22] sm:$0xff]  ;;  %v803_v60 = vld [vmem:[#allocation2 + $0xa] sm:$0xff] }
  0xe2   : > { %v481_v24 = vld [vmem:[#allocation2 + $0x169] sm:$0xff]  ;;  %1624 = vmatpush.bf16.msrb.mxu1 %v5339_v13  ;;  %v1536_v39 = vpack.c.bf16 %v1505_v27, %v1504_v44  ;;  %v1506_v13 = vld [vmem:[#allocation2 + $0x32] sm:$0xff] }
  0xe3   : > { %v482_v25 = vld [vmem:[#allocation2 + $0x171] sm:$0xff]  ;;  %v429_v26 = vld [vmem:[#allocation2 + $0x168] sm:$0xff] }
  0xe4   : > { %4903 = vmatmul.msk.bf16.gmra.mxu0 %vm311_vm0, %v6140_v33  ;;  %v430_v43 = vld [vmem:[#allocation2 + $0x170] sm:$0xff]  ;;  %v6242_v30 = vpack.c.bf16 %v482_v25, %v481_v24  ;;  %v1507_v24 = vld [vmem:[#allocation2 + $0x3a] sm:$0xff]  ;;  %v834_v25 = vpack.c.bf16 %v803_v60, %v802_v59 }
  0xe5   : > { %4927 = vmatmul.msk.bf16.gmra.mxu1 %vm311_vm0, %v6142_v40  ;;  %v6244_v54 = vpack.c.bf16 %v430_v43, %v429_v26  ;;  %v6257_v26 = vpack.c.bf16 %v1507_v24, %v1506_v13  ;;  %v1516_v53 = vld [vmem:[#allocation2 + $0xaa] sm:$0xff] }
  0xf0   : > { %4911 = vmatmul.msk.bf16.gmra.mxu2 %vm311_vm0, %v6172_v61 }
  0xf1   : > { %4935 = vmatmul.msk.bf16.gmra.mxu3 %vm311_vm0, %v6174_v62 }
  0xf4   : > { %4904 = vmatmul.msk.bf16.gmra.mxu0 %vm311_vm0, %v6176_v63 }
  0xf5   : > { %4928 = vmatmul.msk.bf16.gmra.mxu1 %vm311_vm0, %v6178_v4 }
 0x100   : > { %4912 = vmatmul.msk.bf16.gmra.mxu2 %vm311_vm0, %v6208_v47 }
 0x101   : > { %4936 = vmatmul.msk.bf16.gmra.mxu3 %vm311_vm0, %v6210_v56 }
 0x104   : > { %4905 = vmatmul.msk.bf16.gmra.mxu0 %vm311_vm0, %v6212_v57 }
 0x105   : > { %4929 = vmatmul.msk.bf16.gmra.mxu1 %vm311_vm0, %v6214_v58 }
 0x110   : > { %4913 = vmatmul.msk.bf16.gmra.mxu2 %vm311_vm0, %v6224_v45 }
 0x111   : > { %4937 = vmatmul.msk.bf16.gmra.mxu3 %vm311_vm0, %v6226_v46 }
 0x114   : > { %4906 = vmatmul.msk.bf16.gmra.mxu0 %vm311_vm0, %v6228_v12 }
 0x115   : > { %4930 = vmatmul.msk.bf16.gmra.mxu1 %vm311_vm0, %v6230_v11 }
 0x120   : > { %4914 = vmatmul.msk.bf16.gmra.mxu2 %vm311_vm0, %v6242_v30 }
 0x121   : > { %4938 = vmatmul.msk.bf16.gmra.mxu3 %vm311_vm0, %v6244_v54 }
 0x124   : > { %4995 = vmatmul.msk.bf16.vlgmr.msrb.gmra.mxu0 %vm311_vm0, %v6036_v34 }
 0x125   : > { %5019 = vmatmul.msk.bf16.vlgmr.msrb.gmra.mxu1 %vm311_vm0, %v1536_v39 }
 0x130   : > { %4947 = vmatmul.msk.bf16.vlgmr.msrb.gmra.mxu2 %vm311_vm0, %v834_v25 }
 0x131   : > { %v578_v43 = vpop.f32.mrf.mxu0  ;;  %4971 = vmatmul.msk.bf16.vlgmr.msrb.gmra.mxu3 %vm311_vm0, %v6038_v35  ;;  %v1509_v35 = vld [vmem:[#allocation2 + $0x52] sm:$0xff] }
 0x132   : > { %v727_v44 = vpop.f32.mrf.mxu1 }
 0x133   : > { %v6262_v34 = vadd.f32 %v727_v44, %v578_v43  ;;  %v613_v27 = vpop.f32.mrf.mxu2  ;;  %v6274_v44 = vpack.c.bf16 %v1509_v35, %v1508_v22 }
 0x134   : > { %4996 = vmatmul.msk.bf16.gmra.mxu0 %vm311_vm0, %v6068_v50  ;;  %v762_v38 = vpop.f32.mrf.mxu3 }
 0x135   : > { %5020 = vmatmul.msk.bf16.gmra.mxu1 %vm311_vm0, %v6257_v26  ;;  %v6268_v59 = vadd.f32 %v762_v38, %v613_v27 }
 0x139   : > { %v580_v60 = vpop.f32.mrf.mxu0 }
 0x13a   : > { %v729_v13 = vpop.f32.mrf.mxu1 }
 0x13b   : > { %v6270_v24 = vadd.f32 %v729_v13, %v580_v60  ;;  %v615_v25 = vpop.f32.mrf.mxu2 }
 0x13c   : > { %v764_v23 = vpop.f32.mrf.mxu3 }
 0x13d   : > { %v6272_v43 = vadd.f32 %v764_v23, %v615_v25 }
 0x140   : > { %4948 = vmatmul.msk.bf16.gmra.mxu2 %vm311_vm0, %v1536_v39 }
 0x141   : > { %v583_v50 = vpop.f32.mrf.mxu0  ;;  %4972 = vmatmul.msk.bf16.gmra.mxu3 %vm311_vm0, %v6070_v51  ;;  %v1511_v51 = vld [vmem:[#allocation2 + $0x6a] sm:$0xff] }
 0x142   : > { %v732_v19 = vpop.f32.mrf.mxu1 }
 0x143   : > { %v6279_v38 = vadd.f32 %v732_v19, %v583_v50  ;;  %v618_v27 = vpop.f32.mrf.mxu2  ;;  %v6291_v50 = vpack.c.bf16 %v1511_v51, %v1510_v18 }
 0x144   : > { %4997 = vmatmul.msk.bf16.gmra.mxu0 %vm311_vm0, %v6104_v2  ;;  %v767_v23 = vpop.f32.mrf.mxu3 }
 0x145   : > { %5021 = vmatmul.msk.bf16.gmra.mxu1 %vm311_vm0, %v6274_v44  ;;  %v6285_v60 = vadd.f32 %v767_v23, %v618_v27 }
 0x149   : > { %v585_v22 = vpop.f32.mrf.mxu0 }
 0x14a   : > { %v734_v13 = vpop.f32.mrf.mxu1 }
 0x14b   : > { %v6287_v25 = vadd.f32 %v734_v13, %v585_v22  ;;  %v620_v39 = vpop.f32.mrf.mxu2 }
 0x14c   : > { %v769_v35 = vpop.f32.mrf.mxu3 }
 0x14d   : > { %v6289_v19 = vadd.f32 %v769_v35, %v620_v39 }
 0x150   : > { %4949 = vmatmul.msk.bf16.gmra.mxu2 %vm311_vm0, %v6257_v26 }
 0x151   : > { %v588_v2 = vpop.f32.mrf.mxu0  ;;  %4973 = vmatmul.msk.bf16.gmra.mxu3 %vm311_vm0, %v6106_v3  ;;  %v1513_v3 = vld [vmem:[#allocation2 + $0x82] sm:$0xff] }
 0x152   : > { %v737_v15 = vpop.f32.mrf.mxu1 }
 0x153   : > { %v6297_v27 = vadd.f32 %v737_v15, %v588_v2  ;;  %v623_v23 = vpop.f32.mrf.mxu2  ;;  %v6309_v2 = vpack.c.bf16 %v1513_v3, %v1512_v6 }
 0x154   : > { %4998 = vmatmul.msk.bf16.gmra.mxu0 %vm311_vm0, %v6140_v33  ;;  %v772_v22 = vpop.f32.mrf.mxu3 }
 0x155   : > { %5022 = vmatmul.msk.bf16.gmra.mxu1 %vm311_vm0, %v6291_v50  ;;  %v6303_v18 = vadd.f32 %v772_v22, %v623_v23 }
 0x159   : > { %v590_v13 = vpop.f32.mrf.mxu0 }
 0x15a   : > { %v739_v39 = vpop.f32.mrf.mxu1 }
 0x15b   : > { %v6305_v35 = vadd.f32 %v739_v39, %v590_v13  ;;  %v625_v51 = vpop.f32.mrf.mxu2 }
 0x15c   : > { %v774_v14 = vpop.f32.mrf.mxu3 }
 0x15d   : > { %v6307_v15 = vadd.f32 %v774_v14, %v625_v51 }
 0x160   : > { %4950 = vmatmul.msk.bf16.gmra.mxu2 %vm311_vm0, %v6274_v44 }
 0x161   : > { %v593_v33 = vpop.f32.mrf.mxu0  ;;  %4974 = vmatmul.msk.bf16.gmra.mxu3 %vm311_vm0, %v6142_v40  ;;  %v1515_v40 = vld [vmem:[#allocation2 + $0x9a] sm:$0xff] }
 0x162   : > { %v742_v5 = vpop.f32.mrf.mxu1 }
 0x163   : > { %v6315_v23 = vadd.f32 %v742_v5, %v593_v33  ;;  %v628_v14 = vpop.f32.mrf.mxu2  ;;  %v6327_v33 = vpack.c.bf16 %v1515_v40, %v1514_v41 }
 0x164   : > { %4999 = vmatmul.msk.bf16.gmra.mxu0 %vm311_vm0, %v6176_v63  ;;  %v777_v22 = vpop.f32.mrf.mxu3 }
 0x165   : > { %5023 = vmatmul.msk.bf16.gmra.mxu1 %vm311_vm0, %v6309_v2  ;;  %v6321_v6 = vadd.f32 %v777_v22, %v628_v14  ;;  %7749 = vst [vmem:[#allocation46_spill] sm:$0xff] %v6327_v33 }
 0x167   : > { %7747 = vst [vmem:[#allocation44_spill] sm:$0xff] %v6321_v6 }
 0x169   : > { %v595_v13 = vpop.f32.mrf.mxu0 }
 0x16a   : > { %v744_v39 = vpop.f32.mrf.mxu1 }
 0x16b   : > { %v6323_v51 = vadd.f32 %v744_v39, %v595_v13  ;;  %v630_v3 = vpop.f32.mrf.mxu2 }
 0x16c   : > { %v779_v42 = vpop.f32.mrf.mxu3 }
 0x16d   : > { %v6325_v5 = vadd.f32 %v779_v42, %v630_v3 }
 0x16f   : > { %7748 = vst [vmem:[#allocation45_spill] sm:$0xff] %v6325_v5 }
 0x170   : > { %4951 = vmatmul.msk.bf16.gmra.mxu2 %vm311_vm0, %v6291_v50 }
 0x171   : > { %v598_v63 = vpop.f32.mrf.mxu0  ;;  %4975 = vmatmul.msk.bf16.gmra.mxu3 %vm311_vm0, %v6178_v4  ;;  %v1517_v4 = vld [vmem:[#allocation2 + $0xb2] sm:$0xff] }
 0x172   : > { %v747_v8 = vpop.f32.mrf.mxu1 }
 0x173   : > { %v6333_v14 = vadd.f32 %v747_v8, %v598_v63  ;;  %v633_v42 = vpop.f32.mrf.mxu2  ;;  %v6345_v63 = vpack.c.bf16 %v1517_v4, %v1516_v53 }
 0x174   : > { %5000 = vmatmul.msk.bf16.gmra.mxu0 %vm311_vm0, %v6212_v57  ;;  %v782_v22 = vpop.f32.mrf.mxu3 }
 0x175   : > { %5024 = vmatmul.msk.bf16.gmra.mxu1 %vm311_vm0, %v6327_v33  ;;  %v6339_v41 = vadd.f32 %v782_v22, %v633_v42  ;;  %7752 = vst [vmem:[#allocation49_spill] sm:$0xff] %v6345_v63 }
 0x177   : > { %7750 = vst [vmem:[#allocation47_spill] sm:$0xff] %v6339_v41 }
 0x179   : > { %v600_v13 = vpop.f32.mrf.mxu0 }
 0x17a   : > { %v749_v39 = vpop.f32.mrf.mxu1 }
 0x17b   : > { %v6341_v3 = vadd.f32 %v749_v39, %v600_v13  ;;  %v635_v40 = vpop.f32.mrf.mxu2 }
 0x17c   : > { %v784_v7 = vpop.f32.mrf.mxu3 }
 0x17d   : > { %v6343_v8 = vadd.f32 %v784_v7, %v635_v40 }
 0x17f   : > { %7751 = vst [vmem:[#allocation48_spill] sm:$0xff] %v6343_v8 }
 0x180   : > { %4952 = vmatmul.msk.bf16.gmra.mxu2 %vm311_vm0, %v6309_v2 }
 0x181   : > { %v603_v57 = vpop.f32.mrf.mxu0  ;;  %4976 = vmatmul.msk.bf16.gmra.mxu3 %vm311_vm0, %v6214_v58  ;;  %v1519_v58 = vld [vmem:[#allocation2 + $0xca] sm:$0xff] }
 0x182   : > { %v752_v52 = vpop.f32.mrf.mxu1 }
 0x183   : > { %v6351_v42 = vadd.f32 %v752_v52, %v603_v57  ;;  %v638_v7 = vpop.f32.mrf.mxu2  ;;  %v6363_v57 = vpack.c.bf16 %v1519_v58, %v1518_v36 }
 0x184   : > { %5001 = vmatmul.msk.bf16.gmra.mxu0 %vm311_vm0, %v6228_v12  ;;  %v787_v22 = vpop.f32.mrf.mxu3 }
 0x185   : > { %5025 = vmatmul.msk.bf16.gmra.mxu1 %vm311_vm0, %v6345_v63  ;;  %v6357_v53 = vadd.f32 %v787_v22, %v638_v7  ;;  %7755 = vst [vmem:[#allocation52_spill] sm:$0xff] %v6363_v57  ;;  %v5341_v22 = vld [vmem:[#allocation7 + $0x60] sm:$0xff] }
 0x186   : > { %1859 = vmatpush.bf16.msra.mxu2 %v5341_v22  ;;  %v5350_v22 = vld [vmem:[#allocation9 + $0x18] sm:$0xff] }
 0x187   : > { %7753 = vst [vmem:[#allocation50_spill] sm:$0xff] %v6357_v53  ;;  %2767 = vmatpush.bf16.msra.mxu1 %v5350_v22 }
 0x189   : > { %v605_v13 = vpop.f32.mrf.mxu0 }
 0x18a   : > { %v754_v39 = vpop.f32.mrf.mxu1 }
 0x18b   : > { %v6359_v40 = vadd.f32 %v754_v39, %v605_v13  ;;  %v640_v4 = vpop.f32.mrf.mxu2  ;;  %v5343_v13 = vld [vmem:[#allocation7 + $0x70] sm:$0xff] }
 0x18c   : > { %v789_v37 = vpop.f32.mrf.mxu3  ;;  %2093 = vmatpush.bf16.msra.mxu3 %v5343_v13 }
 0x18d   : > { %v6361_v52 = vadd.f32 %v789_v37, %v640_v4 }
 0x18f   : > { %7754 = vst [vmem:[#allocation51_spill] sm:$0xff] %v6361_v52 }
 0x190   : > { %4953 = vmatmul.msk.bf16.gmra.mxu2 %vm311_vm0, %v6327_v33 }
 0x191   : > { %v608_v12 = vpop.f32.mrf.mxu0  ;;  %4977 = vmatmul.msk.bf16.gmra.mxu3 %vm311_vm0, %v6230_v11 }
 0x192   : > { %v757_v21 = vpop.f32.mrf.mxu1 }
 0x193   : > { %v6369_v7 = vadd.f32 %v757_v21, %v608_v12  ;;  %v643_v36 = vpop.f32.mrf.mxu2  ;;  %v5345_v21 = vld [vmem:[#allocation7 + $0x80] sm:$0xff] }
 0x194   : > { %5002 = vmatmul.msk.bf16.gmra.mxu0 %vm311_vm0, %v6026_v28  ;;  %v792_v37 = vpop.f32.mrf.mxu3  ;;  %v6381_v28 = vpack.c.bf16 %v1521_v16, %v1520_v17 }
 0x195   : > { %5026 = vmatmul.msk.bf16.gmra.mxu1 %vm311_vm0, %v6363_v57  ;;  %v6375_v39 = vadd.f32 %v792_v37, %v643_v36  ;;  %2327 = vmatpush.bf16.msra.mxu0 %v5345_v21  ;;  %v1522_v21 = vld [vmem:[#allocation2 + $0xf2] sm:$0xff] }
 0x197   : > { %7756 = vst [vmem:[#allocation53_spill] sm:$0xff] %v6375_v39 }
 0x199   : > { %v610_v4 = vpop.f32.mrf.mxu0 }
 0x19a   : > { %v759_v58 = vpop.f32.mrf.mxu1 }
 0x19b   : > { %v6377_v20 = vadd.f32 %v759_v58, %v610_v4  ;;  %v645_v11 = vpop.f32.mrf.mxu2 }
 0x19c   : > { %v794_v12 = vpop.f32.mrf.mxu3 }
 0x19d   : > { %v6379_v52 = vadd.f32 %v794_v12, %v645_v11  ;;  %v1523_v11 = vld [vmem:[#allocation2 + $0xfa] sm:$0xff] }
 0x19f   : > { %7757 = vst [vmem:[#allocation54_spill] sm:$0xff] %v6379_v52 }
 0x1a0   : > { %4954 = vmatmul.msk.bf16.gmra.mxu2 %vm311_vm0, %v6345_v63 }
 0x1a1   : > { %v1392_v53 = vpop.f32.mrf.mxu0  ;;  %4978 = vmatmul.msk.bf16.gmra.mxu3 %vm311_vm0, %v6028_v29  ;;  %v6395_v29 = vpack.c.bf16 %v1523_v11, %v1522_v21 }
 0x1a2   : > { %v1626_v8 = vpop.f32.mrf.mxu1 }
 0x1a3   : > { %v648_v13 = vpop.f32.mrf.mxu2 }
 0x1a4   : > { %5003 = vmatmul.msk.bf16.gmra.mxu0 %vm311_vm0, %v6064_v48  ;;  %v797_v36 = vpop.f32.mrf.mxu3 }
 0x1a5   : > { %5027 = vmatmul.msk.bf16.gmra.mxu1 %vm311_vm0, %v6381_v28  ;;  %v6391_v16 = vadd.f32 %v797_v36, %v648_v13 }
 0x1a7   : > { %7758 = vst [vmem:[#allocation55_spill] sm:$0xff] %v6391_v16 }
 0x1a9   : > { %v1394_v17 = vpop.f32.mrf.mxu0 }
 0x1aa   : > { %v1628_v37 = vpop.f32.mrf.mxu1 }
 0x1ab   : > { %v650_v4 = vpop.f32.mrf.mxu2 }
 0x1ac   : > { %v799_v58 = vpop.f32.mrf.mxu3 }
 0x1ad   : > { %v6393_v12 = vadd.f32 %v799_v58, %v650_v4 }
 0x1af   : > { %7759 = vst [vmem:[#allocation56_spill] sm:$0xff] %v6393_v12  ;;  %v725_v12 = vadd.f32 %v6255_v9, %v6253_v55 }
 0x1b0   : > { %4955 = vmatmul.msk.bf16.gmra.mxu2 %vm311_vm0, %v6363_v57  ;;  %v1524_v57 = vld [vmem:[#allocation2 + $0x10a] sm:$0xff] }
 0x1b1   : > { %v1397_v52 = vpop.f32.mrf.mxu0  ;;  %4979 = vmatmul.msk.bf16.gmra.mxu3 %vm311_vm0, %v6066_v49 }
 0x1b2   : > { %v1631_v48 = vpop.f32.mrf.mxu1 }
 0x1b3   : > { %v924_v22 = vpop.f32.mrf.mxu2 }
 0x1b4   : > { %5004 = vmatmul.msk.bf16.gmra.mxu0 %vm311_vm0, %v6100_v0  ;;  %v1158_v13 = vpop.f32.mrf.mxu3  ;;  %v1004_v36 = vadd.f32 %v924_v22, %v6236_v10  ;;  %v1525_v0 = vld [vmem:[#allocation2 + $0x112] sm:$0xff] }
 0x1b5   : > { %5028 = vmatmul.msk.bf16.gmra.mxu1 %vm311_vm0, %v6395_v29  ;;  %v6410_v5 = vpack.c.bf16 %v1525_v0, %v1524_v57 }
 0x1b6   : > { %v1238_v4 = vadd.f32 %v1158_v13, %v1004_v36 }
 0x1b8   : > { %v1472_v11 = vadd.f32 %v1392_v53, %v1238_v4 }
 0x1b9   : > { %v1399_v58 = vpop.f32.mrf.mxu0 }
 0x1ba   : > { %v1633_v21 = vpop.f32.mrf.mxu1  ;;  %v6408_v16 = vadd.f32 %v1626_v8, %v1472_v11 }
 0x1bb   : > { %v926_v49 = vpop.f32.mrf.mxu2 }
 0x1bc   : > { %v1160_v39 = vpop.f32.mrf.mxu3  ;;  %v1005_v41 = vadd.f32 %v926_v49, %v725_v12 }
 0x1be   : > { %v1239_v63 = vadd.f32 %v1160_v39, %v1005_v41 }
 0x1c0   : > { %4956 = vmatmul.msk.bf16.gmra.mxu2 %vm311_vm0, %v6381_v28  ;;  %v1473_v10 = vadd.f32 %v1394_v17, %v1239_v63  ;;  %v1526_v17 = vld [vmem:[#allocation2 + $0x122] sm:$0xff] }
 0x1c1   : > { %v1402_v6 = vpop.f32.mrf.mxu0  ;;  %4980 = vmatmul.msk.bf16.gmra.mxu3 %vm311_vm0, %v6102_v1 }
 0x1c2   : > { %v1636_v33 = vpop.f32.mrf.mxu1  ;;  %v6416_v55 = vadd.f32 %v1628_v37, %v1473_v10  ;;  %v1527_v37 = vld [vmem:[#allocation2 + $0x12a] sm:$0xff] }
 0x1c3   : > { %v929_v9 = vpop.f32.mrf.mxu2  ;;  %v6426_v36 = vpack.c.bf16 %v1527_v37, %v1526_v17 }
 0x1c4   : > { %5005 = vmatmul.msk.bf16.gmra.mxu0 %vm311_vm0, %v6136_v31  ;;  %v1163_v41 = vpop.f32.mrf.mxu3  ;;  %v1006_v8 = vadd.f32 %v929_v9, %v6262_v34 }
 0x1c5   : > { %5029 = vmatmul.msk.bf16.gmra.mxu1 %vm311_vm0, %v6410_v5 }
 0x1c6   : > { %v1240_v53 = vadd.f32 %v1163_v41, %v1006_v8 }
 0x1c8   : > { %v1474_v12 = vadd.f32 %v1397_v52, %v1240_v53  ;;  %v1529_v53 = vld [vmem:[#allocation2 + $0x142] sm:$0xff] }
 0x1c9   : > { %v1404_v57 = vpop.f32.mrf.mxu0 }
 0x1ca   : > { %v1638_v39 = vpop.f32.mrf.mxu1  ;;  %v6423_v22 = vadd.f32 %v1631_v48, %v1474_v12 }
 0x1cb   : > { %v931_v1 = vpop.f32.mrf.mxu2 }
 0x1cc   : > { %v1165_v63 = vpop.f32.mrf.mxu3  ;;  %v1007_v13 = vadd.f32 %v931_v1, %v6270_v24 }
 0x1ce   : > { %v1241_v31 = vadd.f32 %v1165_v63, %v1007_v13 }
 0x1d0   : > { %4957 = vmatmul.msk.bf16.gmra.mxu2 %vm311_vm0, %v6395_v29  ;;  %v1475_v34 = vadd.f32 %v1399_v58, %v1241_v31 }
 0x1d1   : > { %v1407_v4 = vpop.f32.mrf.mxu0  ;;  %4981 = vmatmul.msk.bf16.gmra.mxu3 %vm311_vm0, %v6138_v32 }
 0x1d2   : > { %v1641_v11 = vpop.f32.mrf.mxu1  ;;  %v6432_v52 = vadd.f32 %v1633_v21, %v1475_v34  ;;  %v1528_v21 = vld [vmem:[#allocation2 + $0x13a] sm:$0xff] }
 0x1d3   : > { %v934_v24 = vpop.f32.mrf.mxu2  ;;  %v6442_v1 = vpack.c.bf16 %v1529_v53, %v1528_v21  ;;  %v6473_v21 = vld [vmem:[%s5750_s16 + $0xf0] sm:$0xff]  ;;  %v6476_v53 = vld [vmem:[%s5750_s16 + $0xf8] sm:$0xff]  ;;  %s5553_s16 = scalar_lea.hbm %s5552_s15, 256 }
 0x1d4   : > { %5006 = vmatmul.msk.bf16.gmra.mxu0 %vm311_vm0, %v6172_v61  ;;  %v1168_v48 = vpop.f32.mrf.mxu3  ;;  %v1008_v49 = vadd.f32 %v934_v24, %v6279_v38  ;;  %7760 = vst [vmem:[#allocation57_spill] sm:$0xff] %v6473_v21  ;;  %p5554_p1 = scmp.ne.s32.totalorder %s5552_s15, %s5553_s16  ;;  %p5559_p2 = scmp.lt.s32.totalorder %s5557_s9, %s5553_s16 }
 0x1d5   : > { %5030 = vmatmul.msk.bf16.gmra.mxu1 %vm311_vm0, %v6426_v36  ;;  %7761 = vst [vmem:[#allocation58_spill] sm:$0xff] %v6476_v53 }
 0x1d6   : > { %v1242_v0 = vadd.f32 %v1168_v48, %v1008_v49  ;;  %397 = vst.msk [vmem:[#allocation2 + $0x181] sm:$0xff] %vm311_vm0, %v6473_v21  ;;  %p5555_p4 = pnand %p5554_p1, %p5714_p3  ;;  %p5560_p9 = por %p5559_p2, %p5558_p11 }
 0x1d7   : > { %398 = vst.msk [vmem:[#allocation2 + $0x189] sm:$0xff] %vm311_vm0, %v6476_v53 }
 0x1d8   : > { %v1476_v41 = vadd.f32 %v1402_v6, %v1242_v0  ;;  %p5556_p8 = pneg %p5555_p4 }
 0x1d9   : > { %v1409_v10 = vpop.f32.mrf.mxu0 }
 0x1da   : > { %v1643_v9 = vpop.f32.mrf.mxu1  ;;  %v6439_v8 = vadd.f32 %v1636_v33, %v1476_v41  ;;  %p5561_p10 = pnand %p5560_p9, %p5556_p8 }
 0x1db   : > { %v936_v32 = vpop.f32.mrf.mxu2 }
 0x1dc   : > { %v1170_v58 = vpop.f32.mrf.mxu3  ;;  %v1009_v12 = vadd.f32 %v936_v32, %v6287_v25 }
 0x1de   : > { %v1243_v61 = vadd.f32 %v1170_v58, %v1009_v12 }
 0x1e0   : > { %4958 = vmatmul.msk.bf16.gmra.mxu2 %vm311_vm0, %v6410_v5  ;;  %v1477_v38 = vadd.f32 %v1404_v57, %v1243_v61 }
 0x1e1   : > { %v1412_v63 = vpop.f32.mrf.mxu0  ;;  %4982 = vmatmul.msk.bf16.gmra.mxu3 %vm311_vm0, %v6174_v62 }
 0x1e2   : > { %v1646_v17 = vpop.f32.mrf.mxu1  ;;  %v6448_v6 = vadd.f32 %v1638_v39, %v1477_v38  ;;  %v1530_v39 = vld [vmem:[#allocation2 + $0x152] sm:$0xff] }
 0x1e3   : > { %v939_v25 = vpop.f32.mrf.mxu2 }
 0x1e4   : > { %5007 = vmatmul.msk.bf16.gmra.mxu0 %vm311_vm0, %v6208_v47  ;;  %v1173_v33 = vpop.f32.mrf.mxu3  ;;  %v1010_v37 = vadd.f32 %v939_v25, %v6297_v27  ;;  %v1531_v47 = vld [vmem:[#allocation2 + $0x15a] sm:$0xff] }
 0x1e5   : > { %5031 = vmatmul.msk.bf16.gmra.mxu1 %vm311_vm0, %v6442_v1  ;;  %v6460_v41 = vpack.c.bf16 %v1531_v47, %v1530_v39 }
 0x1e6   : > { %v1244_v13 = vadd.f32 %v1173_v33, %v1010_v37  ;;  %v1532_v33 = vld [vmem:[#allocation2 + $0x16a] sm:$0xff]  ;;  %v1533_v37 = vld [vmem:[#allocation2 + $0x172] sm:$0xff] }
 0x1e8   : > { %v1478_v24 = vadd.f32 %v1407_v4, %v1244_v13 }
 0x1e9   : > { %v1414_v31 = vpop.f32.mrf.mxu0 }
 0x1ea   : > { %v6455_v34 = vpop.f32.mrf.mxu1  ;;  %v6457_v48 = vadd.f32 %v1641_v11, %v1478_v24  ;;  %v6488_v24 = vpack.c.bf16 %v1533_v37, %v1532_v33 }
 0x1eb   : > { %v941_v62 = vpop.f32.mrf.mxu2 }
 0x1ec   : > { %v1175_v57 = vpop.f32.mrf.mxu3  ;;  %v1011_v49 = vadd.f32 %v941_v62, %v6305_v35 }
 0x1ee   : > { %v1245_v0 = vadd.f32 %v1175_v57, %v1011_v49 }
 0x1f0   : > { %4959 = vmatmul.msk.bf16.gmra.mxu2 %vm311_vm0, %v6426_v36  ;;  %v1479_v4 = vadd.f32 %v1409_v10, %v1245_v0 }
 0x1f1   : > { %v1417_v32 = vpop.f32.mrf.mxu0  ;;  %4983 = vmatmul.msk.bf16.gmra.mxu3 %vm311_vm0, %v6210_v56 }
 0x1f2   : > { %v1651_v27 = vpop.f32.mrf.mxu1  ;;  %v6466_v11 = vadd.f32 %v1643_v9, %v1479_v4 }
 0x1f3   : > { %v944_v35 = vpop.f32.mrf.mxu2 }
 0x1f4   : > { %5008 = vmatmul.msk.bf16.gmra.mxu0 %vm311_vm0, %v6224_v45  ;;  %v1178_v58 = vpop.f32.mrf.mxu3  ;;  %v1012_v12 = vadd.f32 %v944_v35, %v6315_v23 }
 0x1f5   : > { %5032 = vmatmul.msk.bf16.gmra.mxu1 %vm311_vm0, %v6460_v41 }
 0x1f6   : > { %v1246_v56 = vadd.f32 %v1178_v58, %v1012_v12  ;;  %v1301_v12 = vld [vmem:[#allocation2 + $0x189] sm:$0xff] }
 0x1f8   : > { %v1480_v9 = vadd.f32 %v1412_v63, %v1246_v56  ;;  %v1534_v56 = vld [vmem:[#allocation2 + $0x182] sm:$0xff] }
 0x1f9   : > { %v1419_v10 = vpop.f32.mrf.mxu0 }
 0x1fa   : > { %v6483_v45 = vpop.f32.mrf.mxu1  ;;  %v6485_v61 = vadd.f32 %v1646_v17, %v1480_v9 }
 0x1fb   : > { %v946_v38 = vpop.f32.mrf.mxu2 }
 0x1fc   : > { %v1180_v25 = vpop.f32.mrf.mxu3  ;;  %v1013_v13 = vadd.f32 %v946_v38, %v6323_v51 }
 0x1fe   : > { %v1247_v23 = vadd.f32 %v1180_v25, %v1013_v13 }
 0x200   : > { %4960 = vmatmul.msk.bf16.gmra.mxu2 %vm311_vm0, %v6442_v1  ;;  %v6494_v63 = vadd.f32 %v1414_v31, %v1247_v23 }
 0x201   : > { %v1422_v62 = vpop.f32.mrf.mxu0  ;;  %4984 = vmatmul.msk.bf16.gmra.mxu3 %vm311_vm0, %v6226_v46  ;;  %v1300_v46 = vld [vmem:[#allocation2 + $0x181] sm:$0xff] }
 0x202   : > { %v1656_v57 = vpop.f32.mrf.mxu1  ;;  %v6506_v25 = vpack.c.bf16 %v1301_v12, %v1300_v46 }
 0x203   : > { %v949_v51 = vpop.f32.mrf.mxu2 }
 0x204   : > { %5009 = vmatmul.msk.bf16.gmra.mxu0 %vm311_vm0, %v6242_v30  ;;  %v1183_v17 = vpop.f32.mrf.mxu3  ;;  %v1014_v39 = vadd.f32 %v949_v51, %v6333_v14  ;;  %v1535_v30 = vld [vmem:[#allocation2 + $0x18a] sm:$0xff] }
 0x205   : > { %5033 = vmatmul.msk.bf16.gmra.mxu1 %vm311_vm0, %v6488_v24  ;;  %v6508_v33 = vpack.c.bf16 %v1535_v30, %v1534_v56 }
 0x206   : > { %v1248_v47 = vadd.f32 %v1183_v17, %v1014_v39 }
 0x208   : > { %v1482_v4 = vadd.f32 %v1417_v32, %v1248_v47  ;;  %v1066_v47 = vld [vmem:[#allocation2 + $0x180] sm:$0xff] }
 0x209   : > { %v1424_v49 = vpop.f32.mrf.mxu0 }
 0x20a   : > { %v6501_v0 = vpop.f32.mrf.mxu1  ;;  %v6503_v35 = vadd.f32 %v1651_v27, %v1482_v4  ;;  %v1067_v4 = vld [vmem:[#allocation2 + $0x188] sm:$0xff] }
 0x20b   : > { %v951_v31 = vpop.f32.mrf.mxu2 }
 0x20c   : > { %v1185_v58 = vpop.f32.mrf.mxu3  ;;  %v1015_v9 = vadd.f32 %v951_v31, %v6341_v3 }
 0x20e   : > { %v1249_v38 = vadd.f32 %v1185_v58, %v1015_v9  ;;  %v6526_v58 = vpack.c.bf16 %v1067_v4, %v1066_v47  ;;  %v1973_v47 = vld [vmem:[#allocation2 + $0x31] sm:$0xff]  ;;  %v1974_v4 = vld [vmem:[#allocation2 + $0x39] sm:$0xff] }
 0x210   : > { %4961 = vmatmul.msk.bf16.gmra.mxu2 %vm311_vm0, %v6460_v41  ;;  %v6514_v32 = vadd.f32 %v1419_v10, %v1249_v38 }
 0x211   : > { %v1427_v14 = vpop.f32.mrf.mxu0  ;;  %4985 = vmatmul.msk.bf16.gmra.mxu3 %vm311_vm0, %v6244_v54 }
 0x212   : > { %v1661_v37 = vpop.f32.mrf.mxu1 }
 0x213   : > { %v954_v3 = vpop.f32.mrf.mxu2 }
 0x214   : > { %5010 = vmatmul.msk.bf16.gmra.mxu0 %vm311_vm0, %v6506_v25  ;;  %v1188_v27 = vpop.f32.mrf.mxu3  ;;  %v1016_v13 = vadd.f32 %v954_v3, %v6351_v42 }
 0x215   : > { %5034 = vmatmul.msk.bf16.gmra.mxu1 %vm311_vm0, %v6508_v33 }
 0x216   : > { %v1250_v23 = vadd.f32 %v1188_v27, %v1016_v13 }
 0x218   : > { %v1484_v39 = vadd.f32 %v1422_v62, %v1250_v23  ;;  %v5349_v62 = vld [vmem:[#allocation9 + $0x10] sm:$0xff]  ;;  %v1739_v23 = vld [vmem:[#allocation2 + $0x30] sm:$0xff] }
 0x219   : > { %v1429_v51 = vpop.f32.mrf.mxu0  ;;  %2768 = vmatpush.bf16.msra.mxu1 %v5349_v62 }
 0x21a   : > { %v6521_v17 = vpop.f32.mrf.mxu1  ;;  %v6523_v54 = vadd.f32 %v1656_v57, %v1484_v39  ;;  %v1740_v39 = vld [vmem:[#allocation2 + $0x38] sm:$0xff] }
 0x21b   : > { %v956_v10 = vpop.f32.mrf.mxu2 }
 0x21c   : > { %v1190_v46 = vpop.f32.mrf.mxu3  ;;  %v1017_v31 = vadd.f32 %v956_v10, %v6359_v40 }
 0x21e   : > { %v1251_v12 = vadd.f32 %v1190_v46, %v1017_v31  ;;  %v1771_v31 = vpack.c.bf16 %v1740_v39, %v1739_v23  ;;  %v1742_v39 = vld [vmem:[#allocation2 + $0x50] sm:$0xff] }
 0x220   : > { %4962 = vmatmul.msk.bf16.gmra.mxu2 %vm311_vm0, %v6488_v24  ;;  %v6532_v42 = vadd.f32 %v1424_v49, %v1251_v12  ;;  %v2005_v12 = vpack.c.bf16 %v1974_v4, %v1973_v47  ;;  %v1975_v47 = vld [vmem:[#allocation2 + $0x49] sm:$0xff]  ;;  %v1976_v4 = vld [vmem:[#allocation2 + $0x51] sm:$0xff] }
 0x221   : > { %v1432_v56 = vpop.f32.mrf.mxu0  ;;  %4986 = vmatmul.msk.bf16.gmra.mxu3 %vm311_vm0, %v6526_v58 }
 0x222   : > { %v1666_v30 = vpop.f32.mrf.mxu1 }
 0x223   : > { %v959_v57 = vpop.f32.mrf.mxu2 }
 0x224   : > { %5091 = vmatmul.msk.bf16.vlgmr.msra.gmra.mxu0 %vm311_vm0, %v6257_v26  ;;  %v1193_v40 = vpop.f32.mrf.mxu3  ;;  %v1018_v9 = vadd.f32 %v959_v57, %v6369_v7 }
 0x226   : > { %v1252_v38 = vadd.f32 %v1193_v40, %v1018_v9 }
 0x228   : > { %v1486_v13 = vadd.f32 %v1427_v14, %v1252_v38 }
 0x229   : > { %v1434_v3 = vpop.f32.mrf.mxu0 }
 0x22a   : > { %v6537_v27 = vpop.f32.mrf.mxu1  ;;  %v6539_v49 = vadd.f32 %v1661_v37, %v1486_v13  ;;  %v1741_v13 = vld [vmem:[#allocation2 + $0x48] sm:$0xff] }
 0x22b   : > { %v961_v10 = vpop.f32.mrf.mxu2 }
 0x22c   : > { %v1195_v46 = vpop.f32.mrf.mxu3  ;;  %v1019_v26 = vadd.f32 %v961_v10, %v6377_v20 }
 0x22e   : > { %v1253_v62 = vadd.f32 %v1195_v46, %v1019_v26 }
 0x230   : > { %5043 = vmatmul.msk.bf16.vlgmr.msra.gmra.mxu2 %vm311_vm0, %v1771_v31  ;;  %v6544_v14 = vadd.f32 %v1429_v51, %v1253_v62  ;;  %v2006_v31 = vpack.c.bf16 %v1976_v4, %v1975_v47  ;;  %v1978_v47 = vld [vmem:[#allocation2 + $0x69] sm:$0xff] }
 0x231   : > { %v1437_v53 = vpop.f32.mrf.mxu0  ;;  %5067 = vmatmul.msk.bf16.vlgmr.msra.gmra.mxu3 %vm311_vm0, %v2005_v12 }
 0x232   : > { %v1671_v7 = vpop.f32.mrf.mxu1 }
 0x233   : > { %v964_v37 = vpop.f32.mrf.mxu2 }
 0x234   : > { %5092 = vmatmul.msk.bf16.gmra.mxu0 %vm311_vm0, %v6274_v44  ;;  %v1198_v57 = vpop.f32.mrf.mxu3  ;;  %v1020_v40 = vadd.f32 %v964_v37, %v6268_v59  ;;  %v1772_v44 = vpack.c.bf16 %v1742_v39, %v1741_v13  ;;  %v1744_v13 = vld [vmem:[#allocation2 + $0x68] sm:$0xff] }
 0x235   : > { %v1977_v39 = vld [vmem:[#allocation2 + $0x61] sm:$0xff] }
 0x236   : > { %v1254_v9 = vadd.f32 %v1198_v57, %v1020_v40 }
 0x238   : > { %v1488_v38 = vadd.f32 %v1432_v56, %v1254_v9 }
 0x239   : > { %v1439_v20 = vpop.f32.mrf.mxu0 }
 0x23a   : > { %v6549_v23 = vpop.f32.mrf.mxu1  ;;  %v6551_v10 = vadd.f32 %v1666_v30, %v1488_v38  ;;  %v1743_v38 = vld [vmem:[#allocation2 + $0x60] sm:$0xff] }
 0x23b   : > { %v966_v51 = vpop.f32.mrf.mxu2 }
 0x23c   : > { %v1200_v46 = vpop.f32.mrf.mxu3  ;;  %v1021_v26 = vadd.f32 %v966_v51, %v6272_v43 }
 0x23e   : > { %v1255_v12 = vadd.f32 %v1200_v46, %v1021_v26  ;;  %v1773_v26 = vpack.c.bf16 %v1744_v13, %v1743_v38  ;;  %v1746_v38 = vld [vmem:[#allocation2 + $0x80] sm:$0xff] }
 0x23f   : > { %v1979_v13 = vld [vmem:[#allocation2 + $0x79] sm:$0xff] }
 0x240   : > { %5044 = vmatmul.msk.bf16.gmra.mxu2 %vm311_vm0, %v1772_v44  ;;  %v6556_v59 = vadd.f32 %v1434_v3, %v1255_v12 }
 0x241   : > { %v1442_v62 = vpop.f32.mrf.mxu0  ;;  %5068 = vmatmul.msk.bf16.gmra.mxu3 %vm311_vm0, %v2006_v31 }
 0x242   : > { %v1676_v56 = vpop.f32.mrf.mxu1 }
 0x243   : > { %v969_v30 = vpop.f32.mrf.mxu2 }
 0x244   : > { %5093 = vmatmul.msk.bf16.gmra.mxu0 %vm311_vm0, %v6291_v50  ;;  %v1203_v37 = vpop.f32.mrf.mxu3  ;;  %v1022_v57 = vadd.f32 %v969_v30, %v6285_v60  ;;  %v2007_v50 = vpack.c.bf16 %v1978_v47, %v1977_v39  ;;  %v1980_v39 = vld [vmem:[#allocation2 + $0x81] sm:$0xff] }
 0x246   : > { %v1256_v40 = vadd.f32 %v1203_v37, %v1022_v57 }
 0x248   : > { %v1490_v9 = vadd.f32 %v1437_v53, %v1256_v40 }
 0x249   : > { %v1444_v43 = vpop.f32.mrf.mxu0 }
 0x24a   : > { %v6561_v4 = vadd.f32 %v1671_v7, %v1490_v9  ;;  %v6564_v44 = vpop.f32.mrf.mxu1  ;;  %v1745_v9 = vld [vmem:[#allocation2 + $0x78] sm:$0xff] }
 0x24b   : > { %v971_v51 = vpop.f32.mrf.mxu2 }
 0x24c   : > { %v1205_v3 = vpop.f32.mrf.mxu3  ;;  %v1023_v46 = vadd.f32 %v971_v51, %v6289_v19 }
 0x24e   : > { %v1257_v31 = vadd.f32 %v1205_v3, %v1023_v46  ;;  %v1774_v46 = vpack.c.bf16 %v1746_v38, %v1745_v9  ;;  %v1747_v9 = vld [vmem:[#allocation2 + $0x90] sm:$0xff]  ;;  %v1748_v38 = vld [vmem:[#allocation2 + $0x98] sm:$0xff] }
 0x250   : > { %5045 = vmatmul.msk.bf16.gmra.mxu2 %vm311_vm0, %v1773_v26  ;;  %v6568_v60 = vadd.f32 %v1439_v20, %v1257_v31  ;;  %v7763_v31 = vld [vmem:[#allocation46_spill] sm:$0xff] }
 0x251   : > { %v1447_v12 = vpop.f32.mrf.mxu0  ;;  %5069 = vmatmul.msk.bf16.gmra.mxu3 %vm311_vm0, %v2007_v50 }
 0x252   : > { %v1681_v37 = vpop.f32.mrf.mxu1 }
 0x253   : > { %v974_v53 = vpop.f32.mrf.mxu2 }
 0x254   : > { %5094 = vmatmul.msk.bf16.gmra.mxu0 %vm311_vm0, %v6309_v2  ;;  %v1208_v7 = vpop.f32.mrf.mxu3  ;;  %v1024_v30 = vadd.f32 %v974_v53, %v6303_v18  ;;  %v2008_v2 = vpack.c.bf16 %v1980_v39, %v1979_v13  ;;  %v1981_v13 = vld [vmem:[#allocation2 + $0x91] sm:$0xff]  ;;  %v1982_v39 = vld [vmem:[#allocation2 + $0x99] sm:$0xff] }
 0x256   : > { %v1258_v19 = vadd.f32 %v1208_v7, %v1024_v30  ;;  %v7764_v7 = vld [vmem:[#allocation44_spill] sm:$0xff] }
 0x258   : > { %v1492_v40 = vadd.f32 %v1442_v62, %v1258_v19 }
 0x259   : > { %v1449_v57 = vpop.f32.mrf.mxu0 }
 0x25a   : > { %v6573_v47 = vadd.f32 %v1676_v56, %v1492_v40  ;;  %v6580_v62 = vpop.f32.mrf.mxu1 }
 0x25b   : > { %v976_v51 = vpop.f32.mrf.mxu2  ;;  %7762 = vst [vmem:[#allocation59_spill] sm:$0xff] %v6580_v62 }
 0x25c   : > { %v1210_v20 = vpop.f32.mrf.mxu3  ;;  %v1025_v3 = vadd.f32 %v976_v51, %v6307_v15 }
 0x25e   : > { %v1259_v26 = vadd.f32 %v1210_v20, %v1025_v3 }
 0x260   : > { %5046 = vmatmul.msk.bf16.gmra.mxu2 %vm311_vm0, %v1774_v46  ;;  %v6578_v18 = vadd.f32 %v1444_v43, %v1259_v26  ;;  %v7766_v46 = vld [vmem:[#allocation45_spill] sm:$0xff]  ;;  %v1775_v26 = vpack.c.bf16 %v1748_v38, %v1747_v9 }
 0x261   : > { %v1452_v50 = vpop.f32.mrf.mxu0  ;;  %5070 = vmatmul.msk.bf16.gmra.mxu3 %vm311_vm0, %v2008_v2 }
 0x262   : > { %v1686_v43 = vpop.f32.mrf.mxu1 }
 0x263   : > { %v979_v56 = vpop.f32.mrf.mxu2 }
 0x264   : > { %5095 = vmatmul.msk.bf16.gmra.mxu0 %vm311_vm0, %v7763_v31  ;;  %v1213_v53 = vpop.f32.mrf.mxu3  ;;  %v1026_v30 = vadd.f32 %v979_v56, %v7764_v7  ;;  %v2009_v31 = vpack.c.bf16 %v1982_v39, %v1981_v13  ;;  %v7768_v56 = vld [vmem:[#allocation49_spill] sm:$0xff]  ;;  %v7769_v7 = vld [vmem:[#allocation47_spill] sm:$0xff]  ;;  %v1750_v39 = vld [vmem:[#allocation2 + $0xb0] sm:$0xff] }
 0x265   : > { %v1749_v13 = vld [vmem:[#allocation2 + $0xa8] sm:$0xff] }
 0x266   : > { %v1260_v15 = vadd.f32 %v1213_v53, %v1026_v30 }
 0x268   : > { %v1494_v40 = vadd.f32 %v1447_v12, %v1260_v15 }
 0x269   : > { %v1454_v19 = vpop.f32.mrf.mxu0 }
 0x26a   : > { %v6585_v51 = vadd.f32 %v1681_v37, %v1494_v40  ;;  %v6595_v15 = vpop.f32.mrf.mxu1 }
 0x26b   : > { %v981_v20 = vpop.f32.mrf.mxu2  ;;  %7770 = vst [vmem:[#allocation45_spill] sm:$0xff] %v6595_v15 }
 0x26c   : > { %7765 = vst [vmem:[#allocation46_spill] sm:$0xff] %v6585_v51  ;;  %v1215_v3 = vpop.f32.mrf.mxu3  ;;  %v1027_v2 = vadd.f32 %v981_v20, %v7766_v46  ;;  %v1983_v20 = vld [vmem:[#allocation2 + $0xa9] sm:$0xff] }
 0x26e   : > { %v1261_v21 = vadd.f32 %v1215_v3, %v1027_v2  ;;  %v1984_v3 = vld [vmem:[#allocation2 + $0xb1] sm:$0xff] }
 0x26f   : > { %v7772_v2 = vld [vmem:[#allocation48_spill] sm:$0xff] }
 0x270   : > { %5047 = vmatmul.msk.bf16.gmra.mxu2 %vm311_vm0, %v1775_v26  ;;  %v6590_v12 = vadd.f32 %v1449_v57, %v1261_v21 }
 0x271   : > { %v1457_v62 = vpop.f32.mrf.mxu0  ;;  %5071 = vmatmul.msk.bf16.gmra.mxu3 %vm311_vm0, %v2009_v31  ;;  %v1776_v31 = vpack.c.bf16 %v1750_v39, %v1749_v13  ;;  %v1751_v39 = vld [vmem:[#allocation2 + $0xc0] sm:$0xff] }
 0x272   : > { %7767 = vst [vmem:[#allocation44_spill] sm:$0xff] %v6590_v12  ;;  %v1691_v51 = vpop.f32.mrf.mxu1 }
 0x273   : > { %v984_v37 = vpop.f32.mrf.mxu2 }
 0x274   : > { %5096 = vmatmul.msk.bf16.gmra.mxu0 %vm311_vm0, %v7768_v56  ;;  %v1218_v53 = vpop.f32.mrf.mxu3  ;;  %v1028_v30 = vadd.f32 %v984_v37, %v7769_v7  ;;  %v2010_v56 = vpack.c.bf16 %v1984_v3, %v1983_v20  ;;  %v1752_v3 = vld [vmem:[#allocation2 + $0xc8] sm:$0xff] }
 0x276   : > { %v1262_v40 = vadd.f32 %v1218_v53, %v1028_v30  ;;  %v7774_v53 = vld [vmem:[#allocation52_spill] sm:$0xff]  ;;  %v7775_v30 = vld [vmem:[#allocation50_spill] sm:$0xff] }
 0x278   : > { %v1496_v38 = vadd.f32 %v1452_v50, %v1262_v40 }
 0x279   : > { %v1459_v9 = vpop.f32.mrf.mxu0 }
 0x27a   : > { %v6597_v46 = vadd.f32 %v1686_v43, %v1496_v38  ;;  %v6607_v20 = vpop.f32.mrf.mxu1 }
 0x27b   : > { %v986_v21 = vpop.f32.mrf.mxu2  ;;  %7776 = vst [vmem:[#allocation48_spill] sm:$0xff] %v6607_v20 }
 0x27c   : > { %7771 = vst [vmem:[#allocation49_spill] sm:$0xff] %v6597_v46  ;;  %v1220_v57 = vpop.f32.mrf.mxu3  ;;  %v1029_v26 = vadd.f32 %v986_v21, %v7772_v2  ;;  %v1986_v2 = vld [vmem:[#allocation2 + $0xc9] sm:$0xff] }
 0x27e   : > { %v1263_v12 = vadd.f32 %v1220_v57, %v1029_v26  ;;  %v1985_v57 = vld [vmem:[#allocation2 + $0xc1] sm:$0xff] }
 0x27f   : > { %v2011_v15 = vpack.c.bf16 %v1986_v2, %v1985_v57 }
 0x280   : > { %5048 = vmatmul.msk.bf16.gmra.mxu2 %vm311_vm0, %v1776_v31  ;;  %v6602_v50 = vadd.f32 %v1454_v19, %v1263_v12  ;;  %v7777_v31 = vld [vmem:[#allocation51_spill] sm:$0xff] }
 0x281   : > { %v1462_v37 = vpop.f32.mrf.mxu0  ;;  %5072 = vmatmul.msk.bf16.gmra.mxu3 %vm311_vm0, %v2010_v56 }
 0x282   : > { %7773 = vst [vmem:[#allocation47_spill] sm:$0xff] %v6602_v50 }
 0x283   : > { %v989_v43 = vpop.f32.mrf.mxu2 }
 0x284   : > { %5097 = vmatmul.msk.bf16.gmra.mxu0 %vm311_vm0, %v7774_v53  ;;  %v1223_v7 = vpop.f32.mrf.mxu3  ;;  %v1030_v40 = vadd.f32 %v989_v43, %v7775_v30  ;;  %v1777_v53 = vpack.c.bf16 %v1752_v3, %v1751_v39  ;;  %v1696_v43 = vpop.f32.mrf.mxu1  ;;  %v7778_v30 = vld [vmem:[#allocation53_spill] sm:$0xff] }
 0x286   : > { %v1264_v38 = vadd.f32 %v1223_v7, %v1030_v40 }
 0x288   : > { %v1498_v13 = vadd.f32 %v1457_v62, %v1264_v38  ;;  %v2648_v38 = vld [vmem:[#allocation3 + $0x1] sm:$0xff] }
 0x289   : > { %v1464_v21 = vpop.f32.mrf.mxu0 }
 0x28a   : > { %v6609_v26 = vadd.f32 %v1691_v51, %v1498_v13  ;;  %v2649_v13 = vld [vmem:[#allocation3 + $0x9] sm:$0xff] }
 0x28b   : > { %v991_v19 = vpop.f32.mrf.mxu2  ;;  %v2680_v3 = vpack.c.bf16 %v2649_v13, %v2648_v38  ;;  %v5352_v38 = vld [vmem:[#allocation9 + $0x28] sm:$0xff] }
 0x28c   : > { %v1225_v12 = vpop.f32.mrf.mxu3  ;;  %v1031_v56 = vadd.f32 %v991_v19, %v7777_v31  ;;  %v1753_v19 = vld [vmem:[#allocation2 + $0xd8] sm:$0xff]  ;;  %3118 = vmatpush.bf16.msrb.mxu3 %v5352_v38 }
 0x28d   : > { %5115 = vmatmul.msk.bf16.vlgmr.msra.gmra.mxu1 %vm311_vm0, %v2680_v3  ;;  %v7781_v3 = vld [vmem:[#allocation55_spill] sm:$0xff] }
 0x28e   : > { %v1265_v50 = vadd.f32 %v1225_v12, %v1031_v56  ;;  %v7779_v56 = vld [vmem:[#allocation54_spill] sm:$0xff] }
 0x290   : > { %5049 = vmatmul.msk.bf16.gmra.mxu2 %vm311_vm0, %v1777_v53  ;;  %v6614_v62 = vadd.f32 %v1459_v9, %v1265_v50  ;;  %v1987_v9 = vld [vmem:[#allocation2 + $0xd9] sm:$0xff]  ;;  %v1988_v50 = vld [vmem:[#allocation2 + $0xe1] sm:$0xff] }
 0x291   : > { %v1467_v46 = vpop.f32.mrf.mxu0  ;;  %5073 = vmatmul.msk.bf16.gmra.mxu3 %vm311_vm0, %v2011_v15  ;;  %v1754_v15 = vld [vmem:[#allocation2 + $0xe0] sm:$0xff] }
 0x292   : > { %v1778_v20 = vpack.c.bf16 %v1754_v15, %v1753_v19  ;;  %v5354_v15 = vld [vmem:[#allocation9 + $0x38] sm:$0xff] }
 0x293   : > { %v994_v51 = vpop.f32.mrf.mxu2  ;;  %3352 = vmatpush.bf16.msrb.mxu0 %v5354_v15 }
 0x294   : > { %5098 = vmatmul.msk.bf16.gmra.mxu0 %vm311_vm0, %v6381_v28  ;;  %v1228_v7 = vpop.f32.mrf.mxu3  ;;  %v1032_v40 = vadd.f32 %v994_v51, %v7778_v30  ;;  %v2012_v51 = vpack.c.bf16 %v1988_v50, %v1987_v9  ;;  %v6623_v30 = vpop.f32.mrf.mxu1  ;;  %v5356_v9 = vld [vmem:[#allocation9 + $0x48] sm:$0xff] }
 0x295   : > { %7780 = vst [vmem:[#allocation52_spill] sm:$0xff] %v6623_v30  ;;  %3586 = vmatpush.bf16.msrb.mxu1 %v5356_v9 }
 0x296   : > { %v1266_v39 = vadd.f32 %v1228_v7, %v1032_v40  ;;  %v5348_v40 = vld [vmem:[#allocation9 + $0x8] sm:$0xff] }
 0x297   : > { %2916 = vmatpush.bf16.msrb.mxu2 %v5348_v40  ;;  %v7782_v40 = vld [vmem:[#allocation56_spill] sm:$0xff] }
 0x298   : > { %v1500_v2 = vadd.f32 %v1462_v37, %v1266_v39 }
 0x299   : > { %v1469_v57 = vpop.f32.mrf.mxu0 }
 0x29a   : > { %v6620_v12 = vadd.f32 %v1696_v43, %v1500_v2 }
 0x29b   : > { %v996_v31 = vpop.f32.mrf.mxu2 }
 0x29c   : > { %v1230_v28 = vpop.f32.mrf.mxu3  ;;  %v1033_v53 = vadd.f32 %v996_v31, %v7779_v56  ;;  %v1701_v50 = vpop.f32.mrf.mxu1  ;;  %v1989_v56 = vld [vmem:[#allocation2 + $0xf1] sm:$0xff] }
 0x29e   : > { %v1267_v7 = vadd.f32 %v1230_v28, %v1033_v53  ;;  %v1990_v53 = vld [vmem:[#allocation2 + $0xf9] sm:$0xff] }
 0x2a0   : > { %5050 = vmatmul.msk.bf16.gmra.mxu2 %vm311_vm0, %v1778_v20  ;;  %v6627_v13 = vadd.f32 %v1464_v21, %v1267_v7  ;;  %v1755_v20 = vld [vmem:[#allocation2 + $0xf0] sm:$0xff]  ;;  %v1756_v21 = vld [vmem:[#allocation2 + $0xf8] sm:$0xff] }
 0x2a1   : > { %v2329_v37 = vpop.f32.mrf.mxu0  ;;  %5074 = vmatmul.msk.bf16.gmra.mxu3 %vm311_vm0, %v2012_v51  ;;  %v1779_v30 = vpack.c.bf16 %v1756_v21, %v1755_v20  ;;  %v1758_v21 = vld [vmem:[#allocation2 + $0x110] sm:$0xff] }
 0x2a3   : > { %v999_v43 = vpop.f32.mrf.mxu2 }
 0x2a4   : > { %5099 = vmatmul.msk.bf16.gmra.mxu0 %vm311_vm0, %v6395_v29  ;;  %v1233_v39 = vpop.f32.mrf.mxu3  ;;  %v1034_v2 = vadd.f32 %v999_v43, %v7781_v3  ;;  %v2013_v43 = vpack.c.bf16 %v1990_v53, %v1989_v56  ;;  %v1991_v56 = vld [vmem:[#allocation2 + $0x109] sm:$0xff] }
 0x2a6   : > { %v1268_v19 = vadd.f32 %v1233_v39, %v1034_v2 }
 0x2a8   : > { %v1502_v28 = vadd.f32 %v1467_v46, %v1268_v19 }
 0x2a9   : > { %v2331_v31 = vpop.f32.mrf.mxu0 }
 0x2aa   : > { %v6632_v51 = vadd.f32 %v1701_v50, %v1502_v28  ;;  %v6645_v50 = vld [vmem:[%s7650_s2] ss:$0 sm:$0xff] }
 0x2ab   : > { %v1001_v7 = vpop.f32.mrf.mxu2 }
 0x2ac   : > { %v1235_v29 = vpop.f32.mrf.mxu3  ;;  %v1035_v38 = vadd.f32 %v1001_v7, %v7782_v40 }
 0x2ae   : > { %v1269_v39 = vadd.f32 %v1235_v29, %v1035_v38 }
 0x2b0   : > { %5051 = vmatmul.msk.bf16.gmra.mxu2 %vm311_vm0, %v1779_v30  ;;  %v6637_v46 = vadd.f32 %v1469_v57, %v1269_v39  ;;  %v1757_v30 = vld [vmem:[#allocation2 + $0x108] sm:$0xff]  ;;  %v1992_v57 = vld [vmem:[#allocation2 + $0x111] sm:$0xff] }
 0x2b1   : > { %v2334_v3 = vpop.f32.mrf.mxu0  ;;  %5075 = vmatmul.msk.bf16.gmra.mxu3 %vm311_vm0, %v2013_v43  ;;  %v2014_v38 = vpack.c.bf16 %v1992_v57, %v1991_v56  ;;  %v1760_v56 = vld [vmem:[#allocation2 + $0x128] sm:$0xff] }
 0x2b2   : > { %v1993_v57 = vld [vmem:[#allocation2 + $0x121] sm:$0xff] }
 0x2b3   : > { %v1861_v2 = vpop.f32.mrf.mxu2 }
 0x2b4   : > { %5100 = vmatmul.msk.bf16.gmra.mxu0 %vm311_vm0, %v6410_v5  ;;  %v2095_v19 = vpop.f32.mrf.mxu3  ;;  %v1941_v15 = vadd.f32 %v1861_v2, %v6408_v16  ;;  %v1780_v16 = vpack.c.bf16 %v1758_v21, %v1757_v30 }
 0x2b6   : > { %v2175_v9 = vadd.f32 %v2095_v19, %v1941_v15 }
 0x2b8   : > { %v2409_v20 = vadd.f32 %v2329_v37, %v2175_v9 }
 0x2b9   : > { %v2336_v28 = vpop.f32.mrf.mxu0 }
 0x2ba   : > { %v2445_v53 = vadd.f32 %v6645_v50, %v2409_v20 }
 0x2bb   : > { %v1863_v7 = vpop.f32.mrf.mxu2 }
 0x2bc   : > { %v2097_v5 = vpop.f32.mrf.mxu3  ;;  %v2477_v29 = vmax.f32 %v2445_v53, 0.0  ;;  %v1942_v40 = vadd.f32 %v1863_v7, %v6416_v55  ;;  %v1994_v53 = vld [vmem:[#allocation2 + $0x129] sm:$0xff] }
 0x2be   : > { %2564 = vst.msk [vmem:[#allocation3 + $0x19] sm:$0xff] %vm311_vm0, %v2477_v29  ;;  %v2176_v43 = vadd.f32 %v2097_v5, %v1942_v40 }
 0x2c0   : > { %v2410_v2 = vadd.f32 %v2331_v31, %v2176_v43  ;;  %5052 = vmatmul.msk.bf16.gmra.mxu2 %vm311_vm0, %v1780_v16  ;;  %v1759_v31 = vld [vmem:[#allocation2 + $0x120] sm:$0xff] }
 0x2c1   : > { %v2339_v39 = vpop.f32.mrf.mxu0  ;;  %5076 = vmatmul.msk.bf16.gmra.mxu3 %vm311_vm0, %v2014_v38  ;;  %v1781_v16 = vpack.c.bf16 %v1760_v56, %v1759_v31  ;;  %v2015_v38 = vpack.c.bf16 %v1994_v53, %v1993_v57  ;;  %v1761_v56 = vld [vmem:[#allocation2 + $0x138] sm:$0xff]  ;;  %v1762_v57 = vld [vmem:[#allocation2 + $0x140] sm:$0xff] }
 0x2c2   : > { %v2446_v37 = vadd.f32 %v6645_v50, %v2410_v2  ;;  %v1995_v53 = vld [vmem:[#allocation2 + $0x139] sm:$0xff] }
 0x2c3   : > { %v1866_v19 = vpop.f32.mrf.mxu2 }
 0x2c4   : > { %5101 = vmatmul.msk.bf16.gmra.mxu0 %vm311_vm0, %v6426_v36  ;;  %v2100_v15 = vpop.f32.mrf.mxu3  ;;  %v2478_v9 = vmax.f32 %v2446_v37, 0.0  ;;  %v1943_v55 = vadd.f32 %v1866_v19, %v6423_v22 }
 0x2c5   : > { %v2650_v43 = vld [vmem:[#allocation3 + $0x19] sm:$0xff] }
 0x2c6   : > { %2565 = vst.msk [vmem:[#allocation3 + $0x21] sm:$0xff] %vm311_vm0, %v2478_v9  ;;  %v2177_v20 = vadd.f32 %v2100_v15, %v1943_v55 }
 0x2c8   : > { %v2411_v21 = vadd.f32 %v2334_v3, %v2177_v20 }
 0x2c9   : > { %v2341_v30 = vpop.f32.mrf.mxu0 }
 0x2ca   : > { %v2447_v7 = vadd.f32 %v6645_v50, %v2411_v21 }
 0x2cb   : > { %v1868_v5 = vpop.f32.mrf.mxu2 }
 0x2cc   : > { %v2102_v29 = vpop.f32.mrf.mxu3  ;;  %v2479_v40 = vmax.f32 %v2447_v7, 0.0  ;;  %v1944_v36 = vadd.f32 %v1868_v5, %v6432_v52  ;;  %v1996_v7 = vld [vmem:[#allocation2 + $0x141] sm:$0xff] }
 0x2cd   : > { %v2651_v22 = vld [vmem:[#allocation3 + $0x21] sm:$0xff] }
 0x2ce   : > { %2566 = vst.msk [vmem:[#allocation3 + $0x31] sm:$0xff] %vm311_vm0, %v2479_v40  ;;  %v2178_v2 = vadd.f32 %v2102_v29, %v1944_v36  ;;  %v2681_v37 = vpack.c.bf16 %v2651_v22, %v2650_v43 }
 0x2d0   : > { %v2412_v19 = vadd.f32 %v2336_v28, %v2178_v2  ;;  %5053 = vmatmul.msk.bf16.gmra.mxu2 %vm311_vm0, %v1781_v16  ;;  %5116 = vmatmul.msk.bf16.gmra.mxu1 %vm311_vm0, %v2681_v37  ;;  %v1782_v16 = vpack.c.bf16 %v1762_v57, %v1761_v56  ;;  %v1997_v56 = vld [vmem:[#allocation2 + $0x151] sm:$0xff]  ;;  %v1998_v57 = vld [vmem:[#allocation2 + $0x159] sm:$0xff] }
 0x2d1   : > { %v2344_v3 = vpop.f32.mrf.mxu0  ;;  %5077 = vmatmul.msk.bf16.gmra.mxu3 %vm311_vm0, %v2015_v38  ;;  %v2016_v38 = vpack.c.bf16 %v1996_v7, %v1995_v53 }
 0x2d2   : > { %v2448_v15 = vadd.f32 %v6645_v50, %v2412_v19 }
 0x2d3   : > { %v1871_v52 = vpop.f32.mrf.mxu2 }
 0x2d4   : > { %5102 = vmatmul.msk.bf16.gmra.mxu0 %vm311_vm0, %v6442_v1  ;;  %v2105_v9 = vpop.f32.mrf.mxu3  ;;  %v2480_v55 = vmax.f32 %v2448_v15, 0.0  ;;  %v1945_v20 = vadd.f32 %v1871_v52, %v6439_v8 }
 0x2d5   : > { %v2652_v43 = vld [vmem:[#allocation3 + $0x31] sm:$0xff] }
 0x2d6   : > { %2567 = vst.msk [vmem:[#allocation3 + $0x39] sm:$0xff] %vm311_vm0, %v2480_v55  ;;  %v2179_v21 = vadd.f32 %v2105_v9, %v1945_v20 }
 0x2d8   : > { %v2413_v31 = vadd.f32 %v2339_v39, %v2179_v21  ;;  %v1763_v21 = vld [vmem:[#allocation2 + $0x150] sm:$0xff] }
 0x2d9   : > { %v2346_v28 = vpop.f32.mrf.mxu0 }
 0x2da   : > { %v2449_v5 = vadd.f32 %v6645_v50, %v2413_v31  ;;  %v1764_v31 = vld [vmem:[#allocation2 + $0x158] sm:$0xff] }
 0x2db   : > { %v1873_v29 = vpop.f32.mrf.mxu2 }
 0x2dc   : > { %v2107_v40 = vpop.f32.mrf.mxu3  ;;  %v2481_v36 = vmax.f32 %v2449_v5, 0.0  ;;  %v1946_v1 = vadd.f32 %v1873_v29, %v6448_v6 }
 0x2dd   : > { %v2653_v8 = vld [vmem:[#allocation3 + $0x39] sm:$0xff] }
 0x2de   : > { %2568 = vst.msk [vmem:[#allocation3 + $0x49] sm:$0xff] %vm311_vm0, %v2481_v36  ;;  %v2180_v22 = vadd.f32 %v2107_v40, %v1946_v1  ;;  %v2682_v2 = vpack.c.bf16 %v2653_v8, %v2652_v43  ;;  %v1783_v40 = vpack.c.bf16 %v1764_v31, %v1763_v21  ;;  %v2017_v36 = vpack.c.bf16 %v1998_v57, %v1997_v56 }
 0x2e0   : > { %v2414_v37 = vadd.f32 %v2341_v30, %v2180_v22  ;;  %5054 = vmatmul.msk.bf16.gmra.mxu2 %vm311_vm0, %v1782_v16  ;;  %5117 = vmatmul.msk.bf16.gmra.mxu1 %vm311_vm0, %v2682_v2 }
 0x2e1   : > { %v2349_v39 = vpop.f32.mrf.mxu0  ;;  %5078 = vmatmul.msk.bf16.gmra.mxu3 %vm311_vm0, %v2016_v38 }
 0x2e2   : > { %v2450_v19 = vadd.f32 %v6645_v50, %v2414_v37 }
 0x2e3   : > { %v1876_v6 = vpop.f32.mrf.mxu2 }
 0x2e4   : > { %5103 = vmatmul.msk.bf16.gmra.mxu0 %vm311_vm0, %v6460_v41  ;;  %v2110_v15 = vpop.f32.mrf.mxu3  ;;  %v2482_v52 = vmax.f32 %v2450_v19, 0.0  ;;  %v1947_v9 = vadd.f32 %v1876_v6, %v6457_v48 }
 0x2e5   : > { %v2654_v1 = vld [vmem:[#allocation3 + $0x49] sm:$0xff] }
 0x2e6   : > { %2569 = vst.msk [vmem:[#allocation3 + $0x51] sm:$0xff] %vm311_vm0, %v2482_v52  ;;  %v2181_v55 = vadd.f32 %v2110_v15, %v1947_v9  ;;  %v1765_v15 = vld [vmem:[#allocation2 + $0x168] sm:$0xff]  ;;  %v1766_v52 = vld [vmem:[#allocation2 + $0x170] sm:$0xff] }
 0x2e7   : > { %v1999_v9 = vld [vmem:[#allocation2 + $0x169] sm:$0xff] }
 0x2e8   : > { %v2415_v20 = vadd.f32 %v2344_v3, %v2181_v55  ;;  %v2000_v55 = vld [vmem:[#allocation2 + $0x171] sm:$0xff] }
 0x2e9   : > { %v2351_v30 = vpop.f32.mrf.mxu0 }
 0x2ea   : > { %v2451_v53 = vadd.f32 %v6645_v50, %v2415_v20  ;;  %v1715_v20 = vadd.f32 %v6455_v34, %v6494_v63 }
 0x2eb   : > { %v1878_v7 = vpop.f32.mrf.mxu2 }
 0x2ec   : > { %v2112_v5 = vpop.f32.mrf.mxu3  ;;  %v2483_v29 = vmax.f32 %v2451_v53, 0.0  ;;  %v1948_v41 = vadd.f32 %v1878_v7, %v6466_v11  ;;  %v1784_v53 = vpack.c.bf16 %v1766_v52, %v1765_v15  ;;  %v5347_v15 = vld [vmem:[#allocation9] sm:$0xff] }
 0x2ed   : > { %v2655_v48 = vld [vmem:[#allocation3 + $0x51] sm:$0xff]  ;;  %2917 = vmatpush.bf16.msrb.mxu2 %v5347_v15 }
 0x2ee   : > { %2570 = vst.msk [vmem:[#allocation3 + $0x61] sm:$0xff] %vm311_vm0, %v2483_v29  ;;  %v2182_v16 = vadd.f32 %v2112_v5, %v1948_v41  ;;  %v2683_v38 = vpack.c.bf16 %v2655_v48, %v2654_v1 }
 0x2f0   : > { %v2416_v43 = vadd.f32 %v2346_v28, %v2182_v16  ;;  %5055 = vmatmul.msk.bf16.gmra.mxu2 %vm311_vm0, %v1783_v40  ;;  %5118 = vmatmul.msk.bf16.gmra.mxu1 %vm311_vm0, %v2683_v38 }
 0x2f1   : > { %v2354_v3 = vpop.f32.mrf.mxu0  ;;  %5079 = vmatmul.msk.bf16.gmra.mxu3 %vm311_vm0, %v2017_v36 }
 0x2f2   : > { %v2452_v8 = vadd.f32 %v6645_v50, %v2416_v43  ;;  %v1717_v43 = vadd.f32 %v6483_v45, %v6514_v32 }
 0x2f3   : > { %v1881_v11 = vpop.f32.mrf.mxu2 }
 0x2f4   : > { %5104 = vmatmul.msk.bf16.gmra.mxu0 %vm311_vm0, %v6488_v24  ;;  %v2115_v22 = vpop.f32.mrf.mxu3  ;;  %v2484_v2 = vmax.f32 %v2452_v8, 0.0  ;;  %v1949_v37 = vadd.f32 %v1881_v11, %v6485_v61  ;;  %v2018_v61 = vpack.c.bf16 %v2000_v55, %v1999_v9  ;;  %v5353_v11 = vld [vmem:[#allocation9 + $0x30] sm:$0xff] }
 0x2f5   : > { %v2656_v7 = vld [vmem:[#allocation3 + $0x61] sm:$0xff]  ;;  %3353 = vmatpush.bf16.msrb.mxu0 %v5353_v11  ;;  %v3233_v11 = vld [vmem:[#allocation3 + $0x18] sm:$0xff] }
 0x2f6   : > { %2571 = vst.msk [vmem:[#allocation3 + $0x69] sm:$0xff] %vm311_vm0, %v2484_v2  ;;  %v2183_v19 = vadd.f32 %v2115_v22, %v1949_v37  ;;  %v2237_v37 = vld [vmem:[#allocation2 + $0x19a] sm:$0xff] }
 0x2f8   : > { %v2417_v6 = vadd.f32 %v2349_v39, %v2183_v19 }
 0x2f9   : > { %v2356_v28 = vpop.f32.mrf.mxu0 }
 0x2fa   : > { %v2453_v21 = vadd.f32 %v6645_v50, %v2417_v6 }
 0x2fb   : > { %v1883_v24 = vpop.f32.mrf.mxu2 }
 0x2fc   : > { %v2117_v31 = vpop.f32.mrf.mxu3  ;;  %v2485_v56 = vmax.f32 %v2453_v21, 0.0  ;;  %v1950_v57 = vadd.f32 %v1883_v24, %v1715_v20 }
 0x2fd   : > { %v2657_v5 = vld [vmem:[#allocation3 + $0x69] sm:$0xff] }
 0x2fe   : > { %2572 = vst.msk [vmem:[#allocation3 + $0x79] sm:$0xff] %vm311_vm0, %v2485_v56  ;;  %v2184_v39 = vadd.f32 %v2117_v31, %v1950_v57  ;;  %v2684_v29 = vpack.c.bf16 %v2657_v5, %v2656_v7  ;;  %v1770_v7 = vld [vmem:[#allocation2 + $0x1a0] sm:$0xff] }
 0x2ff   : > { %v2003_v5 = vld [vmem:[#allocation2 + $0x199] sm:$0xff] }
 0x300   : > { %v2418_v40 = vadd.f32 %v2351_v30, %v2184_v39  ;;  %5056 = vmatmul.msk.bf16.gmra.mxu2 %vm311_vm0, %v1784_v53  ;;  %5119 = vmatmul.msk.bf16.gmra.mxu1 %vm311_vm0, %v2684_v29  ;;  %v1719_v39 = vadd.f32 %v6501_v0, %v6532_v42 }
 0x301   : > { %v2359_v41 = vpop.f32.mrf.mxu0  ;;  %5080 = vmatmul.msk.bf16.gmra.mxu3 %vm311_vm0, %v2018_v61 }
 0x302   : > { %v2454_v34 = vadd.f32 %v6645_v50, %v2418_v40 }
 0x303   : > { %v1886_v63 = vpop.f32.mrf.mxu2 }
 0x304   : > { %5105 = vmatmul.msk.bf16.gmra.mxu0 %vm311_vm0, %v6508_v33  ;;  %v2120_v36 = vpop.f32.mrf.mxu3  ;;  %v2486_v1 = vmax.f32 %v2454_v34, 0.0  ;;  %v1951_v48 = vadd.f32 %v1886_v63, %v6503_v35  ;;  %v2238_v33 = vld [vmem:[#allocation2 + $0x1a2] sm:$0xff]  ;;  %v5351_v35 = vld [vmem:[#allocation9 + $0x20] sm:$0xff] }
 0x305   : > { %v2658_v52 = vld [vmem:[#allocation3 + $0x79] sm:$0xff]  ;;  %v2254_v20 = vpack.c.bf16 %v2238_v33, %v2237_v37  ;;  %3119 = vmatpush.bf16.msrb.mxu3 %v5351_v35 }
 0x306   : > { %2573 = vst.msk [vmem:[#allocation3 + $0x81] sm:$0xff] %vm311_vm0, %v2486_v1  ;;  %v2185_v16 = vadd.f32 %v2120_v36, %v1951_v48 }
 0x308   : > { %v2419_v38 = vadd.f32 %v2354_v3, %v2185_v16 }
 0x309   : > { %v2361_v30 = vpop.f32.mrf.mxu0 }
 0x30a   : > { %v2455_v8 = vadd.f32 %v6645_v50, %v2419_v38  ;;  %v3234_v38 = vld [vmem:[#allocation3 + $0x20] sm:$0xff] }
 0x30b   : > { %v1888_v22 = vpop.f32.mrf.mxu2  ;;  %v6721_v0 = vpack.c.bf16 %v3234_v38, %v3233_v11  ;;  %v3002_v11 = vld [vmem:[#allocation3 + $0x22] sm:$0xff] }
 0x30c   : > { %v2122_v2 = vpop.f32.mrf.mxu3  ;;  %v2487_v19 = vmax.f32 %v2455_v8, 0.0  ;;  %v1952_v6 = vadd.f32 %v1888_v22, %v1717_v43 }
 0x30d   : > { %v2659_v9 = vld [vmem:[#allocation3 + $0x81] sm:$0xff] }
 0x30e   : > { %2574 = vst.msk [vmem:[#allocation3 + $0x91] sm:$0xff] %vm311_vm0, %v2487_v19  ;;  %v2186_v3 = vadd.f32 %v2122_v2, %v1952_v6  ;;  %v2685_v55 = vpack.c.bf16 %v2659_v9, %v2658_v52  ;;  %v5355_v6 = vld [vmem:[#allocation9 + $0x40] sm:$0xff]  ;;  %v2597_v9 = vld [vmem:[#allocation3 + $0x8] sm:$0xff] }
 0x30f   : > { %v2596_v52 = vld [vmem:[#allocation3] sm:$0xff]  ;;  %3587 = vmatpush.bf16.msrb.mxu1 %v5355_v6 }
 0x310   : > { %v2420_v32 = vadd.f32 %v2356_v28, %v2186_v3  ;;  %5057 = vmatmul.msk.bf16.gmra.mxu2 %vm311_vm0, %v6526_v58  ;;  %5120 = vmatmul.msk.bf16.gmra.mxu1 %vm311_vm0, %v2685_v55  ;;  %v1769_v58 = vld [vmem:[#allocation2 + $0x198] sm:$0xff] }
 0x311   : > { %v2364_v45 = vpop.f32.mrf.mxu0  ;;  %5081 = vmatmul.msk.bf16.gmra.mxu3 %vm311_vm0, %v6506_v25  ;;  %v2004_v25 = vld [vmem:[#allocation2 + $0x1a1] sm:$0xff]  ;;  %v1786_v1 = vpack.c.bf16 %v1770_v7, %v1769_v58  ;;  %v2999_v3 = vld [vmem:[#allocation3 + $0x2] sm:$0xff] }
 0x312   : > { %v2456_v21 = vadd.f32 %v6645_v50, %v2420_v32  ;;  %v3000_v55 = vld [vmem:[#allocation3 + $0xa] sm:$0xff]  ;;  %v3236_v58 = vld [vmem:[#allocation3 + $0x38] sm:$0xff] }
 0x313   : > { %v1891_v24 = vpop.f32.mrf.mxu2 }
 0x314   : > { %5106 = vmatmul.msk.bf16.gmra.mxu0 %vm311_vm0, %v2254_v20  ;;  %v2125_v31 = vpop.f32.mrf.mxu3  ;;  %v2488_v56 = vmax.f32 %v2456_v21, 0.0  ;;  %v1953_v57 = vadd.f32 %v1891_v24, %v6523_v54  ;;  %v2020_v54 = vpack.c.bf16 %v2004_v25, %v2003_v5  ;;  %v1721_v20 = vadd.f32 %v6521_v17, %v6544_v14  ;;  %v3235_v25 = vld [vmem:[#allocation3 + $0x30] sm:$0xff] }
 0x315   : > { %v2660_v48 = vld [vmem:[#allocation3 + $0x91] sm:$0xff]  ;;  %v6737_v17 = vpack.c.bf16 %v3236_v58, %v3235_v25  ;;  %v3240_v25 = vld [vmem:[#allocation3 + $0x68] sm:$0xff] }
 0x316   : > { %2575 = vst.msk [vmem:[#allocation3 + $0x99] sm:$0xff] %vm311_vm0, %v2488_v56  ;;  %v2187_v28 = vadd.f32 %v2125_v31, %v1953_v57  ;;  %v2628_v56 = vpack.c.bf16 %v2597_v9, %v2596_v52  ;;  %v3031_v57 = vpack.c.bf16 %v3000_v55, %v2999_v3 }
 0x318   : > { %v2421_v61 = vadd.f32 %v2359_v41, %v2187_v28 }
 0x319   : > { %v2366_v53 = vpop.f32.mrf.mxu0 }
 0x31a   : > { %v2457_v29 = vadd.f32 %v6645_v50, %v2421_v61 }
 0x31b   : > { %v1893_v40 = vpop.f32.mrf.mxu2 }
 0x31c   : > { %v2127_v34 = vpop.f32.mrf.mxu3  ;;  %v2489_v63 = vmax.f32 %v2457_v29, 0.0  ;;  %v1954_v36 = vadd.f32 %v1893_v40, %v1719_v39 }
 0x31d   : > { %v2661_v16 = vld [vmem:[#allocation3 + $0x99] sm:$0xff] }
 0x31e   : > { %2576 = vst.msk [vmem:[#allocation3 + $0xa9] sm:$0xff] %vm311_vm0, %v2489_v63  ;;  %v2188_v41 = vadd.f32 %v2127_v34, %v1954_v36  ;;  %v2686_v43 = vpack.c.bf16 %v2661_v16, %v2660_v48  ;;  %v6744_v34 = vpop.f32.mrf.mxu1  ;;  %v1723_v48 = vadd.f32 %v6537_v27, %v6556_v59  ;;  %v3237_v59 = vld [vmem:[#allocation3 + $0x48] sm:$0xff] }
 0x320   : > { %v2422_v22 = vadd.f32 %v2361_v30, %v2188_v41  ;;  %5058 = vmatmul.msk.bf16.gmra.mxu2 %vm311_vm0, %v1786_v1  ;;  %5121 = vmatmul.msk.bf16.gmra.mxu1 %vm311_vm0, %v2686_v43  ;;  %v3001_v43 = vld [vmem:[#allocation3 + $0x1a] sm:$0xff] }
 0x321   : > { %v2369_v8 = vpop.f32.mrf.mxu0  ;;  %5082 = vmatmul.msk.bf16.gmra.mxu3 %vm311_vm0, %v2020_v54 }
 0x322   : > { %v2458_v42 = vadd.f32 %v6645_v50, %v2422_v22 }
 0x323   : > { %v1896_v2 = vpop.f32.mrf.mxu2 }
 0x324   : > { %5187 = vmatmul.msk.bf16.vlgmr.msrb.gmra.mxu0 %vm311_vm0, %v6721_v0  ;;  %v2130_v37 = vpop.f32.mrf.mxu3  ;;  %v2490_v33 = vmax.f32 %v2458_v42, 0.0  ;;  %v1955_v19 = vadd.f32 %v1896_v2, %v6539_v49 }
 0x325   : > { %v2662_v28 = vld [vmem:[#allocation3 + $0xa9] sm:$0xff] }
 0x326   : > { %2577 = vst.msk [vmem:[#allocation3 + $0xb1] sm:$0xff] %vm311_vm0, %v2490_v33  ;;  %v2189_v30 = vadd.f32 %v2130_v37, %v1955_v19  ;;  %v6751_v42 = vpop.f32.mrf.mxu1  ;;  %v3238_v33 = vld [vmem:[#allocation3 + $0x50] sm:$0xff] }
 0x328   : > { %v2423_v35 = vadd.f32 %v2364_v45, %v2189_v30  ;;  %v6756_v30 = vpack.c.bf16 %v3002_v11, %v3001_v43  ;;  %v1727_v43 = vadd.f32 %v6564_v44, %v6578_v18  ;;  %v3241_v18 = vld [vmem:[#allocation3 + $0x78] sm:$0xff] }
 0x329   : > { %v2371_v15 = vpop.f32.mrf.mxu0 }
 0x32a   : > { %v2459_v32 = vadd.f32 %v6645_v50, %v2423_v35  ;;  %v6762_v35 = vpack.c.bf16 %v3238_v33, %v3237_v59 }
 0x32b   : > { %v1898_v21 = vpop.f32.mrf.mxu2 }
 0x32c   : > { %v2132_v24 = vpop.f32.mrf.mxu3  ;;  %v2491_v31 = vmax.f32 %v2459_v32, 0.0  ;;  %v1956_v49 = vadd.f32 %v1898_v21, %v1721_v20 }
 0x32d   : > { %v2663_v61 = vld [vmem:[#allocation3 + $0xb1] sm:$0xff] }
 0x32e   : > { %2578 = vst.msk [vmem:[#allocation3 + $0xc1] sm:$0xff] %vm311_vm0, %v2491_v31  ;;  %v2190_v45 = vadd.f32 %v2132_v24, %v1956_v49  ;;  %v6733_v7 = vpack.c.bf16 %v2663_v61, %v2662_v28  ;;  %v1725_v24 = vadd.f32 %v6549_v23, %v6568_v60  ;;  %v3004_v28 = vld [vmem:[#allocation3 + $0x3a] sm:$0xff] }
 0x32f   : > { %v3239_v60 = vld [vmem:[#allocation3 + $0x60] sm:$0xff] }
 0x330   : > { %v2424_v39 = vadd.f32 %v2366_v53, %v2190_v45  ;;  %5139 = vmatmul.msk.bf16.vlgmr.msrb.gmra.mxu2 %vm311_vm0, %v2628_v56  ;;  %5122 = vmatmul.msk.bf16.gmra.mxu1 %vm311_vm0, %v6733_v7 }
 0x331   : > { %v2374_v5 = vpop.f32.mrf.mxu0  ;;  %5163 = vmatmul.msk.bf16.vlgmr.msrb.gmra.mxu3 %vm311_vm0, %v3031_v57  ;;  %v3003_v57 = vld [vmem:[#allocation3 + $0x32] sm:$0xff] }
 0x332   : > { %v2460_v14 = vadd.f32 %v6645_v50, %v2424_v39 }
 0x333   : > { %v1901_v29 = vpop.f32.mrf.mxu2 }
 0x334   : > { %5188 = vmatmul.msk.bf16.gmra.mxu0 %vm311_vm0, %v6737_v17  ;;  %v2135_v40 = vpop.f32.mrf.mxu3  ;;  %v2492_v63 = vmax.f32 %v2460_v14, 0.0  ;;  %v1957_v53 = vadd.f32 %v1901_v29, %v6551_v10  ;;  %v6781_v29 = vpack.c.bf16 %v3004_v28, %v3003_v57 }
 0x335   : > { %v2664_v37 = vld [vmem:[#allocation3 + $0xc1] sm:$0xff] }
 0x336   : > { %2579 = vst.msk [vmem:[#allocation3 + $0xc9] sm:$0xff] %vm311_vm0, %v2492_v63  ;;  %v2191_v36 = vadd.f32 %v2135_v40, %v1957_v53  ;;  %v6787_v63 = vpack.c.bf16 %v3240_v25, %v3239_v60 }
 0x338   : > { %v2425_v54 = vadd.f32 %v2369_v8, %v2191_v36 }
 0x339   : > { %v2376_v1 = vpop.f32.mrf.mxu0 }
 0x33a   : > { %v2461_v16 = vadd.f32 %v6645_v50, %v2425_v54 }
 0x33b   : > { %v1903_v38 = vpop.f32.mrf.mxu2 }
 0x33c   : > { %v2137_v41 = vpop.f32.mrf.mxu3  ;;  %v2493_v22 = vmax.f32 %v2461_v16, 0.0  ;;  %v1958_v2 = vadd.f32 %v1903_v38, %v1723_v48 }
 0x33d   : > { %v2665_v10 = vld [vmem:[#allocation3 + $0xc9] sm:$0xff] }
 0x33e   : > { %2580 = vst.msk [vmem:[#allocation3 + $0xd9] sm:$0xff] %vm311_vm0, %v2493_v22  ;;  %v2192_v19 = vadd.f32 %v2137_v41, %v1958_v2  ;;  %v6754_v8 = vpack.c.bf16 %v2665_v10, %v2664_v37  ;;  %v3005_v37 = vld [vmem:[#allocation3 + $0x4a] sm:$0xff]  ;;  %v3006_v10 = vld [vmem:[#allocation3 + $0x52] sm:$0xff] }
 0x340   : > { %v2426_v6 = vadd.f32 %v2371_v15, %v2192_v19  ;;  %5140 = vmatmul.msk.bf16.gmra.mxu2 %vm311_vm0, %v6721_v0  ;;  %5123 = vmatmul.msk.bf16.gmra.mxu1 %vm311_vm0, %v6754_v8  ;;  %v6771_v0 = vpop.f32.mrf.mxu1 }
 0x341   : > { %v2379_v27 = vpop.f32.mrf.mxu0  ;;  %5164 = vmatmul.msk.bf16.gmra.mxu3 %vm311_vm0, %v6756_v30 }
 0x342   : > { %v2462_v52 = vadd.f32 %v6645_v50, %v2426_v6  ;;  %v3242_v6 = vld [vmem:[#allocation3 + $0x80] sm:$0xff] }
 0x343   : > { %v1906_v9 = vpop.f32.mrf.mxu2 }
 0x344   : > { %5189 = vmatmul.msk.bf16.gmra.mxu0 %vm311_vm0, %v6762_v35  ;;  %v2140_v3 = vpop.f32.mrf.mxu3  ;;  %v2494_v55 = vmax.f32 %v2462_v52, 0.0  ;;  %v1959_v15 = vadd.f32 %v1906_v9, %v6561_v4 }
 0x345   : > { %v2666_v45 = vld [vmem:[#allocation3 + $0xd9] sm:$0xff] }
 0x346   : > { %2581 = vst.msk [vmem:[#allocation3 + $0xe1] sm:$0xff] %vm311_vm0, %v2494_v55  ;;  %v2193_v20 = vadd.f32 %v2140_v3, %v1959_v15  ;;  %v6806_v3 = vpack.c.bf16 %v3006_v10, %v3005_v37  ;;  %v6812_v15 = vpack.c.bf16 %v3242_v6, %v3241_v18 }
 0x348   : > { %v2427_v21 = vadd.f32 %v2374_v5, %v2193_v20 }
 0x349   : > { %v2381_v32 = vpop.f32.mrf.mxu0 }
 0x34a   : > { %v2463_v31 = vadd.f32 %v6645_v50, %v2427_v21 }
 0x34b   : > { %v1908_v49 = vpop.f32.mrf.mxu2 }
 0x34c   : > { %v2142_v56 = vpop.f32.mrf.mxu3  ;;  %v2495_v61 = vmax.f32 %v2463_v31, 0.0  ;;  %v1960_v58 = vadd.f32 %v1908_v49, %v1725_v24 }
 0x34d   : > { %v2667_v4 = vld [vmem:[#allocation3 + $0xe1] sm:$0xff]  ;;  %v6777_v14 = vpop.f32.mrf.mxu1 }
 0x34e   : > { %2582 = vst.msk [vmem:[#allocation3 + $0xf1] sm:$0xff] %vm311_vm0, %v2495_v61  ;;  %v2194_v39 = vadd.f32 %v2142_v56, %v1960_v58  ;;  %v6779_v5 = vpack.c.bf16 %v2667_v4, %v2666_v45  ;;  %v7784_v58 = vld [vmem:[#allocation44_spill] sm:$0xff]  ;;  %v7785_v45 = vld [vmem:[#allocation59_spill] sm:$0xff] }
 0x34f   : > { %v1729_v4 = vadd.f32 %v7785_v45, %v7784_v58  ;;  %v3010_v58 = vld [vmem:[#allocation3 + $0x82] sm:$0xff] }
 0x350   : > { %v2428_v40 = vadd.f32 %v2376_v1, %v2194_v39  ;;  %5141 = vmatmul.msk.bf16.gmra.mxu2 %vm311_vm0, %v6737_v17  ;;  %5124 = vmatmul.msk.bf16.gmra.mxu1 %vm311_vm0, %v6779_v5 }
 0x351   : > { %v2384_v23 = vpop.f32.mrf.mxu0  ;;  %5165 = vmatmul.msk.bf16.gmra.mxu3 %vm311_vm0, %v6781_v29 }
 0x352   : > { %v2464_v53 = vadd.f32 %v6645_v50, %v2428_v40  ;;  %v3007_v40 = vld [vmem:[#allocation3 + $0x62] sm:$0xff] }
 0x353   : > { %v1911_v36 = vpop.f32.mrf.mxu2 }
 0x354   : > { %5190 = vmatmul.msk.bf16.gmra.mxu0 %vm311_vm0, %v6787_v63  ;;  %v2145_v54 = vpop.f32.mrf.mxu3  ;;  %v2496_v48 = vmax.f32 %v2464_v53, 0.0  ;;  %v1961_v1 = vadd.f32 %v1911_v36, %v6573_v47  ;;  %v3008_v53 = vld [vmem:[#allocation3 + $0x6a] sm:$0xff] }
 0x355   : > { %v6796_v16 = vpop.f32.mrf.mxu1  ;;  %v2668_v59 = vld [vmem:[#allocation3 + $0xf1] sm:$0xff] }
 0x356   : > { %2583 = vst.msk [vmem:[#allocation3 + $0xf9] sm:$0xff] %vm311_vm0, %v2496_v48  ;;  %v2195_v17 = vadd.f32 %v2145_v54, %v1961_v1 }
 0x358   : > { %v2429_v41 = vadd.f32 %v2379_v27, %v2195_v17  ;;  %v3244_v17 = vld [vmem:[#allocation3 + $0x98] sm:$0xff] }
 0x359   : > { %v2386_v38 = vpop.f32.mrf.mxu0 }
 0x35a   : > { %v2465_v11 = vadd.f32 %v6645_v50, %v2429_v41 }
 0x35b   : > { %v1913_v22 = vpop.f32.mrf.mxu2 }
 0x35c   : > { %v2147_v2 = vpop.f32.mrf.mxu3  ;;  %v2497_v33 = vmax.f32 %v2465_v11, 0.0  ;;  %v1962_v19 = vadd.f32 %v1913_v22, %v1727_v43  ;;  %v6831_v11 = vpack.c.bf16 %v3008_v53, %v3007_v40 }
 0x35d   : > { %v2669_v47 = vld [vmem:[#allocation3 + $0xf9] sm:$0xff]  ;;  %v6802_v9 = vpop.f32.mrf.mxu1 }
 0x35e   : > { %2584 = vst.msk [vmem:[#allocation3 + $0x109] sm:$0xff] %vm311_vm0, %v2497_v33  ;;  %v2196_v52 = vadd.f32 %v2147_v2, %v1962_v19  ;;  %v6804_v27 = vpack.c.bf16 %v2669_v47, %v2668_v59  ;;  %v3243_v2 = vld [vmem:[#allocation3 + $0x90] sm:$0xff] }
 0x35f   : > { %v6837_v10 = vpack.c.bf16 %v3244_v17, %v3243_v2 }
 0x360   : > { %v2430_v55 = vadd.f32 %v2381_v32, %v2196_v52  ;;  %5142 = vmatmul.msk.bf16.gmra.mxu2 %vm311_vm0, %v6762_v35  ;;  %5125 = vmatmul.msk.bf16.gmra.mxu1 %vm311_vm0, %v6804_v27  ;;  %v7783_v32 = vld [vmem:[#allocation46_spill] sm:$0xff] }
 0x361   : > { %v2389_v44 = vpop.f32.mrf.mxu0  ;;  %5166 = vmatmul.msk.bf16.gmra.mxu3 %vm311_vm0, %v6806_v3 }
 0x362   : > { %v2466_v20 = vadd.f32 %v6645_v50, %v2430_v55 }
 0x363   : > { %v1916_v21 = vpop.f32.mrf.mxu2 }
 0x364   : > { %5191 = vmatmul.msk.bf16.gmra.mxu0 %vm311_vm0, %v6812_v15  ;;  %v2150_v24 = vpop.f32.mrf.mxu3  ;;  %v2498_v31 = vmax.f32 %v2466_v20, 0.0  ;;  %v1963_v49 = vadd.f32 %v1916_v21, %v7783_v32  ;;  %v7787_v21 = vld [vmem:[#allocation47_spill] sm:$0xff] }
 0x365   : > { %v6821_v57 = vpop.f32.mrf.mxu1  ;;  %v2670_v48 = vld [vmem:[#allocation3 + $0x109] sm:$0xff] }
 0x366   : > { %2585 = vst.msk [vmem:[#allocation3 + $0x111] sm:$0xff] %vm311_vm0, %v2498_v31  ;;  %v2197_v56 = vadd.f32 %v2150_v24, %v1963_v49  ;;  %v7788_v24 = vld [vmem:[#allocation45_spill] sm:$0xff] }
 0x367   : > { %v1731_v31 = vadd.f32 %v7788_v24, %v7787_v21 }
 0x368   : > { %v2431_v61 = vadd.f32 %v2384_v23, %v2197_v56 }
 0x369   : > { %v2391_v28 = vpop.f32.mrf.mxu0 }
 0x36a   : > { %v2467_v25 = vadd.f32 %v6645_v50, %v2431_v61  ;;  %v3009_v61 = vld [vmem:[#allocation3 + $0x7a] sm:$0xff] }
 0x36b   : > { %v1918_v39 = vpop.f32.mrf.mxu2 }
 0x36c   : > { %v2152_v60 = vpop.f32.mrf.mxu3  ;;  %v2499_v36 = vmax.f32 %v2467_v25, 0.0  ;;  %v1964_v54 = vadd.f32 %v1918_v39, %v1729_v4 }
 0x36d   : > { %v2671_v1 = vld [vmem:[#allocation3 + $0x111] sm:$0xff]  ;;  %v6827_v43 = vpop.f32.mrf.mxu1 }
 0x36e   : > { %2586 = vst.msk [vmem:[#allocation3 + $0x121] sm:$0xff] %vm311_vm0, %v2499_v36  ;;  %v2198_v41 = vadd.f32 %v2152_v60, %v1964_v54  ;;  %v6829_v23 = vpack.c.bf16 %v2671_v1, %v2670_v48  ;;  %v3246_v60 = vld [vmem:[#allocation3 + $0xb0] sm:$0xff]  ;;  %v6856_v36 = vpack.c.bf16 %v3010_v58, %v3009_v61  ;;  %v3245_v48 = vld [vmem:[#allocation3 + $0xa8] sm:$0xff] }
 0x36f   : > { %v6862_v17 = vpack.c.bf16 %v3246_v60, %v3245_v48  ;;  %v3248_v58 = vld [vmem:[#allocation3 + $0xc8] sm:$0xff] }
 0x370   : > { %v2432_v37 = vadd.f32 %v2386_v38, %v2198_v41  ;;  %5143 = vmatmul.msk.bf16.gmra.mxu2 %vm311_vm0, %v6787_v63  ;;  %5126 = vmatmul.msk.bf16.gmra.mxu1 %vm311_vm0, %v6829_v23  ;;  %v7786_v38 = vld [vmem:[#allocation49_spill] sm:$0xff] }
 0x371   : > { %v2394_v22 = vpop.f32.mrf.mxu0  ;;  %5167 = vmatmul.msk.bf16.gmra.mxu3 %vm311_vm0, %v6831_v11  ;;  %7789 = vst [vmem:[#allocation50_spill] sm:$0xff] %v6862_v17 }
 0x372   : > { %v2468_v33 = vadd.f32 %v6645_v50, %v2432_v37 }
 0x373   : > { %v1921_v19 = vpop.f32.mrf.mxu2 }
 0x374   : > { %5192 = vmatmul.msk.bf16.gmra.mxu0 %vm311_vm0, %v6837_v10  ;;  %v2155_v59 = vpop.f32.mrf.mxu3  ;;  %v2500_v47 = vmax.f32 %v2468_v33, 0.0  ;;  %v1965_v6 = vadd.f32 %v1921_v19, %v7786_v38 }
 0x375   : > { %v6846_v18 = vpop.f32.mrf.mxu1  ;;  %v2672_v25 = vld [vmem:[#allocation3 + $0x121] sm:$0xff] }
 0x376   : > { %2587 = vst.msk [vmem:[#allocation3 + $0x129] sm:$0xff] %vm311_vm0, %v2500_v47  ;;  %v2199_v52 = vadd.f32 %v2155_v59, %v1965_v6  ;;  %v7790_v6 = vld [vmem:[#allocation48_spill] sm:$0xff] }
 0x378   : > { %v2433_v20 = vadd.f32 %v2389_v44, %v2199_v52  ;;  %v1733_v52 = vadd.f32 %v7790_v6, %v6614_v62 }
 0x379   : > { %v2396_v55 = vpop.f32.mrf.mxu0 }
 0x37a   : > { %v2469_v32 = vadd.f32 %v6645_v50, %v2433_v20 }
 0x37b   : > { %v1923_v49 = vpop.f32.mrf.mxu2 }
 0x37c   : > { %v2157_v56 = vpop.f32.mrf.mxu3  ;;  %v2501_v45 = vmax.f32 %v2469_v32, 0.0  ;;  %v1966_v4 = vadd.f32 %v1923_v49, %v1731_v31  ;;  %v3011_v31 = vld [vmem:[#allocation3 + $0x92] sm:$0xff]  ;;  %v3012_v32 = vld [vmem:[#allocation3 + $0x9a] sm:$0xff] }
 0x37d   : > { %v2673_v39 = vld [vmem:[#allocation3 + $0x129] sm:$0xff]  ;;  %v6852_v53 = vpop.f32.mrf.mxu1 }
 0x37e   : > { %2588 = vst.msk [vmem:[#allocation3 + $0x139] sm:$0xff] %vm311_vm0, %v2501_v45  ;;  %v2200_v40 = vadd.f32 %v2157_v56, %v1966_v4  ;;  %v6854_v44 = vpack.c.bf16 %v2673_v39, %v2672_v25  ;;  %v6881_v25 = vpack.c.bf16 %v3012_v32, %v3011_v31  ;;  %v3247_v39 = vld [vmem:[#allocation3 + $0xc0] sm:$0xff]  ;;  %v3013_v32 = vld [vmem:[#allocation3 + $0xaa] sm:$0xff] }
 0x380   : > { %v2434_v1 = vadd.f32 %v2391_v28, %v2200_v40  ;;  %5144 = vmatmul.msk.bf16.gmra.mxu2 %vm311_vm0, %v6812_v15  ;;  %5127 = vmatmul.msk.bf16.gmra.mxu1 %vm311_vm0, %v6854_v44  ;;  %7792 = vst [vmem:[#allocation53_spill] sm:$0xff] %v6881_v25  ;;  %v6887_v40 = vpack.c.bf16 %v3248_v58, %v3247_v39  ;;  %v3250_v58 = vld [vmem:[#allocation3 + $0xe0] sm:$0xff] }
 0x381   : > { %v2399_v54 = vpop.f32.mrf.mxu0  ;;  %5168 = vmatmul.msk.bf16.gmra.mxu3 %vm311_vm0, %v6856_v36 }
 0x382   : > { %v2470_v41 = vadd.f32 %v6645_v50, %v2434_v1  ;;  %7793 = vst [vmem:[#allocation54_spill] sm:$0xff] %v6887_v40 }
 0x383   : > { %v1926_v2 = vpop.f32.mrf.mxu2 }
 0x384   : > { %5193 = vmatmul.msk.bf16.gmra.mxu0 %vm311_vm0, %v6862_v17  ;;  %v2160_v37 = vpop.f32.mrf.mxu3  ;;  %v2502_v33 = vmax.f32 %v2470_v41, 0.0  ;;  %v1967_v28 = vadd.f32 %v1926_v2, %v6609_v26 }
 0x385   : > { %v6871_v59 = vpop.f32.mrf.mxu1  ;;  %v2674_v61 = vld [vmem:[#allocation3 + $0x139] sm:$0xff] }
 0x386   : > { %2589 = vst.msk [vmem:[#allocation3 + $0x141] sm:$0xff] %vm311_vm0, %v2502_v33  ;;  %v2201_v19 = vadd.f32 %v2160_v37, %v1967_v28  ;;  %v5358_v28 = vld [vmem:[#allocation9 + $0x58] sm:$0xff] }
 0x387   : > { %3820 = vmatpush.bf16.msra.mxu2 %v5358_v28 }
 0x388   : > { %v2435_v38 = vadd.f32 %v2394_v22, %v2201_v19  ;;  %v5360_v19 = vld [vmem:[#allocation9 + $0x68] sm:$0xff] }
 0x389   : > { %v2401_v47 = vpop.f32.mrf.mxu0  ;;  %4055 = vmatpush.bf16.msra.mxu3 %v5360_v19 }
 0x38a   : > { %v2471_v20 = vadd.f32 %v6645_v50, %v2435_v38 }
 0x38b   : > { %v1928_v21 = vpop.f32.mrf.mxu2 }
 0x38c   : > { %v2162_v24 = vpop.f32.mrf.mxu3  ;;  %v2503_v49 = vmax.f32 %v2471_v20, 0.0  ;;  %v1968_v56 = vadd.f32 %v1928_v21, %v1733_v52  ;;  %v7794_v52 = vld [vmem:[#allocation52_spill] sm:$0xff] }
 0x38d   : > { %v2675_v26 = vld [vmem:[#allocation3 + $0x141] sm:$0xff]  ;;  %v6877_v4 = vpop.f32.mrf.mxu1  ;;  %v1735_v20 = vadd.f32 %v7794_v52, %v6627_v13  ;;  %v5362_v13 = vld [vmem:[#allocation9 + $0x78] sm:$0xff] }
 0x38e   : > { %2590 = vst.msk [vmem:[#allocation3 + $0x151] sm:$0xff] %vm311_vm0, %v2503_v49  ;;  %v2202_v45 = vadd.f32 %v2162_v24, %v1968_v56  ;;  %v6879_v22 = vpack.c.bf16 %v2675_v26, %v2674_v61  ;;  %4289 = vmatpush.bf16.msra.mxu0 %v5362_v13  ;;  %v3252_v13 = vld [vmem:[#allocation3 + $0xf8] sm:$0xff] }
 0x390   : > { %7791 = vst [vmem:[#allocation51_spill] sm:$0xff] %v6879_v22  ;;  %v2436_v60 = vadd.f32 %v2396_v55, %v2202_v45  ;;  %5145 = vmatmul.msk.bf16.gmra.mxu2 %vm311_vm0, %v6837_v10  ;;  %5128 = vmatmul.msk.bf16.gmra.mxu1 %vm311_vm0, %v6879_v22 }
 0x391   : > { %v2404_v62 = vpop.f32.mrf.mxu0  ;;  %5169 = vmatmul.msk.bf16.gmra.mxu3 %vm311_vm0, %v6881_v25 }
 0x392   : > { %v2472_v48 = vadd.f32 %v6645_v50, %v2436_v60 }
 0x393   : > { %v1931_v1 = vpop.f32.mrf.mxu2 }
 0x394   : > { %5194 = vmatmul.msk.bf16.gmra.mxu0 %vm311_vm0, %v6887_v40  ;;  %v2165_v41 = vpop.f32.mrf.mxu3  ;;  %v2504_v2 = vmax.f32 %v2472_v48, 0.0  ;;  %v1969_v55 = vadd.f32 %v1931_v1, %v6620_v12  ;;  %v3014_v12 = vld [vmem:[#allocation3 + $0xb2] sm:$0xff] }
 0x395   : > { %v6896_v33 = vpop.f32.mrf.mxu1  ;;  %v2676_v61 = vld [vmem:[#allocation3 + $0x151] sm:$0xff]  ;;  %v6906_v60 = vpack.c.bf16 %v3014_v12, %v3013_v32 }
 0x396   : > { %2591 = vst.msk [vmem:[#allocation3 + $0x159] sm:$0xff] %vm311_vm0, %v2504_v2  ;;  %v2203_v37 = vadd.f32 %v2165_v41, %v1969_v55  ;;  %v3249_v1 = vld [vmem:[#allocation3 + $0xd8] sm:$0xff]  ;;  %v5364_v55 = vld [vmem:[#allocation9 + $0x88] sm:$0xff] }
 0x397   : > { %7796 = vst [vmem:[#allocation56_spill] sm:$0xff] %v6906_v60  ;;  %v6912_v2 = vpack.c.bf16 %v3250_v58, %v3249_v1  ;;  %4523 = vmatpush.bf16.msra.mxu1 %v5364_v55 }
 0x398   : > { %v2437_v6 = vadd.f32 %v2399_v54, %v2203_v37 }
 0x399   : > { %v2406_v38 = vpop.f32.mrf.mxu0  ;;  %7797 = vst [vmem:[#allocation46_spill] sm:$0xff] %v6912_v2 }
 0x39a   : > { %v2473_v21 = vadd.f32 %v6645_v50, %v2437_v6 }
 0x39b   : > { %v1933_v24 = vpop.f32.mrf.mxu2 }
 0x39c   : > { %v2167_v31 = vpop.f32.mrf.mxu3  ;;  %v2505_v49 = vmax.f32 %v2473_v21, 0.0  ;;  %v1970_v56 = vadd.f32 %v1933_v24, %v1735_v20 }
 0x39d   : > { %v2677_v26 = vld [vmem:[#allocation3 + $0x159] sm:$0xff]  ;;  %v6902_v54 = vpop.f32.mrf.mxu1 }
 0x39e   : > { %2592 = vst.msk [vmem:[#allocation3 + $0x169] sm:$0xff] %vm311_vm0, %v2505_v49  ;;  %v2204_v45 = vadd.f32 %v2167_v31, %v1970_v56  ;;  %v6904_v39 = vpack.c.bf16 %v2677_v26, %v2676_v61  ;;  %v1737_v31 = vadd.f32 %v6744_v34, %v6637_v46  ;;  %v3015_v56 = vld [vmem:[#allocation3 + $0xc2] sm:$0xff]  ;;  %v3016_v61 = vld [vmem:[#allocation3 + $0xca] sm:$0xff] }
 0x39f   : > { %v6931_v55 = vpack.c.bf16 %v3016_v61, %v3015_v56  ;;  %v3017_v61 = vld [vmem:[#allocation3 + $0xda] sm:$0xff] }
 0x3a0   : > { %7795 = vst [vmem:[#allocation55_spill] sm:$0xff] %v6904_v39  ;;  %v2438_v41 = vadd.f32 %v2401_v47, %v2204_v45  ;;  %5146 = vmatmul.msk.bf16.gmra.mxu2 %vm311_vm0, %v6862_v17  ;;  %5129 = vmatmul.msk.bf16.gmra.mxu1 %vm311_vm0, %v6904_v39 }
 0x3a1   : > { %v3355_v48 = vpop.f32.mrf.mxu0  ;;  %5170 = vmatmul.msk.bf16.gmra.mxu3 %vm311_vm0, %v6906_v60  ;;  %7799 = vst [vmem:[#allocation59_spill] sm:$0xff] %v6931_v55 }
 0x3a2   : > { %v2474_v37 = vadd.f32 %v6645_v50, %v2438_v41 }
 0x3a3   : > { %v1936_v28 = vpop.f32.mrf.mxu2 }
 0x3a4   : > { %5195 = vmatmul.msk.bf16.gmra.mxu0 %vm311_vm0, %v6912_v2  ;;  %v2170_v47 = vpop.f32.mrf.mxu3  ;;  %v2506_v19 = vmax.f32 %v2474_v37, 0.0  ;;  %v1971_v6 = vadd.f32 %v1936_v28, %v6632_v51  ;;  %v5446_v28 = vld [vmem:[%s7650_s2] ss:$0 sm:$0xff] }
 0x3a5   : > { %v6921_v20 = vpop.f32.mrf.mxu1  ;;  %v2678_v45 = vld [vmem:[#allocation3 + $0x169] sm:$0xff] }
 0x3a6   : > { %2593 = vst.msk [vmem:[#allocation3 + $0x171] sm:$0xff] %vm311_vm0, %v2506_v19  ;;  %v2205_v52 = vadd.f32 %v2170_v47, %v1971_v6 }
 0x3a8   : > { %v2439_v24 = vadd.f32 %v2404_v62, %v2205_v52 }
 0x3a9   : > { %v3357_v21 = vpop.f32.mrf.mxu0 }
 0x3aa   : > { %v2475_v32 = vadd.f32 %v6645_v50, %v2439_v24  ;;  %v3251_v50 = vld [vmem:[#allocation3 + $0xf0] sm:$0xff] }
 0x3ab   : > { %v1938_v12 = vpop.f32.mrf.mxu2  ;;  %v6937_v37 = vpack.c.bf16 %v3252_v13, %v3251_v50  ;;  %v3467_v50 = vld [vmem:[#allocation3 + $0x19] sm:$0xff] }
 0x3ac   : > { %v2172_v49 = vpop.f32.mrf.mxu3  ;;  %v2507_v26 = vmax.f32 %v2475_v32, 0.0  ;;  %v1972_v58 = vadd.f32 %v1938_v12, %v1737_v31 }
 0x3ad   : > { %v2679_v51 = vld [vmem:[#allocation3 + $0x171] sm:$0xff]  ;;  %v6927_v41 = vpop.f32.mrf.mxu1  ;;  %7800 = vst [vmem:[#allocation49_spill] sm:$0xff] %v6937_v37 }
 0x3ae   : > { %2594 = vst.msk [vmem:[#allocation3 + $0x181] sm:$0xff] %vm311_vm0, %v2507_v26  ;;  %v2206_v1 = vadd.f32 %v2172_v49, %v1972_v58  ;;  %v6929_v62 = vpack.c.bf16 %v2679_v51, %v2678_v45  ;;  %v3018_v26 = vld [vmem:[#allocation3 + $0xe2] sm:$0xff]  ;;  %v3254_v51 = vld [vmem:[#allocation3 + $0x110] sm:$0xff] }
 0x3af   : > { %v3468_v45 = vld [vmem:[#allocation3 + $0x21] sm:$0xff] }
 0x3b0   : > { %7798 = vst [vmem:[#allocation44_spill] sm:$0xff] %v6929_v62  ;;  %v2440_v34 = vadd.f32 %v2406_v38, %v2206_v1  ;;  %5147 = vmatmul.msk.bf16.gmra.mxu2 %vm311_vm0, %v6887_v40  ;;  %5130 = vmatmul.msk.bf16.gmra.mxu1 %vm311_vm0, %v6929_v62 }
 0x3b1   : > { %v3360_v46 = vpop.f32.mrf.mxu0  ;;  %5171 = vmatmul.msk.bf16.gmra.mxu3 %vm311_vm0, %v6931_v55 }
 0x3b2   : > { %v2476_v47 = vadd.f32 %v5446_v28, %v2440_v34  ;;  %v3499_v34 = vpack.c.bf16 %v3468_v45, %v3467_v50 }
 0x3b3   : > { %v2919_v38 = vpop.f32.mrf.mxu2 }
 0x3b4   : > { %5196 = vmatmul.msk.bf16.gmra.mxu0 %vm311_vm0, %v6937_v37  ;;  %v3121_v19 = vpop.f32.mrf.mxu3  ;;  %v2508_v6 = vmax.f32 %v2476_v47, 0.0  ;;  %v2920_v52 = vadd.f32 %v2919_v38, %v6751_v42  ;;  %v6955_v42 = vpack.c.bf16 %v3018_v26, %v3017_v61  ;;  %v3253_v47 = vld [vmem:[#allocation3 + $0x108] sm:$0xff] }
 0x3b5   : > { %v6948_v31 = vpop.f32.mrf.mxu1 }
 0x3b6   : > { %2595 = vst.msk [vmem:[#allocation3 + $0x189] sm:$0xff] %vm311_vm0, %v2508_v6  ;;  %v3201_v24 = vadd.f32 %v3121_v19, %v2920_v52 }
 0x3b7   : > { %7801 = vst [vmem:[#allocation47_spill] sm:$0xff] %v6955_v42 }
 0x3b8   : > { %v6950_v12 = vadd.f32 %v3355_v48, %v3201_v24  ;;  %v6961_v48 = vpack.c.bf16 %v3254_v51, %v3253_v47  ;;  %v3470_v51 = vld [vmem:[#allocation3 + $0x39] sm:$0xff] }
 0x3b9   : > { %v3362_v32 = vpop.f32.mrf.mxu0 }
 0x3ba   : > { %7802 = vst [vmem:[#allocation45_spill] sm:$0xff] %v6961_v48 }
 0x3bb   : > { %v2921_v49 = vpop.f32.mrf.mxu2 }
 0x3bc   : > { %v3123_v56 = vpop.f32.mrf.mxu3  ;;  %v2922_v58 = vadd.f32 %v2921_v49, %v6771_v0 }
 0x3bd   : > { %v6953_v1 = vpop.f32.mrf.mxu1 }
 0x3be   : > { %v3202_v13 = vadd.f32 %v3123_v56, %v2922_v58  ;;  %v3019_v58 = vld [vmem:[#allocation3 + $0xf2] sm:$0xff] }
 0x3c0   : > { %5148 = vmatmul.msk.bf16.gmra.mxu2 %vm311_vm0, %v6912_v2  ;;  %v6963_v0 = vadd.f32 %v3357_v21, %v3202_v13  ;;  %5211 = vmatmul.msk.bf16.vlgmr.msrb.gmra.mxu1 %vm311_vm0, %v3499_v34  ;;  %v3020_v21 = vld [vmem:[#allocation3 + $0xfa] sm:$0xff]  ;;  %v3256_v13 = vld [vmem:[#allocation3 + $0x128] sm:$0xff] }
 0x3c1   : > { %v3365_v28 = vpop.f32.mrf.mxu0  ;;  %5172 = vmatmul.msk.bf16.gmra.mxu3 %vm311_vm0, %v6955_v42  ;;  %v6976_v47 = vpack.c.bf16 %v3020_v21, %v3019_v58 }
 0x3c3   : > { %v2924_v38 = vpop.f32.mrf.mxu2  ;;  %7803 = vst [vmem:[#allocation48_spill] sm:$0xff] %v6976_v47 }
 0x3c4   : > { %5197 = vmatmul.msk.bf16.gmra.mxu0 %vm311_vm0, %v6961_v48  ;;  %v3126_v19 = vpop.f32.mrf.mxu3  ;;  %v2925_v6 = vadd.f32 %v2924_v38, %v6777_v14  ;;  %v3469_v14 = vld [vmem:[#allocation3 + $0x31] sm:$0xff] }
 0x3c5   : > { %v6969_v24 = vpop.f32.mrf.mxu1  ;;  %v6978_v38 = vpack.c.bf16 %v3470_v51, %v3469_v14 }
 0x3c6   : > { %v3203_v52 = vadd.f32 %v3126_v19, %v2925_v6  ;;  %v3255_v6 = vld [vmem:[#allocation3 + $0x120] sm:$0xff] }
 0x3c8   : > { %v6971_v56 = vadd.f32 %v3360_v46, %v3203_v52  ;;  %v6984_v46 = vpack.c.bf16 %v3256_v13, %v3255_v6 }
 0x3c9   : > { %v3367_v49 = vpop.f32.mrf.mxu0 }
 0x3ca   : > { %7804 = vst [vmem:[#allocation52_spill] sm:$0xff] %v6984_v46 }
 0x3cb   : > { %v2926_v61 = vpop.f32.mrf.mxu2 }
 0x3cc   : > { %v3128_v26 = vpop.f32.mrf.mxu3  ;;  %v2927_v45 = vadd.f32 %v2926_v61, %v6796_v16 }
 0x3cd   : > { %v6974_v34 = vpop.f32.mrf.mxu1 }
 0x3ce   : > { %v3204_v50 = vadd.f32 %v3128_v26, %v2927_v45 }
 0x3d0   : > { %5149 = vmatmul.msk.bf16.gmra.mxu2 %vm311_vm0, %v6937_v37  ;;  %v6986_v16 = vadd.f32 %v3362_v32, %v3204_v50  ;;  %5212 = vmatmul.msk.bf16.gmra.mxu1 %vm311_vm0, %v6978_v38  ;;  %v3021_v32 = vld [vmem:[#allocation3 + $0x10a] sm:$0xff]  ;;  %v3022_v50 = vld [vmem:[#allocation3 + $0x112] sm:$0xff]  ;;  %v3258_v37 = vld [vmem:[#allocation3 + $0x140] sm:$0xff] }
 0x3d1   : > { %v3370_v19 = vpop.f32.mrf.mxu0  ;;  %5173 = vmatmul.msk.bf16.gmra.mxu3 %vm311_vm0, %v6976_v47  ;;  %v3472_v47 = vld [vmem:[#allocation3 + $0x51] sm:$0xff]  ;;  %v7000_v2 = vpack.c.bf16 %v3022_v50, %v3021_v32 }
 0x3d3   : > { %v2929_v52 = vpop.f32.mrf.mxu2  ;;  %7805 = vst [vmem:[#allocation60_spill] sm:$0xff] %v7000_v2 }
 0x3d4   : > { %5198 = vmatmul.msk.bf16.gmra.mxu0 %vm311_vm0, %v6984_v46  ;;  %v3131_v61 = vpop.f32.mrf.mxu3  ;;  %v2930_v26 = vadd.f32 %v2929_v52, %v6802_v9  ;;  %v3471_v9 = vld [vmem:[#allocation3 + $0x49] sm:$0xff] }
 0x3d5   : > { %v6993_v21 = vpop.f32.mrf.mxu1  ;;  %v7002_v52 = vpack.c.bf16 %v3472_v47, %v3471_v9 }
 0x3d6   : > { %v3205_v58 = vadd.f32 %v3131_v61, %v2930_v26  ;;  %v3257_v26 = vld [vmem:[#allocation3 + $0x138] sm:$0xff] }
 0x3d8   : > { %v6995_v51 = vadd.f32 %v3365_v28, %v3205_v58  ;;  %v7008_v28 = vpack.c.bf16 %v3258_v37, %v3257_v26 }
 0x3d9   : > { %v3372_v45 = vpop.f32.mrf.mxu0 }
 0x3da   : > { %7806 = vst [vmem:[#allocation61_spill] sm:$0xff] %v7008_v28 }
 0x3db   : > { %v2931_v13 = vpop.f32.mrf.mxu2 }
 0x3dc   : > { %v3133_v14 = vpop.f32.mrf.mxu3  ;;  %v2932_v6 = vadd.f32 %v2931_v13, %v6821_v57 }
 0x3dd   : > { %v6998_v62 = vpop.f32.mrf.mxu1 }
 0x3de   : > { %v3206_v42 = vadd.f32 %v3133_v14, %v2932_v6 }
 0x3e0   : > { %5150 = vmatmul.msk.bf16.gmra.mxu2 %vm311_vm0, %v6961_v48  ;;  %v7010_v57 = vadd.f32 %v3367_v49, %v3206_v42  ;;  %5213 = vmatmul.msk.bf16.gmra.mxu1 %vm311_vm0, %v7002_v52  ;;  %v3023_v42 = vld [vmem:[#allocation3 + $0x122] sm:$0xff]  ;;  %v3024_v49 = vld [vmem:[#allocation3 + $0x12a] sm:$0xff]  ;;  %v3260_v48 = vld [vmem:[#allocation3 + $0x158] sm:$0xff] }
 0x3e1   : > { %v3375_v61 = vpop.f32.mrf.mxu0  ;;  %5174 = vmatmul.msk.bf16.gmra.mxu3 %vm311_vm0, %v7000_v2  ;;  %v3474_v2 = vld [vmem:[#allocation3 + $0x69] sm:$0xff]  ;;  %v7024_v40 = vpack.c.bf16 %v3024_v49, %v3023_v42 }
 0x3e3   : > { %v2934_v47 = vpop.f32.mrf.mxu2  ;;  %7807 = vst [vmem:[#allocation62_spill] sm:$0xff] %v7024_v40 }
 0x3e4   : > { %5199 = vmatmul.msk.bf16.gmra.mxu0 %vm311_vm0, %v7008_v28  ;;  %v3136_v58 = vpop.f32.mrf.mxu3  ;;  %v2935_v13 = vadd.f32 %v2934_v47, %v6827_v43  ;;  %v3473_v43 = vld [vmem:[#allocation3 + $0x61] sm:$0xff] }
 0x3e5   : > { %v7017_v32 = vpop.f32.mrf.mxu1  ;;  %v7026_v47 = vpack.c.bf16 %v3474_v2, %v3473_v43 }
 0x3e6   : > { %v3207_v14 = vadd.f32 %v3136_v58, %v2935_v13  ;;  %v3259_v13 = vld [vmem:[#allocation3 + $0x150] sm:$0xff] }
 0x3e8   : > { %v7019_v6 = vadd.f32 %v3370_v19, %v3207_v14  ;;  %v7032_v19 = vpack.c.bf16 %v3260_v48, %v3259_v13 }
 0x3e9   : > { %v3377_v50 = vpop.f32.mrf.mxu0 }
 0x3ea   : > { %7808 = vst [vmem:[#allocation63_spill] sm:$0xff] %v7032_v19 }
 0x3eb   : > { %v2936_v37 = vpop.f32.mrf.mxu2 }
 0x3ec   : > { %v3138_v9 = vpop.f32.mrf.mxu3  ;;  %v2937_v26 = vadd.f32 %v2936_v37, %v6846_v18 }
 0x3ed   : > { %v7022_v39 = vpop.f32.mrf.mxu1 }
 0x3ee   : > { %v3208_v55 = vadd.f32 %v3138_v9, %v2937_v26 }
 0x3f0   : > { %5151 = vmatmul.msk.bf16.gmra.mxu2 %vm311_vm0, %v6984_v46  ;;  %v7034_v18 = vadd.f32 %v3372_v45, %v3208_v55  ;;  %5214 = vmatmul.msk.bf16.gmra.mxu1 %vm311_vm0, %v7026_v47  ;;  %v3025_v55 = vld [vmem:[#allocation3 + $0x13a] sm:$0xff]  ;;  %v3026_v45 = vld [vmem:[#allocation3 + $0x142] sm:$0xff]  ;;  %v3262_v46 = vld [vmem:[#allocation3 + $0x170] sm:$0xff] }
 0x3f1   : > { %v3380_v58 = vpop.f32.mrf.mxu0  ;;  %5175 = vmatmul.msk.bf16.gmra.mxu3 %vm311_vm0, %v7024_v40  ;;  %v3476_v40 = vld [vmem:[#allocation3 + $0x81] sm:$0xff]  ;;  %v7048_v17 = vpack.c.bf16 %v3026_v45, %v3025_v55 }
 0x3f2   : > { %7809 = vst [vmem:[#allocation64_spill] sm:$0xff] %v7034_v18 }
 0x3f3   : > { %v2939_v2 = vpop.f32.mrf.mxu2  ;;  %7811 = vst [vmem:[#allocation66_spill] sm:$0xff] %v7048_v17 }
 0x3f4   : > { %5200 = vmatmul.msk.bf16.gmra.mxu0 %vm311_vm0, %v7032_v19  ;;  %v3141_v14 = vpop.f32.mrf.mxu3  ;;  %v2940_v37 = vadd.f32 %v2939_v2, %v6852_v53  ;;  %v3475_v53 = vld [vmem:[#allocation3 + $0x79] sm:$0xff] }
 0x3f5   : > { %v7041_v42 = vpop.f32.mrf.mxu1  ;;  %v7050_v2 = vpack.c.bf16 %v3476_v40, %v3475_v53 }
 0x3f6   : > { %v3209_v9 = vadd.f32 %v3141_v14, %v2940_v37  ;;  %v3261_v37 = vld [vmem:[#allocation3 + $0x168] sm:$0xff] }
 0x3f8   : > { %v7043_v26 = vadd.f32 %v3375_v61, %v3209_v9  ;;  %v7056_v61 = vpack.c.bf16 %v3262_v46, %v3261_v37 }
 0x3f9   : > { %v3382_v49 = vpop.f32.mrf.mxu0 }
 0x3fa   : > { %7810 = vst [vmem:[#allocation65_spill] sm:$0xff] %v7043_v26 }
 0x3fb   : > { %v2941_v48 = vpop.f32.mrf.mxu2  ;;  %7812 = vst [vmem:[#allocation67_spill] sm:$0xff] %v7056_v61 }
 0x3fc   : > { %v3143_v43 = vpop.f32.mrf.mxu3  ;;  %v2942_v13 = vadd.f32 %v2941_v48, %v6871_v59 }
 0x3fd   : > { %v7046_v22 = vpop.f32.mrf.mxu1 }
 0x3fe   : > { %v3210_v60 = vadd.f32 %v3143_v43, %v2942_v13 }
 0x400   : > { %5152 = vmatmul.msk.bf16.gmra.mxu2 %vm311_vm0, %v7008_v28  ;;  %v7058_v59 = vadd.f32 %v3377_v50, %v3210_v60  ;;  %5215 = vmatmul.msk.bf16.gmra.mxu1 %vm311_vm0, %v7050_v2  ;;  %v3027_v60 = vld [vmem:[#allocation3 + $0x152] sm:$0xff]  ;;  %v3028_v50 = vld [vmem:[#allocation3 + $0x15a] sm:$0xff] }
 0x401   : > { %v3385_v14 = vpop.f32.mrf.mxu0  ;;  %5176 = vmatmul.msk.bf16.gmra.mxu3 %vm311_vm0, %v7048_v17  ;;  %v3478_v17 = vld [vmem:[#allocation3 + $0x99] sm:$0xff]  ;;  %v5361_v28 = vld [vmem:[#allocation9 + $0x70] sm:$0xff]  ;;  %v7072_v18 = vpack.c.bf16 %v3028_v50, %v3027_v60 }
 0x402   : > { %7813 = vst [vmem:[#allocation68_spill] sm:$0xff] %v7058_v59  ;;  %v3264_v59 = vld [vmem:[#allocation3 + $0x188] sm:$0xff]  ;;  %4290 = vmatpush.bf16.msra.mxu0 %v5361_v28 }
 0x403   : > { %v2944_v40 = vpop.f32.mrf.mxu2  ;;  %7814 = vst [vmem:[#allocation69_spill] sm:$0xff] %v7072_v18 }
 0x404   : > { %5201 = vmatmul.msk.bf16.gmra.mxu0 %vm311_vm0, %v7056_v61  ;;  %v3146_v9 = vpop.f32.mrf.mxu3  ;;  %v2945_v48 = vadd.f32 %v2944_v40, %v6877_v4  ;;  %v3477_v4 = vld [vmem:[#allocation3 + $0x91] sm:$0xff] }
 0x405   : > { %v7065_v55 = vpop.f32.mrf.mxu1  ;;  %v5357_v40 = vld [vmem:[#allocation9 + $0x50] sm:$0xff] }
 0x406   : > { %v3211_v43 = vadd.f32 %v3146_v9, %v2945_v48  ;;  %v5359_v9 = vld [vmem:[#allocation9 + $0x60] sm:$0xff]  ;;  %3821 = vmatpush.bf16.msra.mxu2 %v5357_v40 }
 0x407   : > { %4056 = vmatpush.bf16.msra.mxu3 %v5359_v9 }
 0x408   : > { %v7067_v13 = vadd.f32 %v3380_v58, %v3211_v43  ;;  %v7074_v58 = vpack.c.bf16 %v3478_v17, %v3477_v4  ;;  %v3263_v43 = vld [vmem:[#allocation3 + $0x180] sm:$0xff]  ;;  %v3029_v4 = vld [vmem:[#allocation3 + $0x16a] sm:$0xff] }
 0x409   : > { %v3387_v45 = vpop.f32.mrf.mxu0 }
 0x40b   : > { %v2946_v46 = vpop.f32.mrf.mxu2 }
 0x40c   : > { %v3148_v53 = vpop.f32.mrf.mxu3  ;;  %v2947_v37 = vadd.f32 %v2946_v46, %v6896_v33  ;;  %v7080_v33 = vpack.c.bf16 %v3264_v59, %v3263_v43  ;;  %v3030_v43 = vld [vmem:[#allocation3 + $0x172] sm:$0xff] }
 0x40d   : > { %v7070_v26 = vpop.f32.mrf.mxu1  ;;  %v7096_v9 = vpack.c.bf16 %v3030_v43, %v3029_v4  ;;  %v3937_v4 = vld [vmem:[#allocation3 + $0x38] sm:$0xff]  ;;  %v3936_v43 = vld [vmem:[#allocation3 + $0x30] sm:$0xff] }
 0x40e   : > { %v3212_v25 = vadd.f32 %v3148_v53, %v2947_v37  ;;  %7815 = vst [vmem:[#allocation70_spill] sm:$0xff] %v7080_v33 }
 0x40f   : > { %7816 = vst [vmem:[#allocation71_spill] sm:$0xff] %v7096_v9 }
 0x410   : > { %5153 = vmatmul.msk.bf16.gmra.mxu2 %vm311_vm0, %v7032_v19  ;;  %v7082_v46 = vadd.f32 %v3382_v49, %v3212_v25  ;;  %5216 = vmatmul.msk.bf16.gmra.mxu1 %vm311_vm0, %v7074_v58 }
 0x411   : > { %v3390_v48 = vpop.f32.mrf.mxu0  ;;  %5177 = vmatmul.msk.bf16.gmra.mxu3 %vm311_vm0, %v7072_v18 }
 0x413   : > { %v2949_v17 = vpop.f32.mrf.mxu2 }
 0x414   : > { %5202 = vmatmul.msk.bf16.gmra.mxu0 %vm311_vm0, %v7080_v33  ;;  %v3151_v28 = vpop.f32.mrf.mxu3  ;;  %v2950_v53 = vadd.f32 %v2949_v17, %v6902_v54 }
 0x415   : > { %v7089_v50 = vpop.f32.mrf.mxu1 }
 0x416   : > { %v3213_v60 = vadd.f32 %v3151_v28, %v2950_v53 }
 0x418   : > { %v7091_v59 = vadd.f32 %v3385_v14, %v3213_v60  ;;  %v5363_v14 = vld [vmem:[#allocation9 + $0x80] sm:$0xff] }
 0x419   : > { %v3392_v37 = vpop.f32.mrf.mxu0  ;;  %4524 = vmatpush.bf16.msra.mxu1 %v5363_v14 }
 0x41b   : > { %v2951_v25 = vpop.f32.mrf.mxu2 }
 0x41c   : > { %v3153_v49 = vpop.f32.mrf.mxu3  ;;  %v2952_v40 = vadd.f32 %v2951_v25, %v6921_v20 }
 0x41d   : > { %v7094_v19 = vpop.f32.mrf.mxu1 }
 0x41e   : > { %v3214_v18 = vadd.f32 %v3153_v49, %v2952_v40 }
 0x420   : > { %5154 = vmatmul.msk.bf16.gmra.mxu2 %vm311_vm0, %v7056_v61  ;;  %v7102_v54 = vadd.f32 %v3387_v45, %v3214_v18  ;;  %5217 = vmatmul.msk.bf16.gmra.mxu1 %vm311_vm0, %v6733_v7 }
 0x421   : > { %v3395_v33 = vpop.f32.mrf.mxu0  ;;  %5178 = vmatmul.msk.bf16.gmra.mxu3 %vm311_vm0, %v7096_v9 }
 0x423   : > { %v2954_v20 = vpop.f32.mrf.mxu2 }
 0x424   : > { %5283 = vmatmul.msk.bf16.vlgmr.msra.gmra.mxu0 %vm311_vm0, %v6978_v38  ;;  %v3156_v17 = vpop.f32.mrf.mxu3  ;;  %v2955_v28 = vadd.f32 %v2954_v20, %v6927_v41  ;;  %v3968_v38 = vpack.c.bf16 %v3937_v4, %v3936_v43 }
 0x425   : > { %v7109_v60 = vpop.f32.mrf.mxu1 }
 0x426   : > { %v3215_v53 = vadd.f32 %v3156_v17, %v2955_v28 }
 0x428   : > { %v7111_v49 = vadd.f32 %v3390_v48, %v3215_v53 }
 0x429   : > { %v3397_v25 = vpop.f32.mrf.mxu0 }
 0x42b   : > { %v2956_v18 = vpop.f32.mrf.mxu2 }
 0x42c   : > { %v3158_v45 = vpop.f32.mrf.mxu3  ;;  %v2957_v7 = vadd.f32 %v2956_v18, %v6948_v31 }
 0x42d   : > { %v7114_v9 = vpop.f32.mrf.mxu1 }
 0x42e   : > { %v3216_v40 = vadd.f32 %v3158_v45, %v2957_v7 }
 0x430   : > { %5235 = vmatmul.msk.bf16.vlgmr.msra.gmra.mxu2 %vm311_vm0, %v6756_v30  ;;  %v7119_v41 = vadd.f32 %v3392_v37, %v3216_v40  ;;  %5218 = vmatmul.msk.bf16.gmra.mxu1 %vm311_vm0, %v6754_v8 }
 0x431   : > { %v3400_v61 = vpop.f32.mrf.mxu0  ;;  %5259 = vmatmul.msk.bf16.vlgmr.msra.gmra.mxu3 %vm311_vm0, %v3968_v38 }
 0x433   : > { %v2959_v31 = vpop.f32.mrf.mxu2 }
 0x434   : > { %5284 = vmatmul.msk.bf16.gmra.mxu0 %vm311_vm0, %v7002_v52  ;;  %v3161_v48 = vpop.f32.mrf.mxu3  ;;  %v2960_v14 = vadd.f32 %v2959_v31, %v6953_v1 }
 0x435   : > { %v7126_v17 = vpop.f32.mrf.mxu1 }
 0x436   : > { %v3217_v20 = vadd.f32 %v3161_v48, %v2960_v14 }
 0x438   : > { %v7128_v53 = vadd.f32 %v3395_v33, %v3217_v20 }
 0x439   : > { %v3402_v28 = vpop.f32.mrf.mxu0 }
 0x43b   : > { %v2961_v30 = vpop.f32.mrf.mxu2 }
 0x43c   : > { %v3163_v18 = vpop.f32.mrf.mxu3  ;;  %v2962_v37 = vadd.f32 %v2961_v30, %v6969_v24 }
 0x43d   : > { %v3589_v4 = vpop.f32.mrf.mxu1 }
 0x43e   : > { %v3218_v45 = vadd.f32 %v3163_v18, %v2962_v37  ;;  %v7132_v8 = vadd.f32 %v3589_v4, %v6950_v12 }
 0x440   : > { %5236 = vmatmul.msk.bf16.gmra.mxu2 %vm311_vm0, %v6781_v29  ;;  %v7138_v1 = vadd.f32 %v3397_v25, %v3218_v45  ;;  %5219 = vmatmul.msk.bf16.gmra.mxu1 %vm311_vm0, %v6779_v5 }
 0x441   : > { %v3405_v52 = vpop.f32.mrf.mxu0  ;;  %5260 = vmatmul.msk.bf16.gmra.mxu3 %vm311_vm0, %v6762_v35 }
 0x443   : > { %v2964_v24 = vpop.f32.mrf.mxu2 }
 0x444   : > { %5285 = vmatmul.msk.bf16.gmra.mxu0 %vm311_vm0, %v7026_v47  ;;  %v3166_v33 = vpop.f32.mrf.mxu3  ;;  %v2965_v12 = vadd.f32 %v2964_v24, %v6974_v34 }
 0x445   : > { %v3591_v43 = vpop.f32.mrf.mxu1 }
 0x446   : > { %v3219_v7 = vadd.f32 %v3166_v33, %v2965_v12  ;;  %v7146_v40 = vadd.f32 %v3591_v43, %v6963_v0 }
 0x448   : > { %v7148_v38 = vadd.f32 %v3400_v61, %v3219_v7 }
 0x449   : > { %v3407_v29 = vpop.f32.mrf.mxu0 }
 0x44b   : > { %v2966_v35 = vpop.f32.mrf.mxu2 }
 0x44c   : > { %v3168_v25 = vpop.f32.mrf.mxu3  ;;  %v2967_v31 = vadd.f32 %v2966_v35, %v6993_v21 }
 0x44d   : > { %v3594_v48 = vpop.f32.mrf.mxu1 }
 0x44e   : > { %v3220_v5 = vadd.f32 %v3168_v25, %v2967_v31  ;;  %v7152_v47 = vadd.f32 %v3594_v48, %v6971_v56 }
 0x450   : > { %5237 = vmatmul.msk.bf16.gmra.mxu2 %vm311_vm0, %v6806_v3  ;;  %v7158_v0 = vadd.f32 %v3402_v28, %v3220_v5  ;;  %5220 = vmatmul.msk.bf16.gmra.mxu1 %vm311_vm0, %v6804_v27 }
 0x451   : > { %v3410_v14 = vpop.f32.mrf.mxu0  ;;  %5261 = vmatmul.msk.bf16.gmra.mxu3 %vm311_vm0, %v6787_v63 }
 0x453   : > { %v2969_v34 = vpop.f32.mrf.mxu2 }
 0x454   : > { %5286 = vmatmul.msk.bf16.gmra.mxu0 %vm311_vm0, %v7050_v2  ;;  %v3171_v21 = vpop.f32.mrf.mxu3  ;;  %v2970_v56 = vadd.f32 %v2969_v34, %v6998_v62  ;;  %v7817_v34 = vld [vmem:[#allocation64_spill] sm:$0xff] }
 0x455   : > { %v3596_v20 = vpop.f32.mrf.mxu1 }
 0x456   : > { %v3221_v61 = vadd.f32 %v3171_v21, %v2970_v56  ;;  %v7166_v30 = vadd.f32 %v3596_v20, %v6986_v16 }
 0x458   : > { %v7168_v18 = vadd.f32 %v3405_v52, %v3221_v61 }
 0x459   : > { %v3412_v3 = vpop.f32.mrf.mxu0 }
 0x45b   : > { %v2971_v63 = vpop.f32.mrf.mxu2 }
 0x45c   : > { %v3173_v28 = vpop.f32.mrf.mxu3  ;;  %v2972_v37 = vadd.f32 %v2971_v63, %v7017_v32 }
 0x45d   : > { %v3599_v45 = vpop.f32.mrf.mxu1 }
 0x45e   : > { %v3222_v27 = vadd.f32 %v3173_v28, %v2972_v37  ;;  %v7172_v2 = vadd.f32 %v3599_v45, %v6995_v51  ;;  %v7818_v28 = vld [vmem:[#allocation65_spill] sm:$0xff]  ;;  %v7820_v45 = vld [vmem:[#allocation50_spill] sm:$0xff] }
 0x460   : > { %5238 = vmatmul.msk.bf16.gmra.mxu2 %vm311_vm0, %v6831_v11  ;;  %v7178_v62 = vadd.f32 %v3407_v29, %v3222_v27  ;;  %5221 = vmatmul.msk.bf16.gmra.mxu1 %vm311_vm0, %v6829_v23  ;;  %v4181_v23 = vld [vmem:[#allocation3 + $0xb1] sm:$0xff]  ;;  %v4182_v27 = vld [vmem:[#allocation3 + $0xc1] sm:$0xff] }
 0x461   : > { %v3415_v4 = vpop.f32.mrf.mxu0  ;;  %5262 = vmatmul.msk.bf16.gmra.mxu3 %vm311_vm0, %v6812_v15 }
 0x463   : > { %v2974_v16 = vpop.f32.mrf.mxu2 }
 0x464   : > { %5287 = vmatmul.msk.bf16.gmra.mxu0 %vm311_vm0, %v7074_v58  ;;  %v3176_v32 = vpop.f32.mrf.mxu3  ;;  %v2975_v51 = vadd.f32 %v2974_v16, %v7022_v39  ;;  %v4180_v39 = vld [vmem:[#allocation3 + $0xa9] sm:$0xff] }
 0x465   : > { %v3601_v24 = vpop.f32.mrf.mxu1 }
 0x466   : > { %v3223_v52 = vadd.f32 %v3176_v32, %v2975_v51  ;;  %v7186_v33 = vadd.f32 %v3601_v24, %v7010_v57  ;;  %v4207_v57 = vpack.c.bf16 %v4181_v23, %v4180_v39  ;;  %v7821_v51 = vld [vmem:[#allocation51_spill] sm:$0xff] }
 0x468   : > { %v7188_v12 = vadd.f32 %v3410_v14, %v3223_v52 }
 0x469   : > { %v3417_v11 = vpop.f32.mrf.mxu0 }
 0x46b   : > { %v2976_v15 = vpop.f32.mrf.mxu2 }
 0x46c   : > { %v3178_v7 = vpop.f32.mrf.mxu3  ;;  %v2977_v43 = vadd.f32 %v2976_v15, %v7041_v42 }
 0x46d   : > { %v3604_v35 = vpop.f32.mrf.mxu1 }
 0x46e   : > { %v3224_v29 = vadd.f32 %v3178_v7, %v2977_v43  ;;  %v7192_v58 = vadd.f32 %v3604_v35, %v7019_v6  ;;  %v7822_v43 = vld [vmem:[#allocation68_spill] sm:$0xff] }
 0x470   : > { %5239 = vmatmul.msk.bf16.gmra.mxu2 %vm311_vm0, %v6856_v36  ;;  %v7198_v31 = vadd.f32 %v3412_v3, %v3224_v29  ;;  %5222 = vmatmul.msk.bf16.gmra.mxu1 %vm311_vm0, %v6854_v44  ;;  %v4183_v3 = vld [vmem:[#allocation3 + $0xc9] sm:$0xff] }
 0x471   : > { %v3420_v25 = vpop.f32.mrf.mxu0  ;;  %5263 = vmatmul.msk.bf16.gmra.mxu3 %vm311_vm0, %v6837_v10 }
 0x473   : > { %v2979_v42 = vpop.f32.mrf.mxu2 }
 0x474   : > { %5288 = vmatmul.msk.bf16.gmra.mxu0 %vm311_vm0, %v4207_v57  ;;  %v3181_v5 = vpop.f32.mrf.mxu3  ;;  %v2980_v6 = vadd.f32 %v2979_v42, %v7046_v22  ;;  %v7819_v22 = vld [vmem:[#allocation53_spill] sm:$0xff] }
 0x475   : > { %v3606_v14 = vpop.f32.mrf.mxu1  ;;  %v4185_v42 = vld [vmem:[#allocation3 + $0xe1] sm:$0xff] }
 0x476   : > { %v3225_v48 = vadd.f32 %v3181_v5, %v2980_v6  ;;  %v7205_v21 = vadd.f32 %v3606_v14, %v7817_v34  ;;  %v4184_v14 = vld [vmem:[#allocation3 + $0xd9] sm:$0xff]  ;;  %v7824_v34 = vld [vmem:[#allocation54_spill] sm:$0xff] }
 0x478   : > { %v7207_v56 = vadd.f32 %v3415_v4, %v3225_v48  ;;  %v4208_v4 = vpack.c.bf16 %v4183_v3, %v4182_v27 }
 0x479   : > { %v3422_v36 = vpop.f32.mrf.mxu0 }
 0x47b   : > { %v2981_v10 = vpop.f32.mrf.mxu2 }
 0x47c   : > { %v3183_v61 = vpop.f32.mrf.mxu3  ;;  %v2982_v20 = vadd.f32 %v2981_v10, %v7065_v55 }
 0x47d   : > { %v3609_v63 = vpop.f32.mrf.mxu1 }
 0x47e   : > { %v3226_v44 = vadd.f32 %v3183_v61, %v2982_v20  ;;  %v7211_v37 = vadd.f32 %v3609_v63, %v7818_v28  ;;  %v7825_v61 = vld [vmem:[#allocation55_spill] sm:$0xff] }
 0x480   : > { %5240 = vmatmul.msk.bf16.gmra.mxu2 %vm311_vm0, %v7819_v22  ;;  %v7217_v32 = vadd.f32 %v3417_v11, %v3226_v44  ;;  %5223 = vmatmul.msk.bf16.gmra.mxu1 %vm311_vm0, %v7821_v51 }
 0x481   : > { %5264 = vmatmul.msk.bf16.gmra.mxu3 %vm311_vm0, %v7820_v45  ;;  %v3425_v16 = vpop.f32.mrf.mxu0 }
 0x483   : > { %v2984_v55 = vpop.f32.mrf.mxu2 }
 0x484   : > { %5289 = vmatmul.msk.bf16.gmra.mxu0 %vm311_vm0, %v4208_v4  ;;  %v3186_v52 = vpop.f32.mrf.mxu3  ;;  %v2985_v24 = vadd.f32 %v2984_v55, %v7070_v26  ;;  %v7823_v26 = vld [vmem:[#allocation56_spill] sm:$0xff] }
 0x485   : > { %v3611_v7 = vpop.f32.mrf.mxu1  ;;  %v4187_v4 = vld [vmem:[#allocation3 + $0xf9] sm:$0xff] }
 0x486   : > { %v3227_v15 = vadd.f32 %v3186_v52, %v2985_v24  ;;  %v7224_v23 = vadd.f32 %v3611_v7, %v7822_v43  ;;  %v7827_v7 = vld [vmem:[#allocation46_spill] sm:$0xff]  ;;  %v7828_v43 = vld [vmem:[#allocation44_spill] sm:$0xff] }
 0x488   : > { %v7226_v29 = vadd.f32 %v3420_v25, %v3227_v15  ;;  %v4209_v25 = vpack.c.bf16 %v4185_v42, %v4184_v14  ;;  %v7826_v15 = vld [vmem:[#allocation59_spill] sm:$0xff] }
 0x489   : > { %v3427_v35 = vpop.f32.mrf.mxu0 }
 0x48b   : > { %v2986_v39 = vpop.f32.mrf.mxu2 }
 0x48c   : > { %v3188_v11 = vpop.f32.mrf.mxu3  ;;  %v2987_v57 = vadd.f32 %v2986_v39, %v7089_v50 }
 0x48d   : > { %v3614_v6 = vpop.f32.mrf.mxu1 }
 0x48e   : > { %v3228_v5 = vadd.f32 %v3188_v11, %v2987_v57  ;;  %v7230_v48 = vadd.f32 %v3614_v6, %v7067_v13 }
 0x490   : > { %5241 = vmatmul.msk.bf16.gmra.mxu2 %vm311_vm0, %v7823_v26  ;;  %v7236_v10 = vadd.f32 %v3422_v36, %v3228_v5  ;;  %5224 = vmatmul.msk.bf16.gmra.mxu1 %vm311_vm0, %v7825_v61 }
 0x491   : > { %5265 = vmatmul.msk.bf16.gmra.mxu3 %vm311_vm0, %v7824_v34  ;;  %v3430_v3 = vpop.f32.mrf.mxu0  ;;  %v3498_v34 = vld [vmem:[#allocation3 + $0x189] sm:$0xff] }
 0x493   : > { %v2989_v50 = vpop.f32.mrf.mxu2 }
 0x494   : > { %5290 = vmatmul.msk.bf16.gmra.mxu0 %vm311_vm0, %v4209_v25  ;;  %v3191_v20 = vpop.f32.mrf.mxu3  ;;  %v2990_v13 = vadd.f32 %v2989_v50, %v7094_v19  ;;  %v4186_v19 = vld [vmem:[#allocation3 + $0xf1] sm:$0xff] }
 0x495   : > { %v3616_v63 = vpop.f32.mrf.mxu1  ;;  %v4189_v25 = vld [vmem:[#allocation3 + $0x111] sm:$0xff] }
 0x496   : > { %v3229_v44 = vadd.f32 %v3191_v20, %v2990_v13  ;;  %v7243_v28 = vadd.f32 %v3616_v63, %v7082_v46  ;;  %v4210_v46 = vpack.c.bf16 %v4187_v4, %v4186_v19  ;;  %v3497_v20 = vld [vmem:[#allocation3 + $0x181] sm:$0xff] }
 0x498   : > { %v7245_v27 = vadd.f32 %v3425_v16, %v3229_v44  ;;  %v4188_v44 = vld [vmem:[#allocation3 + $0x109] sm:$0xff] }
 0x499   : > { %v3432_v52 = vpop.f32.mrf.mxu0  ;;  %v4211_v63 = vpack.c.bf16 %v4189_v25, %v4188_v44 }
 0x49b   : > { %v2991_v22 = vpop.f32.mrf.mxu2 }
 0x49c   : > { %v3193_v36 = vpop.f32.mrf.mxu3  ;;  %v2992_v45 = vadd.f32 %v2991_v22, %v7109_v60 }
 0x49d   : > { %v3619_v55 = vpop.f32.mrf.mxu1 }
 0x49e   : > { %v3230_v51 = vadd.f32 %v3193_v36, %v2992_v45  ;;  %v7249_v24 = vadd.f32 %v3619_v55, %v7091_v59 }
 0x4a0   : > { %5242 = vmatmul.msk.bf16.gmra.mxu2 %vm311_vm0, %v7826_v15  ;;  %v7255_v16 = vadd.f32 %v3427_v35, %v3230_v51  ;;  %5225 = vmatmul.msk.bf16.gmra.mxu1 %vm311_vm0, %v7828_v43  ;;  %v4404_v43 = vld [vmem:[#allocation3 + $0x32] sm:$0xff] }
 0x4a1   : > { %5266 = vmatmul.msk.bf16.gmra.mxu3 %vm311_vm0, %v7827_v7  ;;  %v4292_v5 = vpop.f32.mrf.mxu0 }
 0x4a3   : > { %v2994_v60 = vpop.f32.mrf.mxu2 }
 0x4a4   : > { %5291 = vmatmul.msk.bf16.gmra.mxu0 %vm311_vm0, %v4210_v46  ;;  %v3196_v39 = vpop.f32.mrf.mxu3  ;;  %v2995_v59 = vadd.f32 %v2994_v60, %v7114_v9  ;;  %v7270_v9 = vpack.c.bf16 %v3498_v34, %v3497_v20  ;;  %v4405_v60 = vld [vmem:[#allocation3 + $0x3a] sm:$0xff] }
 0x4a5   : > { %v3621_v57 = vpop.f32.mrf.mxu1 }
 0x4a6   : > { %v3231_v11 = vadd.f32 %v3196_v39, %v2995_v59  ;;  %v7262_v42 = vadd.f32 %v3621_v57, %v7102_v54  ;;  %v7829_v54 = vld [vmem:[#allocation47_spill] sm:$0xff]  ;;  %v4191_v39 = vld [vmem:[#allocation3 + $0x129] sm:$0xff] }
 0x4a8   : > { %v7264_v6 = vadd.f32 %v3430_v3, %v3231_v11  ;;  %v7830_v3 = vld [vmem:[#allocation49_spill] sm:$0xff] }
 0x4ab   : > { %v2996_v14 = vpop.f32.mrf.mxu2 }
 0x4ac   : > { %v3198_v35 = vpop.f32.mrf.mxu3  ;;  %v2997_v26 = vadd.f32 %v2996_v14, %v7126_v17  ;;  %v4294_v17 = vpop.f32.mrf.mxu0  ;;  %v4190_v14 = vld [vmem:[#allocation3 + $0x121] sm:$0xff] }
 0x4ad   : > { %v3624_v50 = vpop.f32.mrf.mxu1 }
 0x4ae   : > { %v3232_v61 = vadd.f32 %v3198_v35, %v2997_v26  ;;  %v7268_v13 = vadd.f32 %v3624_v50, %v7111_v49  ;;  %v7831_v35 = vld [vmem:[#allocation48_spill] sm:$0xff] }
 0x4b0   : > { %5243 = vmatmul.msk.bf16.gmra.mxu2 %vm311_vm0, %v7829_v54  ;;  %v7276_v22 = vadd.f32 %v3432_v52, %v3232_v61  ;;  %5226 = vmatmul.msk.bf16.gmra.mxu1 %vm311_vm0, %v7270_v9 }
 0x4b1   : > { %5267 = vmatmul.msk.bf16.gmra.mxu3 %vm311_vm0, %v7830_v3 }
 0x4b3   : > { %v3823_v49 = vpop.f32.mrf.mxu2 }
 0x4b4   : > { %5292 = vmatmul.msk.bf16.gmra.mxu0 %vm311_vm0, %v4211_v63  ;;  %v4058_v36 = vpop.f32.mrf.mxu3  ;;  %v3903_v45 = vadd.f32 %v3823_v49, %v7132_v8  ;;  %v4297_v46 = vpop.f32.mrf.mxu0  ;;  %v4436_v8 = vpack.c.bf16 %v4405_v60, %v4404_v43  ;;  %v4407_v49 = vld [vmem:[#allocation3 + $0x52] sm:$0xff] }
 0x4b5   : > { %v3626_v51 = vpop.f32.mrf.mxu1 }
 0x4b6   : > { %v4138_v4 = vadd.f32 %v4058_v36, %v3903_v45  ;;  %v7283_v55 = vadd.f32 %v3626_v51, %v7119_v41  ;;  %v7832_v41 = vld [vmem:[#allocation45_spill] sm:$0xff] }
 0x4b7   : > { %v4193_v36 = vld [vmem:[#allocation3 + $0x141] sm:$0xff] }
 0x4b8   : > { %v7285_v19 = vadd.f32 %v4292_v5, %v4138_v4  ;;  %v4212_v5 = vpack.c.bf16 %v4191_v39, %v4190_v14 }
 0x4bb   : > { %v3825_v15 = vpop.f32.mrf.mxu2 }
 0x4bc   : > { %v4060_v52 = vpop.f32.mrf.mxu3  ;;  %v3904_v7 = vadd.f32 %v3825_v15, %v7146_v40  ;;  %v4299_v61 = vpop.f32.mrf.mxu0  ;;  %v4192_v15 = vld [vmem:[#allocation3 + $0x139] sm:$0xff] }
 0x4bd   : > { %v3629_v11 = vpop.f32.mrf.mxu1 }
 0x4be   : > { %v4139_v59 = vadd.f32 %v4060_v52, %v3904_v7  ;;  %v7289_v57 = vadd.f32 %v3629_v11, %v7128_v53  ;;  %v7833_v7 = vld [vmem:[#allocation60_spill] sm:$0xff] }
 0x4c0   : > { %5244 = vmatmul.msk.bf16.gmra.mxu2 %vm311_vm0, %v7831_v35  ;;  %v7295_v26 = vadd.f32 %v4294_v17, %v4139_v59  ;;  %5307 = vmatmul.msk.bf16.vlgmr.msra.gmra.mxu1 %vm311_vm0, %v4436_v8  ;;  %v4406_v17 = vld [vmem:[#allocation3 + $0x4a] sm:$0xff] }
 0x4c1   : > { %5268 = vmatmul.msk.bf16.gmra.mxu3 %vm311_vm0, %v7832_v41 }
 0x4c3   : > { %v3828_v40 = vpop.f32.mrf.mxu2 }
 0x4c4   : > { %5293 = vmatmul.msk.bf16.gmra.mxu0 %vm311_vm0, %v4212_v5  ;;  %v4063_v34 = vpop.f32.mrf.mxu3  ;;  %v3905_v53 = vadd.f32 %v3828_v40, %v7152_v47  ;;  %v4437_v47 = vpack.c.bf16 %v4407_v49, %v4406_v17  ;;  %v4302_v52 = vpop.f32.mrf.mxu0  ;;  %v4408_v40 = vld [vmem:[#allocation3 + $0x62] sm:$0xff] }
 0x4c5   : > { %v3631_v50 = vpop.f32.mrf.mxu1 }
 0x4c6   : > { %v4140_v25 = vadd.f32 %v4063_v34, %v3905_v53  ;;  %v7301_v20 = vadd.f32 %v3631_v50, %v7138_v1  ;;  %v7834_v1 = vld [vmem:[#allocation52_spill] sm:$0xff]  ;;  %v4409_v34 = vld [vmem:[#allocation3 + $0x6a] sm:$0xff] }
 0x4c7   : > { %v4195_v53 = vld [vmem:[#allocation3 + $0x159] sm:$0xff] }
 0x4c8   : > { %v7303_v44 = vadd.f32 %v4297_v46, %v4140_v25  ;;  %v4213_v46 = vpack.c.bf16 %v4193_v36, %v4192_v15 }
 0x4cb   : > { %v3830_v54 = vpop.f32.mrf.mxu2 }
 0x4cc   : > { %v4065_v3 = vpop.f32.mrf.mxu3  ;;  %v3906_v63 = vadd.f32 %v3830_v54, %v7166_v30  ;;  %v4304_v14 = vpop.f32.mrf.mxu0  ;;  %v4194_v54 = vld [vmem:[#allocation3 + $0x151] sm:$0xff] }
 0x4cd   : > { %v3634_v4 = vpop.f32.mrf.mxu1 }
 0x4ce   : > { %v4141_v45 = vadd.f32 %v4065_v3, %v3906_v63  ;;  %v7307_v51 = vadd.f32 %v3634_v4, %v7148_v38  ;;  %v7835_v3 = vld [vmem:[#allocation62_spill] sm:$0xff]  ;;  %v4214_v63 = vpack.c.bf16 %v4195_v53, %v4194_v54  ;;  %v4413_v53 = vld [vmem:[#allocation3 + $0x9a] sm:$0xff]  ;;  %v7839_v54 = vld [vmem:[#allocation69_spill] sm:$0xff] }
 0x4d0   : > { %5245 = vmatmul.msk.bf16.gmra.mxu2 %vm311_vm0, %v7833_v7  ;;  %v7313_v43 = vadd.f32 %v4299_v61, %v4141_v45  ;;  %5308 = vmatmul.msk.bf16.gmra.mxu1 %vm311_vm0, %v4437_v47 }
 0x4d1   : > { %5269 = vmatmul.msk.bf16.gmra.mxu3 %vm311_vm0, %v7834_v1  ;;  %v4410_v1 = vld [vmem:[#allocation3 + $0x7a] sm:$0xff] }
 0x4d3   : > { %v3833_v30 = vpop.f32.mrf.mxu2 }
 0x4d4   : > { %5294 = vmatmul.msk.bf16.gmra.mxu0 %vm311_vm0, %v4213_v46  ;;  %v4068_v60 = vpop.f32.mrf.mxu3  ;;  %v3907_v38 = vadd.f32 %v3833_v30, %v7172_v2  ;;  %v4438_v2 = vpack.c.bf16 %v4409_v34, %v4408_v40  ;;  %v4307_v36 = vpop.f32.mrf.mxu0  ;;  %v4411_v46 = vld [vmem:[#allocation3 + $0x82] sm:$0xff] }
 0x4d5   : > { %v3636_v59 = vpop.f32.mrf.mxu1 }
 0x4d6   : > { %v4142_v39 = vadd.f32 %v4068_v60, %v3907_v38  ;;  %v7319_v11 = vadd.f32 %v3636_v59, %v7158_v0  ;;  %v7836_v0 = vld [vmem:[#allocation61_spill] sm:$0xff]  ;;  %v4197_v60 = vld [vmem:[#allocation3 + $0x171] sm:$0xff] }
 0x4d8   : > { %v7321_v8 = vadd.f32 %v4302_v52, %v4142_v39 }
 0x4db   : > { %v3835_v35 = vpop.f32.mrf.mxu2 }
 0x4dc   : > { %v4070_v41 = vpop.f32.mrf.mxu3  ;;  %v3908_v5 = vadd.f32 %v3835_v35, %v7186_v33  ;;  %v4309_v59 = vpop.f32.mrf.mxu0  ;;  %v4196_v35 = vld [vmem:[#allocation3 + $0x169] sm:$0xff] }
 0x4dd   : > { %v3639_v61 = vpop.f32.mrf.mxu1 }
 0x4de   : > { %v4143_v25 = vadd.f32 %v4070_v41, %v3908_v5  ;;  %v7325_v50 = vadd.f32 %v3639_v61, %v7168_v18  ;;  %v7837_v41 = vld [vmem:[#allocation66_spill] sm:$0xff]  ;;  %v4215_v5 = vpack.c.bf16 %v4197_v60, %v4196_v35  ;;  %v4416_v60 = vld [vmem:[#allocation3 + $0xc2] sm:$0xff] }
 0x4e0   : > { %5246 = vmatmul.msk.bf16.gmra.mxu2 %vm311_vm0, %v7835_v3  ;;  %v7331_v17 = vadd.f32 %v4304_v14, %v4143_v25  ;;  %5309 = vmatmul.msk.bf16.gmra.mxu1 %vm311_vm0, %v4438_v2  ;;  %v4439_v14 = vpack.c.bf16 %v4411_v46, %v4410_v1  ;;  %v7840_v3 = vld [vmem:[#allocation67_spill] sm:$0xff]  ;;  %v3967_v46 = vld [vmem:[#allocation3 + $0x1a0] sm:$0xff] }
 0x4e1   : > { %5270 = vmatmul.msk.bf16.gmra.mxu3 %vm311_vm0, %v7836_v0  ;;  %v3966_v1 = vld [vmem:[#allocation3 + $0x198] sm:$0xff] }
 0x4e3   : > { %v3838_v33 = vpop.f32.mrf.mxu2 }
 0x4e4   : > { %5295 = vmatmul.msk.bf16.gmra.mxu0 %vm311_vm0, %v4214_v63  ;;  %v4073_v49 = vpop.f32.mrf.mxu3  ;;  %v3909_v18 = vadd.f32 %v3838_v33, %v7192_v58  ;;  %v4200_v63 = vld [vmem:[#allocation3 + $0x199] sm:$0xff]  ;;  %v4201_v33 = vld [vmem:[#allocation3 + $0x1a1] sm:$0xff] }
 0x4e5   : > { %v3641_v4 = vpop.f32.mrf.mxu1 }
 0x4e6   : > { %v4144_v45 = vadd.f32 %v4073_v49, %v3909_v18  ;;  %v7337_v47 = vadd.f32 %v3641_v4, %v7178_v62  ;;  %v7838_v62 = vld [vmem:[#allocation63_spill] sm:$0xff] }
 0x4e7   : > { %v4415_v49 = vld [vmem:[#allocation3 + $0xb2] sm:$0xff] }
 0x4e8   : > { %v7339_v15 = vadd.f32 %v4307_v36, %v4144_v45  ;;  %v4217_v36 = vpack.c.bf16 %v4201_v33, %v4200_v63 }
 0x4eb   : > { %v3840_v52 = vpop.f32.mrf.mxu2 }
 0x4ec   : > { %v3910_v7 = vadd.f32 %v3840_v52, %v7205_v21  ;;  %v4075_v30 = vpop.f32.mrf.mxu3  ;;  %v7841_v52 = vld [vmem:[#allocation71_spill] sm:$0xff] }
 0x4ed   : > { %v3644_v39 = vpop.f32.mrf.mxu1 }
 0x4ee   : > { %v4145_v38 = vadd.f32 %v4075_v30, %v3910_v7  ;;  %v7343_v58 = vadd.f32 %v3644_v39, %v7188_v12  ;;  %v4412_v12 = vld [vmem:[#allocation3 + $0x92] sm:$0xff]  ;;  %v3731_v30 = vld [vmem:[#allocation3 + $0x182] sm:$0xff]  ;;  %v3983_v39 = vpack.c.bf16 %v3967_v46, %v3966_v1  ;;  %v4422_v1 = vld [vmem:[#allocation3 + $0x10a] sm:$0xff] }
 0x4ef   : > { %v4440_v2 = vpack.c.bf16 %v4413_v53, %v4412_v12  ;;  %v7842_v7 = vld [vmem:[#allocation70_spill] sm:$0xff] }
 0x4f0   : > { %5247 = vmatmul.msk.bf16.gmra.mxu2 %vm311_vm0, %v7837_v41  ;;  %v7349_v21 = vadd.f32 %v4309_v59, %v4145_v38  ;;  %5310 = vmatmul.msk.bf16.gmra.mxu1 %vm311_vm0, %v4439_v14  ;;  %v4417_v38 = vld [vmem:[#allocation3 + $0xca] sm:$0xff]  ;;  %v4423_v46 = vld [vmem:[#allocation3 + $0x112] sm:$0xff] }
 0x4f1   : > { %5271 = vmatmul.msk.bf16.gmra.mxu3 %vm311_vm0, %v7838_v62  ;;  %v4442_v41 = vpack.c.bf16 %v4417_v38, %v4416_v60 }
 0x4f4   : > { %5296 = vmatmul.msk.bf16.gmra.mxu0 %vm311_vm0, %v4215_v5  ;;  %v4418_v5 = vld [vmem:[#allocation3 + $0xda] sm:$0xff] }
 0x4f5   : > { %v3646_v40 = vpop.f32.mrf.mxu1 }
 0x4f6   : > { %v7354_v34 = vadd.f32 %v3646_v40, %v7198_v31  ;;  %v4419_v40 = vld [vmem:[#allocation3 + $0xe2] sm:$0xff] }
 0x4fd   : > { %v3649_v25 = vpop.f32.mrf.mxu1 }
 0x4fe   : > { %v7357_v61 = vadd.f32 %v3649_v25, %v7207_v56  ;;  %v4414_v56 = vld [vmem:[#allocation3 + $0xaa] sm:$0xff] }
 0x4ff   : > { %v4441_v4 = vpack.c.bf16 %v4415_v49, %v4414_v56  ;;  %v7843_v56 = vld [vmem:[#allocation16_spill] sm:$0xff] }
 0x500   : > { %5248 = vmatmul.msk.bf16.gmra.mxu2 %vm311_vm0, %v7839_v54  ;;  %5311 = vmatmul.msk.bf16.gmra.mxu1 %vm311_vm0, %v4440_v2  ;;  %v4420_v54 = vld [vmem:[#allocation3 + $0xf2] sm:$0xff] }
 0x501   : > { %5272 = vmatmul.msk.bf16.gmra.mxu3 %vm311_vm0, %v7840_v3  ;;  %v4421_v3 = vld [vmem:[#allocation3 + $0xfa] sm:$0xff] }
 0x504   : > { %5297 = vmatmul.msk.bf16.gmra.mxu0 %vm311_vm0, %v7270_v9 }
 0x505   : > { %v3651_v31 = vpop.f32.mrf.mxu1 }
 0x506   : > { %v7367_v0 = vadd.f32 %v3651_v31, %v7217_v32 }
 0x50d   : > { %v3654_v18 = vpop.f32.mrf.mxu1 }
 0x50e   : > { %v7370_v45 = vadd.f32 %v3654_v18, %v7226_v29  ;;  %v3732_v29 = vld [vmem:[#allocation3 + $0x18a] sm:$0xff]  ;;  %v7409_v18 = vpop.f32.mrf.mxu2 }
 0x50f   : > { %v7381_v14 = vpack.c.bf16 %v3732_v29, %v3731_v30  ;;  %v7422_v30 = vpop.f32.mrf.mxu0 }
 0x510   : > { %5249 = vmatmul.msk.bf16.gmra.mxu2 %vm311_vm0, %v7841_v52  ;;  %5312 = vmatmul.msk.bf16.gmra.mxu1 %vm311_vm0, %v4441_v4  ;;  %v7419_v52 = vpop.f32.mrf.mxu3 }
 0x511   : > { %5273 = vmatmul.msk.bf16.gmra.mxu3 %vm311_vm0, %v7842_v7  ;;  %v7844_v7 = vld [vmem:[#allocation17_spill] sm:$0xff] }
 0x514   : > { %5298 = vmatmul.msk.bf16.gmra.mxu0 %vm311_vm0, %v4217_v36 }
 0x515   : > { %v3656_v32 = vpop.f32.mrf.mxu1 }
 0x516   : > { %v7379_v9 = vadd.f32 %v3656_v32, %v7236_v10  ;;  %v7424_v60 = vpop.f32.mrf.mxu2 }
 0x51d   : > { %v3659_v59 = vpop.f32.mrf.mxu1 }
 0x51e   : > { %v7384_v35 = vadd.f32 %v3659_v59, %v7245_v27  ;;  %v4443_v27 = vpack.c.bf16 %v4419_v40, %v4418_v5  ;;  %v7432_v5 = vpop.f32.mrf.mxu3 }
 0x520   : > { %5250 = vmatmul.msk.bf16.gmra.mxu2 %vm311_vm0, %v7381_v14  ;;  %5313 = vmatmul.msk.bf16.gmra.mxu1 %vm311_vm0, %v4442_v41  ;;  %v7845_v41 = vld [vmem:[#allocation20_spill] sm:$0xff] }
 0x521   : > { %5274 = vmatmul.msk.bf16.gmra.mxu3 %vm311_vm0, %v3983_v39 }
 0x525   : > { %v3661_v10 = vpop.f32.mrf.mxu1 }
 0x526   : > { %v7391_v62 = vadd.f32 %v3661_v10, %v7255_v16  ;;  %v7403_v16 = vld [vmem:[%s7652_s4] ss:$0 sm:$0xff] }
 0x52d   : > { %v3664_v12 = vpop.f32.mrf.mxu1 }
 0x52e   : > { %v7394_v53 = vadd.f32 %v3664_v12, %v7264_v6  ;;  %v4444_v6 = vpack.c.bf16 %v4421_v3, %v4420_v54  ;;  %v3848_v54 = vpop.f32.mrf.mxu2  ;;  %v7846_v3 = vld [vmem:[#allocation21_spill] sm:$0xff] }
 0x530   : > { %5314 = vmatmul.msk.bf16.gmra.mxu1 %vm311_vm0, %v4443_v27  ;;  %v7434_v27 = vpop.f32.mrf.mxu0 }
 0x535   : > { %v3666_v25 = vpop.f32.mrf.mxu1 }
 0x536   : > { %v7398_v2 = vadd.f32 %v3666_v25, %v7276_v22 }
 0x53d   : > { %v4526_v31 = vpop.f32.mrf.mxu1 }
 0x53e   : > { %v4606_v63 = vadd.f32 %v4526_v31, %v7285_v19 }
 0x540   : > { %v4642_v33 = vadd.f32 %v7403_v16, %v4606_v63  ;;  %5315 = vmatmul.msk.bf16.gmra.mxu1 %vm311_vm0, %v4444_v6  ;;  %v4424_v63 = vld [vmem:[#allocation3 + $0x122] sm:$0xff]  ;;  %v4425_v6 = vld [vmem:[#allocation3 + $0x12a] sm:$0xff] }
 0x542   : > { %v4674_v49 = vadd.f32 %v4642_v33, %v7843_v56  ;;  %v7441_v56 = vpop.f32.mrf.mxu3 }
 0x544   : > { %v4706_v22 = vmax.f32 %v4674_v49, 0.0 }
 0x545   : > { %v4528_v36 = vpop.f32.mrf.mxu1 }
 0x546   : > { %4738 = vst.msk [vmem:[%s7413_s27] sm:$0xff] %vm311_vm0, %v4706_v22  ;;  %v4607_v19 = vadd.f32 %v4528_v36, %v7295_v26  ;;  %v4445_v26 = vpack.c.bf16 %v4423_v46, %v4422_v1  ;;  %v4446_v36 = vpack.c.bf16 %v4425_v6, %v4424_v63  ;;  %v7849_v63 = vld [vmem:[#allocation28_spill] sm:$0xff] }
 0x548   : > { %v4643_v4 = vadd.f32 %v7403_v16, %v4607_v19  ;;  %v7446_v19 = vpop.f32.mrf.mxu0 }
 0x54a   : > { %v4675_v32 = vadd.f32 %v4643_v4, %v7844_v7  ;;  %v3850_v4 = vpop.f32.mrf.mxu2  ;;  %v7847_v7 = vld [vmem:[#allocation24_spill] sm:$0xff] }
 0x54c   : > { %v4707_v29 = vmax.f32 %v4675_v32, 0.0 }
 0x54d   : > { %v4531_v38 = vpop.f32.mrf.mxu1 }
 0x54e   : > { %4739 = vst.msk [vmem:[%s7413_s27 + $0x8] sm:$0xff] %vm311_vm0, %v4707_v29  ;;  %v4608_v39 = vadd.f32 %v4531_v38, %v7303_v44  ;;  %v7454_v38 = vpop.f32.mrf.mxu3 }
 0x550   : > { %v4644_v59 = vadd.f32 %v7403_v16, %v4608_v39  ;;  %5316 = vmatmul.msk.bf16.gmra.mxu1 %vm311_vm0, %v4445_v26  ;;  %v7457_v39 = vpop.f32.mrf.mxu0  ;;  %v7848_v26 = vld [vmem:[#allocation25_spill] sm:$0xff] }
 0x552   : > { %v4676_v10 = vadd.f32 %v4644_v59, %v7845_v41  ;;  %v7460_v41 = vpop.f32.mrf.mxu2 }
 0x554   : > { %v4708_v40 = vmax.f32 %v4676_v10, 0.0  ;;  %v4426_v10 = vld [vmem:[#allocation3 + $0x13a] sm:$0xff] }
 0x555   : > { %v4533_v12 = vpop.f32.mrf.mxu1 }
 0x556   : > { %4740 = vst.msk [vmem:[%s7413_s27 + $0x10] sm:$0xff] %vm311_vm0, %v4708_v40  ;;  %v4609_v25 = vadd.f32 %v4533_v12, %v7313_v43  ;;  %v4427_v40 = vld [vmem:[#allocation3 + $0x142] sm:$0xff] }
 0x558   : > { %v4645_v44 = vadd.f32 %v7403_v16, %v4609_v25 }
 0x55a   : > { %v4677_v31 = vadd.f32 %v4645_v44, %v7846_v3 }
 0x55c   : > { %v4709_v33 = vmax.f32 %v4677_v31, 0.0  ;;  %v4088_v31 = vpop.f32.mrf.mxu3 }
 0x55d   : > { %v4536_v49 = vpop.f32.mrf.mxu1 }
 0x55e   : > { %4741 = vst.msk [vmem:[%s7413_s27 + $0x18] sm:$0xff] %vm311_vm0, %v4709_v33  ;;  %v4610_v22 = vadd.f32 %v4536_v49, %v7321_v8  ;;  %v3911_v33 = vadd.f32 %v7409_v18, %v7211_v37  ;;  %v7470_v49 = vpop.f32.mrf.mxu0  ;;  %v3912_v37 = vadd.f32 %v7424_v60, %v7224_v23  ;;  %v3913_v23 = vadd.f32 %v3848_v54, %v7230_v48 }
 0x55f   : > { %v3914_v48 = vadd.f32 %v3850_v4, %v7243_v28 }
 0x560   : > { %v4646_v43 = vadd.f32 %v7403_v16, %v4610_v22  ;;  %5317 = vmatmul.msk.bf16.gmra.mxu1 %vm311_vm0, %v4446_v36  ;;  %v3855_v36 = vpop.f32.mrf.mxu2 }
 0x562   : > { %v4678_v32 = vadd.f32 %v4646_v43, %v7847_v7  ;;  %v4146_v7 = vadd.f32 %v7419_v52, %v3911_v33 }
 0x564   : > { %v4710_v1 = vmax.f32 %v4678_v32, 0.0 }
 0x565   : > { %v4538_v46 = vpop.f32.mrf.mxu1 }
 0x566   : > { %4742 = vst.msk [vmem:[%s7413_s27 + $0x20] sm:$0xff] %vm311_vm0, %v4710_v1  ;;  %v4611_v29 = vadd.f32 %v4538_v46, %v7331_v17  ;;  %v4447_v17 = vpack.c.bf16 %v4427_v40, %v4426_v10  ;;  %v7850_v1 = vld [vmem:[#allocation29_spill] sm:$0xff]  ;;  %v4324_v40 = vpop.f32.mrf.mxu0 }
 0x568   : > { %v4647_v8 = vadd.f32 %v7403_v16, %v4611_v29  ;;  %v4090_v29 = vpop.f32.mrf.mxu3 }
 0x56a   : > { %v4679_v59 = vadd.f32 %v4647_v8, %v7848_v26  ;;  %v4428_v8 = vld [vmem:[#allocation3 + $0x152] sm:$0xff]  ;;  %v4429_v26 = vld [vmem:[#allocation3 + $0x15a] sm:$0xff] }
 0x56b   : > { %v4448_v52 = vpack.c.bf16 %v4429_v26, %v4428_v8 }
 0x56c   : > { %v4711_v12 = vmax.f32 %v4679_v59, 0.0  ;;  %v4380_v59 = vadd.f32 %v7422_v30, %v4146_v7  ;;  %v7852_v7 = vld [vmem:[#allocation33_spill] sm:$0xff] }
 0x56d   : > { %v4541_v25 = vpop.f32.mrf.mxu1 }
 0x56e   : > { %4743 = vst.msk [vmem:[%s7413_s27 + $0x28] sm:$0xff] %vm311_vm0, %v4711_v12  ;;  %v4612_v44 = vadd.f32 %v4541_v25, %v7339_v15  ;;  %v3858_v12 = vpop.f32.mrf.mxu2  ;;  %v4147_v25 = vadd.f32 %v7432_v5, %v3912_v37  ;;  %v4327_v5 = vpop.f32.mrf.mxu0 }
 0x570   : > { %v4648_v3 = vadd.f32 %v7403_v16, %v4612_v44  ;;  %5318 = vmatmul.msk.bf16.gmra.mxu1 %vm311_vm0, %v4447_v17  ;;  %v7851_v17 = vld [vmem:[#allocation32_spill] sm:$0xff]  ;;  %v4381_v30 = vadd.f32 %v7434_v27, %v4147_v25 }
 0x572   : > { %v4680_v6 = vadd.f32 %v4648_v3, %v7849_v63  ;;  %v4093_v63 = vpop.f32.mrf.mxu3 }
 0x574   : > { %v4712_v22 = vmax.f32 %v4680_v6, 0.0 }
 0x575   : > { %v4543_v43 = vpop.f32.mrf.mxu1 }
 0x576   : > { %4744 = vst.msk [vmem:[%s7413_s27 + $0x30] sm:$0xff] %vm311_vm0, %v4712_v22  ;;  %v4613_v15 = vadd.f32 %v4543_v43, %v7349_v21  ;;  %v4148_v22 = vadd.f32 %v7441_v56, %v3913_v23 }
 0x578   : > { %v4649_v32 = vadd.f32 %v7403_v16, %v4613_v15  ;;  %v3860_v15 = vpop.f32.mrf.mxu2  ;;  %v4382_v27 = vadd.f32 %v7446_v19, %v4148_v22  ;;  %v3915_v19 = vadd.f32 %v7460_v41, %v7249_v24 }
 0x57a   : > { %v4681_v46 = vadd.f32 %v4649_v32, %v7850_v1  ;;  %v4430_v1 = vld [vmem:[#allocation3 + $0x16a] sm:$0xff]  ;;  %v4095_v56 = vpop.f32.mrf.mxu3 }
 0x57c   : > { %v4713_v18 = vmax.f32 %v4681_v46, 0.0  ;;  %v4431_v46 = vld [vmem:[#allocation3 + $0x172] sm:$0xff] }
 0x57d   : > { %v4546_v10 = vpop.f32.mrf.mxu1  ;;  %v4449_v37 = vpack.c.bf16 %v4431_v46, %v4430_v1 }
 0x57e   : > { %4745 = vst.msk [vmem:[%s7413_s27 + $0x38] sm:$0xff] %vm311_vm0, %v4713_v18  ;;  %v4614_v21 = vadd.f32 %v4546_v10, %v4380_v59  ;;  %v4149_v18 = vadd.f32 %v7454_v38, %v3914_v48  ;;  %v4329_v10 = vpop.f32.mrf.mxu0  ;;  %v4150_v38 = vadd.f32 %v4088_v31, %v3915_v19 }
 0x580   : > { %v4650_v44 = vadd.f32 %v7403_v16, %v4614_v21  ;;  %5319 = vmatmul.msk.bf16.gmra.mxu1 %vm311_vm0, %v4448_v52  ;;  %v7853_v21 = vld [vmem:[#allocation36_spill] sm:$0xff]  ;;  %v3863_v28 = vpop.f32.mrf.mxu2  ;;  %v4383_v25 = vadd.f32 %v7457_v39, %v4149_v18  ;;  %v4384_v24 = vadd.f32 %v7470_v49, %v4150_v38  ;;  %v7857_v38 = vld [vmem:[#allocation14_spill] sm:$0xff] }
 0x581   : > { %v4435_v18 = vld [vmem:[#allocation3 + $0x1a2] sm:$0xff] }
 0x582   : > { %v4682_v3 = vadd.f32 %v4650_v44, %v7851_v17  ;;  %v4098_v23 = vpop.f32.mrf.mxu3 }
 0x584   : > { %v4714_v60 = vmax.f32 %v4682_v3, 0.0 }
 0x585   : > { %v4548_v6 = vpop.f32.mrf.mxu1 }
 0x586   : > { %4746 = vst.msk [vmem:[%s7413_s27 + $0x40] sm:$0xff] %vm311_vm0, %v4714_v60  ;;  %v4615_v33 = vadd.f32 %v4548_v6, %v4381_v30  ;;  %v7854_v60 = vld [vmem:[#allocation37_spill] sm:$0xff]  ;;  %v3916_v6 = vadd.f32 %v3855_v36, %v7262_v42  ;;  %v3917_v42 = vadd.f32 %v3858_v12, %v7268_v13 }
 0x588   : > { %v4651_v43 = vadd.f32 %v7403_v16, %v4615_v33  ;;  %v4332_v33 = vpop.f32.mrf.mxu0  ;;  %v3865_v41 = vpop.f32.mrf.mxu2 }
 0x58a   : > { %v4683_v32 = vadd.f32 %v4651_v43, %v7852_v7  ;;  %v4151_v7 = vadd.f32 %v4090_v29, %v3916_v6  ;;  %v4100_v46 = vpop.f32.mrf.mxu3  ;;  %v4152_v29 = vadd.f32 %v4093_v63, %v3917_v42 }
 0x58c   : > { %v4715_v54 = vmax.f32 %v4683_v32, 0.0  ;;  %v7855_v32 = vld [vmem:[#allocation40_spill] sm:$0xff]  ;;  %v4385_v48 = vadd.f32 %v4324_v40, %v4151_v7  ;;  %v4386_v13 = vadd.f32 %v4327_v5, %v4152_v29 }
 0x58d   : > { %v4551_v8 = vpop.f32.mrf.mxu1 }
 0x58e   : > { %4747 = vst.msk [vmem:[%s7413_s27 + $0x48] sm:$0xff] %vm311_vm0, %v4715_v54  ;;  %v4616_v26 = vadd.f32 %v4551_v8, %v4382_v27 }
 0x590   : > { %v4652_v59 = vadd.f32 %v7403_v16, %v4616_v26  ;;  %5320 = vmatmul.msk.bf16.gmra.mxu1 %vm311_vm0, %v4449_v37  ;;  %v4334_v49 = vpop.f32.mrf.mxu0  ;;  %v3868_v8 = vpop.f32.mrf.mxu2  ;;  %v4434_v37 = vld [vmem:[#allocation3 + $0x19a] sm:$0xff] }
 0x591   : > { %v4451_v40 = vpack.c.bf16 %v4435_v18, %v4434_v37 }
 0x592   : > { %v4684_v52 = vadd.f32 %v4652_v59, %v7853_v21  ;;  %v3918_v21 = vadd.f32 %v3860_v15, %v7283_v55  ;;  %v4103_v12 = vpop.f32.mrf.mxu3  ;;  %v3919_v55 = vadd.f32 %v3863_v28, %v7289_v57 }
 0x594   : > { %v4716_v4 = vmax.f32 %v4684_v52, 0.0 }
 0x595   : > { %v4553_v44 = vpop.f32.mrf.mxu1 }
 0x596   : > { %4748 = vst.msk [vmem:[%s7413_s27 + $0x50] sm:$0xff] %vm311_vm0, %v4716_v4  ;;  %v4617_v17 = vadd.f32 %v4553_v44, %v4383_v25  ;;  %v4153_v25 = vadd.f32 %v4095_v56, %v3918_v21 }
 0x598   : > { %v4653_v3 = vadd.f32 %v7403_v16, %v4617_v17  ;;  %v4337_v44 = vpop.f32.mrf.mxu0  ;;  %v3870_v17 = vpop.f32.mrf.mxu2  ;;  %v4387_v15 = vadd.f32 %v4329_v10, %v4153_v25 }
 0x599   : > { %v3922_v21 = vadd.f32 %v3870_v17, %v7319_v11 }
 0x59a   : > { %v4685_v30 = vadd.f32 %v4653_v3, %v7854_v60  ;;  %v4105_v6 = vpop.f32.mrf.mxu3 }
 0x59c   : > { %v4717_v22 = vmax.f32 %v4685_v30, 0.0 }
 0x59d   : > { %v4556_v43 = vpop.f32.mrf.mxu1 }
 0x59e   : > { %4749 = vst.msk [vmem:[%s7413_s27 + $0x58] sm:$0xff] %vm311_vm0, %v4717_v22  ;;  %v4618_v39 = vadd.f32 %v4556_v43, %v4384_v24  ;;  %v4154_v22 = vadd.f32 %v4098_v23, %v3919_v55  ;;  %v7858_v43 = vld [vmem:[#allocation15_spill] sm:$0xff]  ;;  %v7859_v23 = vld [vmem:[#allocation18_spill] sm:$0xff] }
 0x5a0   : > { %v4654_v31 = vadd.f32 %v7403_v16, %v4618_v39  ;;  %5321 = vmatmul.msk.bf16.gmra.mxu1 %vm311_vm0, %v7381_v14  ;;  %v7856_v14 = vld [vmem:[#allocation41_spill] sm:$0xff]  ;;  %v4339_v24 = vpop.f32.mrf.mxu0  ;;  %v3873_v7 = vpop.f32.mrf.mxu2  ;;  %v4388_v57 = vadd.f32 %v4332_v33, %v4154_v22 }
 0x5a2   : > { %v4686_v1 = vadd.f32 %v4654_v31, %v7855_v32  ;;  %v3920_v31 = vadd.f32 %v3865_v41, %v7301_v20 }
 0x5a4   : > { %v4718_v36 = vmax.f32 %v4686_v1, 0.0  ;;  %v4155_v1 = vadd.f32 %v4100_v46, %v3920_v31  ;;  %v7860_v46 = vld [vmem:[#allocation19_spill] sm:$0xff] }
 0x5a5   : > { %v4558_v54 = vpop.f32.mrf.mxu1 }
 0x5a6   : > { %4750 = vst.msk [vmem:[%s7413_s27 + $0x60] sm:$0xff] %vm311_vm0, %v4718_v36  ;;  %v4619_v27 = vadd.f32 %v4558_v54, %v4385_v48  ;;  %v4108_v36 = vpop.f32.mrf.mxu3  ;;  %v3921_v54 = vadd.f32 %v3868_v8, %v7307_v51 }
 0x5a8   : > { %v4655_v26 = vadd.f32 %v7403_v16, %v4619_v27  ;;  %v4342_v27 = vpop.f32.mrf.mxu0  ;;  %v3875_v20 = vpop.f32.mrf.mxu2  ;;  %v4156_v37 = vadd.f32 %v4103_v12, %v3921_v54  ;;  %v7861_v12 = vld [vmem:[#allocation22_spill] sm:$0xff] }
 0x5a9   : > { %v3924_v22 = vadd.f32 %v3875_v20, %v7337_v47 }
 0x5aa   : > { %v4687_v59 = vadd.f32 %v4655_v26, %v7856_v14  ;;  %v4389_v26 = vadd.f32 %v4334_v49, %v4155_v1  ;;  %v4390_v51 = vadd.f32 %v4337_v44, %v4156_v37 }
 0x5ac   : > { %v4719_v52 = vmax.f32 %v4687_v59, 0.0 }
 0x5ad   : > { %v4561_v19 = vpop.f32.mrf.mxu1 }
 0x5ae   : > { %4751 = vst.msk [vmem:[%s7413_s27 + $0x68] sm:$0xff] %vm311_vm0, %v4719_v52  ;;  %v4620_v4 = vadd.f32 %v4561_v19, %v4386_v13  ;;  %v4110_v59 = vpop.f32.mrf.mxu3  ;;  %v4157_v19 = vadd.f32 %v4105_v6, %v3922_v21  ;;  %v7865_v21 = vld [vmem:[#allocation30_spill] sm:$0xff] }
 0x5b0   : > { %v4656_v63 = vadd.f32 %v7403_v16, %v4620_v4  ;;  %5322 = vmatmul.msk.bf16.gmra.mxu1 %vm311_vm0, %v4451_v40  ;;  %v4344_v13 = vpop.f32.mrf.mxu0  ;;  %v3878_v40 = vpop.f32.mrf.mxu2 }
 0x5b1   : > { %v3925_v1 = vadd.f32 %v3878_v40, %v7343_v58 }
 0x5b2   : > { %v4688_v3 = vadd.f32 %v4656_v63, %v7857_v38  ;;  %v3923_v63 = vadd.f32 %v3873_v7, %v7325_v50  ;;  %v4159_v7 = vadd.f32 %v4110_v59, %v3924_v22 }
 0x5b4   : > { %v4720_v5 = vmax.f32 %v4688_v3, 0.0  ;;  %v4391_v3 = vadd.f32 %v4339_v24, %v4157_v19  ;;  %v4158_v55 = vadd.f32 %v4108_v36, %v3923_v63  ;;  %v4393_v47 = vadd.f32 %v4344_v13, %v4159_v7  ;;  %v7866_v63 = vld [vmem:[#allocation31_spill] sm:$0xff] }
 0x5b5   : > { %v4563_v60 = vpop.f32.mrf.mxu1 }
 0x5b6   : > { %4752 = vst.msk [vmem:[%s7413_s27 + $0x70] sm:$0xff] %vm311_vm0, %v4720_v5  ;;  %v4621_v30 = vadd.f32 %v4563_v60, %v4387_v15  ;;  %v4113_v11 = vpop.f32.mrf.mxu3  ;;  %v4392_v50 = vadd.f32 %v4342_v27, %v4158_v55 }
 0x5b8   : > { %v4657_v56 = vadd.f32 %v7403_v16, %v4621_v30  ;;  %v4347_v5 = vpop.f32.mrf.mxu0  ;;  %v3880_v60 = vpop.f32.mrf.mxu2  ;;  %v7862_v30 = vld [vmem:[#allocation23_spill] sm:$0xff] }
 0x5b9   : > { %v3926_v20 = vadd.f32 %v3880_v60, %v7354_v34 }
 0x5ba   : > { %v4689_v39 = vadd.f32 %v4657_v56, %v7858_v43 }
 0x5bc   : > { %v4721_v32 = vmax.f32 %v4689_v39, 0.0 }
 0x5bd   : > { %v4566_v28 = vpop.f32.mrf.mxu1 }
 0x5be   : > { %4753 = vst.msk [vmem:[%s7413_s27 + $0x78] sm:$0xff] %vm311_vm0, %v4721_v32  ;;  %v4622_v10 = vadd.f32 %v4566_v28, %v4388_v57  ;;  %v4115_v39 = vpop.f32.mrf.mxu3  ;;  %v7863_v57 = vld [vmem:[#allocation26_spill] sm:$0xff] }
 0x5c0   : > { %v4658_v42 = vadd.f32 %v7403_v16, %v4622_v10  ;;  %v4349_v32 = vpop.f32.mrf.mxu0  ;;  %v3883_v10 = vpop.f32.mrf.mxu2 }
 0x5c2   : > { %v4690_v48 = vadd.f32 %v4658_v42, %v7859_v23 }
 0x5c4   : > { %v4722_v29 = vmax.f32 %v4690_v48, 0.0  ;;  %v4160_v48 = vadd.f32 %v4113_v11, %v3925_v1 }
 0x5c5   : > { %v4568_v41 = vpop.f32.mrf.mxu1 }
 0x5c6   : > { %4754 = vst.msk [vmem:[%s7413_s27 + $0x80] sm:$0xff] %vm311_vm0, %v4722_v29  ;;  %v4623_v33 = vadd.f32 %v4568_v41, %v4389_v26  ;;  %v4118_v27 = vpop.f32.mrf.mxu3  ;;  %v7864_v29 = vld [vmem:[#allocation27_spill] sm:$0xff]  ;;  %v4394_v37 = vadd.f32 %v4347_v5, %v4160_v48 }
 0x5c8   : > { %v4659_v18 = vadd.f32 %v7403_v16, %v4623_v33  ;;  %v4352_v41 = vpop.f32.mrf.mxu0  ;;  %v3885_v58 = vpop.f32.mrf.mxu2 }
 0x5ca   : > { %v4691_v14 = vadd.f32 %v4659_v18, %v7860_v46 }
 0x5cc   : > { %v4723_v52 = vmax.f32 %v4691_v14, 0.0  ;;  %v4161_v14 = vadd.f32 %v4115_v39, %v3926_v20 }
 0x5cd   : > { %v4571_v8 = vpop.f32.mrf.mxu1 }
 0x5ce   : > { %4755 = vst.msk [vmem:[%s7413_s27 + $0x88] sm:$0xff] %vm311_vm0, %v4723_v52  ;;  %v4624_v49 = vadd.f32 %v4571_v8, %v4390_v51  ;;  %v4120_v51 = vpop.f32.mrf.mxu3  ;;  %v3927_v8 = vadd.f32 %v3883_v10, %v7357_v61  ;;  %v4395_v34 = vadd.f32 %v4349_v32, %v4161_v14  ;;  %v7870_v14 = vld [vmem:[#allocation39_spill] sm:$0xff] }
 0x5d0   : > { %v4660_v4 = vadd.f32 %v7403_v16, %v4624_v49  ;;  %v4354_v40 = vpop.f32.mrf.mxu0 }
 0x5d2   : > { %v4692_v25 = vadd.f32 %v4660_v4, %v7861_v12  ;;  %v3888_v4 = vpop.f32.mrf.mxu2  ;;  %v4162_v12 = vadd.f32 %v4118_v27, %v3927_v8  ;;  %v7869_v27 = vld [vmem:[#allocation38_spill] sm:$0xff] }
 0x5d4   : > { %v4724_v38 = vmax.f32 %v4692_v25, 0.0 }
 0x5d5   : > { %v4573_v17 = vpop.f32.mrf.mxu1 }
 0x5d6   : > { %4756 = vst.msk [vmem:[%s7413_s27 + $0x90] sm:$0xff] %vm311_vm0, %v4724_v38  ;;  %v4625_v44 = vadd.f32 %v4573_v17, %v4391_v3  ;;  %v3928_v3 = vadd.f32 %v3885_v58, %v7367_v0  ;;  %v4396_v17 = vadd.f32 %v4352_v41, %v4162_v12  ;;  %v4123_v61 = vpop.f32.mrf.mxu3 }
 0x5d8   : > { %v4661_v15 = vadd.f32 %v7403_v16, %v4625_v44  ;;  %v4163_v5 = vadd.f32 %v4120_v51, %v3928_v3 }
 0x5da   : > { %v4693_v6 = vadd.f32 %v4661_v15, %v7862_v30  ;;  %v4357_v15 = vpop.f32.mrf.mxu0  ;;  %v3890_v30 = vpop.f32.mrf.mxu2  ;;  %v4397_v0 = vadd.f32 %v4354_v40, %v4163_v5  ;;  %v7872_v5 = vld [vmem:[#allocation43_spill] sm:$0xff] }
 0x5db   : > { %v3930_v1 = vadd.f32 %v3890_v30, %v7379_v9 }
 0x5dc   : > { %v4725_v56 = vmax.f32 %v4693_v6, 0.0  ;;  %v7867_v6 = vld [vmem:[#allocation34_spill] sm:$0xff] }
 0x5dd   : > { %v4576_v43 = vpop.f32.mrf.mxu1 }
 0x5de   : > { %4757 = vst.msk [vmem:[%s7413_s27 + $0x98] sm:$0xff] %vm311_vm0, %v4725_v56  ;;  %v4626_v24 = vadd.f32 %v4576_v43, %v4392_v50  ;;  %v3929_v56 = vadd.f32 %v3888_v4, %v7370_v45  ;;  %v4125_v39 = vpop.f32.mrf.mxu3  ;;  %v7871_v4 = vld [vmem:[#allocation42_spill] sm:$0xff] }
 0x5e0   : > { %v4662_v31 = vadd.f32 %v7403_v16, %v4626_v24  ;;  %v4164_v7 = vadd.f32 %v4123_v61, %v3929_v56 }
 0x5e2   : > { %v4694_v28 = vadd.f32 %v4662_v31, %v7863_v57  ;;  %v4359_v32 = vpop.f32.mrf.mxu0  ;;  %v7868_v57 = vld [vmem:[#allocation35_spill] sm:$0xff]  ;;  %v3893_v10 = vpop.f32.mrf.mxu2  ;;  %v4398_v45 = vadd.f32 %v4357_v15, %v4164_v7 }
 0x5e3   : > { %v3931_v20 = vadd.f32 %v3893_v10, %v7384_v35 }
 0x5e4   : > { %v4726_v42 = vmax.f32 %v4694_v28, 0.0 }
 0x5e5   : > { %v4578_v36 = vpop.f32.mrf.mxu1 }
 0x5e6   : > { %4758 = vst.msk [vmem:[%s7413_s27 + $0xa0] sm:$0xff] %vm311_vm0, %v4726_v42  ;;  %v4627_v23 = vadd.f32 %v4578_v36, %v4393_v47 }
 0x5e8   : > { %v4663_v54 = vadd.f32 %v7403_v16, %v4627_v23  ;;  %v4165_v23 = vadd.f32 %v4125_v39, %v3930_v1 }
 0x5ea   : > { %v4695_v26 = vadd.f32 %v4663_v54, %v7864_v29  ;;  %v4128_v54 = vpop.f32.mrf.mxu3  ;;  %v3895_v9 = vpop.f32.mrf.mxu2 }
 0x5ec   : > { %v4727_v33 = vmax.f32 %v4695_v26, 0.0  ;;  %v4362_v26 = vpop.f32.mrf.mxu0 }
 0x5ed   : > { %v4581_v18 = vpop.f32.mrf.mxu1 }
 0x5ee   : > { %4759 = vst.msk [vmem:[%s7413_s27 + $0xa8] sm:$0xff] %vm311_vm0, %v4727_v33  ;;  %v4628_v46 = vadd.f32 %v4581_v18, %v4394_v37  ;;  %v4399_v33 = vadd.f32 %v4359_v32, %v4165_v23  ;;  %v4166_v18 = vadd.f32 %v4128_v54, %v3931_v20 }
 0x5f0   : > { %v4664_v59 = vadd.f32 %v7403_v16, %v4628_v46  ;;  %v4400_v8 = vadd.f32 %v4362_v26, %v4166_v18 }
 0x5f2   : > { %v4696_v52 = vadd.f32 %v4664_v59, %v7865_v21  ;;  %v4130_v21 = vpop.f32.mrf.mxu3 }
 0x5f4   : > { %v4728_v13 = vmax.f32 %v4696_v52, 0.0  ;;  %v3932_v52 = vadd.f32 %v3895_v9, %v7391_v62 }
 0x5f5   : > { %v4583_v49 = vpop.f32.mrf.mxu1 }
 0x5f6   : > { %4760 = vst.msk [vmem:[%s7413_s27 + $0xb0] sm:$0xff] %vm311_vm0, %v4728_v13  ;;  %v4629_v19 = vadd.f32 %v4583_v49, %v4395_v34  ;;  %v4364_v34 = vpop.f32.mrf.mxu0  ;;  %v3898_v49 = vpop.f32.mrf.mxu2  ;;  %v4167_v40 = vadd.f32 %v4130_v21, %v3932_v52 }
 0x5f8   : > { %v4665_v25 = vadd.f32 %v7403_v16, %v4629_v19  ;;  %v4401_v62 = vadd.f32 %v4364_v34, %v4167_v40 }
 0x5fa   : > { %v4697_v38 = vadd.f32 %v4665_v25, %v7866_v63  ;;  %v4133_v25 = vpop.f32.mrf.mxu3  ;;  %v3933_v63 = vadd.f32 %v3898_v49, %v7394_v53 }
 0x5fc   : > { %v4729_v11 = vmax.f32 %v4697_v38, 0.0  ;;  %v4168_v61 = vadd.f32 %v4133_v25, %v3933_v63 }
 0x5fd   : > { %v4586_v44 = vpop.f32.mrf.mxu1 }
 0x5fe   : > { %4761 = vst.msk [vmem:[%s7413_s27 + $0xb8] sm:$0xff] %vm311_vm0, %v4729_v11  ;;  %v4630_v55 = vadd.f32 %v4586_v44, %v4396_v17  ;;  %v4367_v17 = vpop.f32.mrf.mxu0 }
 0x600   : > { %v4666_v60 = vadd.f32 %v7403_v16, %v4630_v55  ;;  %v3900_v55 = vpop.f32.mrf.mxu2 }
 0x601   : > { %v3934_v30 = vadd.f32 %v3900_v55, %v7398_v2 }
 0x602   : > { %v4698_v22 = vadd.f32 %v4666_v60, %v7867_v6  ;;  %v4402_v60 = vadd.f32 %v4367_v17, %v4168_v61  ;;  %v4135_v6 = vpop.f32.mrf.mxu3 }
 0x604   : > { %v4730_v50 = vmax.f32 %v4698_v22, 0.0 }
 0x605   : > { %v4588_v43 = vpop.f32.mrf.mxu1 }
 0x606   : > { %4762 = vst.msk [vmem:[%s7413_s27 + $0xc0] sm:$0xff] %vm311_vm0, %v4730_v50  ;;  %v4631_v24 = vadd.f32 %v4588_v43, %v4397_v0  ;;  %v4169_v50 = vadd.f32 %v4135_v6, %v3934_v30  ;;  %v4369_v43 = vpop.f32.mrf.mxu0 }
 0x608   : > { %v4667_v31 = vadd.f32 %v7403_v16, %v4631_v24  ;;  %v7873_v24 = vld [vmem:[#allocation57_spill] sm:$0xff]  ;;  %v4403_v7 = vadd.f32 %v4369_v43, %v4169_v50 }
 0x60a   : > { %v4699_v28 = vadd.f32 %v4667_v31, %v7868_v57 }
 0x60c   : > { %v4731_v42 = vmax.f32 %v4699_v28, 0.0  ;;  %v7874_v28 = vld [vmem:[#allocation58_spill] sm:$0xff] }
 0x60d   : > { %v4591_v47 = vpop.f32.mrf.mxu1 }
 0x60e   : > { %4763 = vst.msk [vmem:[%s7413_s27 + $0xc8] sm:$0xff] %vm311_vm0, %v4731_v42  ;;  %v4632_v36 = vadd.f32 %v4591_v47, %v4398_v45 }
 0x610   : > { %v4668_v48 = vadd.f32 %v7403_v16, %v4632_v36 }
 0x612   : > { %v4700_v29 = vadd.f32 %v4668_v48, %v7869_v27 }
 0x614   : > { %v4732_v41 = vmax.f32 %v4700_v29, 0.0 }
 0x615   : > { %v4593_v37 = vpop.f32.mrf.mxu1 }
 0x616   : > { %4764 = vst.msk [vmem:[%s7413_s27 + $0xd0] sm:$0xff] %vm311_vm0, %v4732_v41  ;;  %v4633_v58 = vadd.f32 %v4593_v37, %v4399_v33 }
 0x618   : > { %v4669_v46 = vadd.f32 %v7403_v16, %v4633_v58 }
 0x61a   : > { %v4701_v59 = vadd.f32 %v4669_v46, %v7870_v14 }
 0x61c   : > { %v4733_v51 = vmax.f32 %v4701_v59, 0.0 }
 0x61d   : > { %v4596_v13 = vpop.f32.mrf.mxu1 }
 0x61e   : > { %4765 = vst.msk [vmem:[%s7413_s27 + $0xd8] sm:$0xff] %vm311_vm0, %v4733_v51  ;;  %v4634_v35 = vadd.f32 %v4596_v13, %v4400_v8 }
 0x620   : > { %v4670_v19 = vadd.f32 %v7403_v16, %v4634_v35 }
 0x622   : > { %v4702_v12 = vadd.f32 %v4670_v19, %v7871_v4 }
 0x624   : > { %v4734_v38 = vmax.f32 %v4702_v12, 0.0 }
 0x625   : > { %v4598_v3 = vpop.f32.mrf.mxu1 }
 0x626   : > { %4766 = vst.msk [vmem:[%s7413_s27 + $0xe0] sm:$0xff] %vm311_vm0, %v4734_v38  ;;  %v4635_v11 = vadd.f32 %v4598_v3, %v4401_v62 }
 0x628   : > { %v4671_v44 = vadd.f32 %v7403_v16, %v4635_v11 }
 0x62a   : > { %v4703_v15 = vadd.f32 %v4671_v44, %v7872_v5 }
 0x62c   : > { %v4735_v53 = vmax.f32 %v4703_v15, 0.0 }
 0x62d   : > { %v4601_v22 = vpop.f32.mrf.mxu1 }
 0x62e   : > { %4767 = vst.msk [vmem:[%s7413_s27 + $0xe8] sm:$0xff] %vm311_vm0, %v4735_v53  ;;  %v4636_v56 = vadd.f32 %v4601_v22, %v4402_v60 }
 0x630   : > { %v4672_v0 = vadd.f32 %v7403_v16, %v4636_v56 }
 0x632   : > { %v4704_v39 = vadd.f32 %v4672_v0, %v7873_v24 }
 0x634   : > { %v4736_v31 = vmax.f32 %v4704_v39, 0.0 }
 0x635   : > { %v4603_v32 = vpop.f32.mrf.mxu1 }
 0x636   : > { %4768 = vst.msk [vmem:[%s7413_s27 + $0xf0] sm:$0xff] %vm311_vm0, %v4736_v31  ;;  %v4637_v2 = vadd.f32 %v4603_v32, %v4403_v7 }
 0x638   : > { %v4673_v57 = vadd.f32 %v7403_v16, %v4637_v2 }
 0x63a   : > { %v4705_v10 = vadd.f32 %v4673_v57, %v7874_v28 }
 0x63c   : > { %v4737_v1 = vmax.f32 %v4705_v10, 0.0 }
 0x63e   : > { %4769 = vst.msk [vmem:[%s7413_s27 + $0xf8] sm:$0xff] %vm311_vm0, %v4737_v1 }
 0x63f   : > { %5564 = shalt.err (!%p5561_p10)
}
 0x640   : > { %s5616_s8 = smov 128   ;;  %s5617_s12 = smov 8  }
 0x641   : > { %5380 = dma.vmem_to_hbm [thread:$0]  (%p5714_p3), %s4784_s7, 4096, %s4786_s13, %s4771_s22, %s5616_s8, %s5616_s8, %s5617_s12  }
 0x642 PF: > { %s4800_s27 = sand.u32 1, %s5595_s18   ;;  %p7875_p12 = scmp.ge.s32.totalorder %s5607_s21, 2 }
 0x643   : > { %s4801_s28 = scalar_lea.sflag [#allocation6], %s4800_s27 }
 0x644   : > { %p5394_p13 = pnand %p7875_p12, %p5683_p6 }
 0x646   : > { %p5395_p0 = pneg %p5394_p13 }
 0x648   : > { %5590 = dma.done.wait (%p5395_p0), %s4801_s28, 4096  }
 0x649   : > { %5592 = vsyncadd (%p5395_p0), %s4801_s28, 4294963200  ;;  %p19_p5 = scmp.ge.s32.totalorder %s5704_s14, 4   ;;  %s7876_s18 = smov %s5599_s19 }
 0x64a   : > { %s7877_s19 = smov %s5603_s20  ;;  %s7878_s20 = smov %s5720_s23 }
 0x64b   : > { %s7879_s21 = smov %s5704_s14  ;;  %21 = sbr.rel (!%p19_p5) target bundleno = 6 (0x6), region = 113 }
 0x650   :  { %4807 = vsyncpa [#allocation5], 1 }
 0x651   :  { %4809 = vsyncpa [#allocation5 + $0x1], 1 }
 0x652   :  { %4810 = vsyncpa [#allocation8], 1 }
 0x653   :  { %4811 = vsyncpa [#allocation6], 1 }
 0x654   :  { %4813 = vsyncpa [#allocation6 + $0x1], 1 }

</bundles_post_ra>
